<compile_context>
chip_gen: v7x
topology: tpu7x:2x2x1
jax: 0.10.0
libtpu: 0.0.40
codegen_flags: <defaults>
</compile_context>

<pallas_src>
import functools

import jax
import jax.numpy as jnp
from jax import lax
from jax.experimental import pallas as pl
from jax.experimental.pallas import tpu as pltpu

BATCH = 8        # number of graphs
N_ITEMS = 16
N_EDGES = 8
EMBED = 32       # embedding_dim = out_channels = per-head width (concat=False)
HEADS = 4
LANES = 128
PACK = LANES // EMBED   # rows packed per lane-dense output row (=4)
LRELU_ATT = 0.2  # PyG HypergraphConv default negative_slope
LRELU_FFN = 0.01 # nn.LeakyReLU default
LN_EPS = 1e-5


def _layernorm(x, gamma, beta):
    mu = jnp.mean(x, axis=-1, keepdims=True)
    var = jnp.mean((x - mu) ** 2, axis=-1, keepdims=True)
    return (x - mu) * lax.rsqrt(var + LN_EPS) * gamma + beta


def hyper_encoder_kernel(x_ref, ht_ref, wall_ref, bias_ref, ln1g_ref, ln1b_ref,
                         wf_ref, bf_ref, ln2g_ref, ln2b_ref, out_ref):
    f32 = jnp.float32
    x3 = x_ref[...]                                   # (bb, N, D)
    bb, N, D = x3.shape
    Ht = ht_ref[...]                                  # (bb, E, N) incidence^T, 1.0 at nonzeros
    E = Ht.shape[1]
    H = HEADS
    F = H * D
    x2 = x3.reshape(bb * N, D)                        # row-wise view for wide matmuls

    # ---- degree normalizations (hyperedge weights == 1.0); EUP reciprocals ----
    Bsum = jnp.sum(Ht, axis=-1, keepdims=True)        # (bb, E, 1)  nodes per edge
    Binv = jnp.where(Bsum > 0.0,
                     pl.reciprocal(jnp.maximum(Bsum, 1.0), approx=True), 0.0)
    Dsum = jnp.sum(Ht, axis=1, keepdims=True)         # (bb, 1, N)  edges per node
    Dinv = jnp.where(Dsum > 0.0,
                     pl.reciprocal(jnp.maximum(Dsum, 1.0), approx=True), 0.0)
    # TODO(synk): reference has no zero-guard on colsum (inf for empty edges); guarded here.

    # ---- one wide projection: [x@lin_w | x@Ax | x@Ae]  (att folded, omega gone) ----
    xall = jnp.dot(x2, wall_ref[...], preferred_element_type=f32)   # (bb*N, F + 2H)
    xproj3 = xall[:, :F].reshape(bb, N, F)                          # (bb, N, H*D)
    ax_t = jnp.swapaxes(xall[:, F:F + H].reshape(bb, N, H), 1, 2)   # (bb, H, N)
    xae3 = xall[:, F + H:F + 2 * H].reshape(bb, N, H)               # (bb, N, H)

    # ae = Binv * (Ht @ (x @ Ae))  ==  <omega_e W_h, a_e,h>   (exact reassociation)
    ae = Binv * jnp.einsum('ben,bnh->beh', Ht, xae3,
                           preferred_element_type=f32)              # (bb, E, H)
    ae_t = jnp.swapaxes(ae, 1, 2)                                   # (bb, H, E)

    # ---- head-batched logits / masked softmax over incident nodes of each edge ----
    logits = ax_t[:, :, None, :] + ae_t[:, :, :, None]              # (bb, H, E, N)
    logits = jnp.where(logits > 0, logits, LRELU_ATT * logits)
    mask = Ht[:, None, :, :]                                        # (bb, 1, E, N)
    ml = jnp.where(mask > 0.0, logits, f32(-1e30))
    m = jnp.max(ml, axis=-1, keepdims=True)
    p = jnp.exp(ml - m) * mask
    s = jnp.sum(p, axis=-1, keepdims=True)
    alpha4 = p * pl.reciprocal(jnp.where(s > 0.0, s, 1.0), approx=True)   # (bb, H, E, N)
    # TODO(synk): attention dropout omitted (forward reproduced in eval mode).

    # B^-1 / D^-1 folded into the two uses of alpha (broadcast over heads, no concat)
    alpha_b = (alpha4 * Binv[:, None, :, :]).reshape(bb, H * E, N)
    alpha_d = (alpha4 * Dinv[:, None, :, :]).reshape(bb, H * E, N)

    # ---- head-block-diagonal mask built in-kernel (iota + compare ladder, no //) ----
    ri = lax.broadcasted_iota(jnp.int32, (H * E, F), 0)
    ci = lax.broadcasted_iota(jnp.int32, (H * E, F), 1)
    rh = jnp.zeros_like(ri)
    ch = jnp.zeros_like(ci)
    for t in range(1, H):
        rh = rh + (ri >= t * E).astype(jnp.int32)
        ch = ch + (ci >= t * D).astype(jnp.int32)
    blk = (rh == ch).astype(f32)                                    # (H*E, H*D)

    # ---- node -> edge (all heads, one batched matmul), keep head-diagonal blocks ----
    edge_all = jnp.einsum('bkn,bnf->bkf', alpha_b, xproj3,
                          preferred_element_type=f32) * blk         # (bb, H*E, H*D)

    # ---- edge -> node (all heads) ----
    node_all = jnp.einsum('bkn,bkf->bnf', alpha_d, edge_all,
                          preferred_element_type=f32)               # (bb, N, H*D)

    # ---- mean over heads: 3 lane-slice adds (no averaging matmul) + bias ----
    acc = node_all[..., 0:D]
    for h in range(1, H):
        acc = acc + node_all[..., h * D:(h + 1) * D]
    conv = acc.reshape(bb * N, D) * f32(1.0 / H) + bias_ref[...]    # (bb*N, D)

    # ---- residual + LayerNorm 1 ----
    x1 = _layernorm(x2 + conv, ln1g_ref[...], ln1b_ref[...])

    # ---- FFN (two linears folded in wrapper), LeakyReLU at the end ----
    y = jnp.dot(x1, wf_ref[...], preferred_element_type=f32) + bf_ref[...]
    y = jnp.where(y > 0, y, LRELU_FFN * y)

    # ---- residual + LayerNorm 2 ----
    out2 = _layernorm(x1 + y, ln2g_ref[...], ln2b_ref[...])         # (bb*N, D)

    # ---- lane-dense writeback: pack PACK contiguous row-chunks side by side ----
    # out_ref block is (bb*N/PACK, PACK*D) = lane-dense; wrapper un-permutes.
    rq = (bb * N) // PACK
    for k in range(PACK):
        out_ref[:, k * D:(k + 1) * D] = out2[k * rq:(k + 1) * rq, :]
    # TODO(synk): bf16 MXU operands / batch-flattened block-diagonal propagation
    # (further v6e/v7x MXU wins) intentionally skipped to keep f32 numerics exact.


def _pick_block_b(batch):
    """Whole batch per step on single-TC chips; two parallel steps on dual-TC v7x."""
    try:
        kind = jax.devices()[0].device_kind.lower()
    except Exception:
        kind = ""
    if "7" in kind and batch % 4 == 0:
        return batch // 2
    return batch


@functools.partial(jax.jit, static_argnames=("block_b",))
def hypergraph_encoder_layer(x, Hm, params, *, block_b=None):
    """x: (B, N, D) node features; Hm: (B, N, E) dense incidence (1.0 at nonzeros)."""
    B, N, D = x.shape
    E = Hm.shape[-1]
    H = HEADS
    if block_b is None:
        block_b = _pick_block_b(B)
    assert B % block_b == 0
    assert PACK * EMBED == LANES and (block_b * N) % PACK == 0
    rq = (block_b * N) // PACK
    assert rq % 8 == 0, "packed output block needs >=8 sublanes"

    # --- wrapper-side folds (exact algebra, layout plumbing) ---
    lin_w = params["lin_w"]                                   # (D, H*D), (in, out)
    att = params["att"]                                       # (H, 2*D)
    lw3 = lin_w.reshape(D, H, D)
    Ax = jnp.einsum('dhk,hk->dh', lw3, att[:, :D])            # (D, H)
    Ae = jnp.einsum('dhk,hk->dh', lw3, att[:, D:])            # (D, H)
    w_all = jnp.concatenate([lin_w, Ax, Ae], axis=1)          # (D, H*D + 2H)
    wf = params["w1"] @ params["w2"]                          # FFN fold (no act between)
    bf = params["b1"] @ params["w2"] + params["b2"]
    HmT = jnp.swapaxes(Hm, 1, 2)                              # (B, E, N)

    args = (x, HmT, w_all, params["bias"],
            params["ln1_g"], params["ln1_b"], wf, bf,
            params["ln2_g"], params["ln2_b"])

    def _zeros2(i):
        return (0, 0)

    in_specs = [
        pl.BlockSpec((block_b, N, D), lambda i: (i, 0, 0)),
        pl.BlockSpec((block_b, E, N), lambda i: (i, 0, 0)),
    ] + [pl.BlockSpec(a.shape, _zeros2) for a in args[2:]]

    out_packed = pl.pallas_call(
        hyper_encoder_kernel,
        grid=(B // block_b,),
        in_specs=in_specs,
        out_specs=pl.BlockSpec((rq, PACK * D), lambda i: (i, 0)),
        out_shape=jax.ShapeDtypeStruct((B * N // PACK, PACK * D), jnp.float32),
        compiler_params=pltpu.CompilerParams(dimension_semantics=("parallel",)),
    )(*args)

    # un-permute the lane-dense slab back to (B, N, D) (cheap XLA reshapes)
    G = B // block_b
    out = (out_packed.reshape(G, rq, PACK, D)
           .transpose(0, 2, 1, 3)
           .reshape(B, N, D))
    return out


def make_params(key):
    ks = jax.random.split(key, 8)
    f32 = jnp.float32
    return {
        "lin_w": (jax.random.normal(ks[0], (EMBED, HEADS * EMBED)) * 0.1).astype(f32),
        "att": (jax.random.normal(ks[1], (HEADS, 2 * EMBED)) * 0.1).astype(f32),
        "bias": (jax.random.normal(ks[2], (1, EMBED)) * 0.05).astype(f32),
        "ln1_g": jnp.ones((1, EMBED), f32),
        "ln1_b": jnp.zeros((1, EMBED), f32),
        "w1": (jax.random.normal(ks[3], (EMBED, EMBED)) * 0.1).astype(f32),
        "b1": (jax.random.normal(ks[4], (1, EMBED)) * 0.05).astype(f32),
        "w2": (jax.random.normal(ks[5], (EMBED, EMBED)) * 0.1).astype(f32),
        "b2": (jax.random.normal(ks[6], (1, EMBED)) * 0.05).astype(f32),
        "ln2_g": jnp.ones((1, EMBED), f32),
        "ln2_b": jnp.zeros((1, EMBED), f32),
    }


def make_incidence(batch):
    # deterministic per-graph incidence: every node in >=1 edge, every edge non-empty
    n = jnp.arange(N_ITEMS)[None, :, None]
    e = jnp.arange(N_EDGES)[None, None, :]
    b = jnp.arange(batch)[:, None, None]
    inc = ((n % N_EDGES) == e) | (((3 * n + e + b) % 5) == 0)
    return inc.astype(jnp.float32)                                      # (B, N, E)


def _reference_single(xb, Hb, params):
    """Faithful per-graph dense re-implementation of the torch forward (eval)."""
    col = Hb.sum(0)
    omega = (1.0 / col)[:, None] * (Hb.T @ xb)
    xp = xb @ params["lin_w"]
    ep = omega @ params["lin_w"]
    Dn = Hb.sum(1)
    Dinv = jnp.where(Dn > 0, 1.0 / Dn, 0.0)[:, None]
    Be = Hb.sum(0)
    Binv = jnp.where(Be > 0, 1.0 / Be, 0.0)[:, None]
    acc = jnp.zeros_like(xb)
    for h in range(HEADS):
        xh = xp[:, h * EMBED:(h + 1) * EMBED]
        eh = ep[:, h * EMBED:(h + 1) * EMBED]
        axs = xh @ params["att"][h, :EMBED]
        aes = eh @ params["att"][h, EMBED:]
        logit = axs[:, None] + aes[None, :]
        logit = jnp.where(logit > 0, logit, LRELU_ATT * logit)
        ml = jnp.where(Hb > 0, logit, -1e30)
        p = jnp.exp(ml - ml.max(0, keepdims=True)) * Hb
        s = p.sum(0, keepdims=True)
        alpha = p / jnp.where(s > 0, s, 1.0)
        edge = Binv * (alpha.T @ xh)
        acc = acc + Dinv * (alpha @ edge)
    conv = acc / HEADS + params["bias"]
    x1 = _layernorm(xb + conv, params["ln1_g"], params["ln1_b"])
    y = (x1 @ params["w1"] + params["b1"]) @ params["w2"] + params["b2"]
    y = jnp.where(y > 0, y, LRELU_FFN * y)
    return _layernorm(x1 + y, params["ln2_g"], params["ln2_b"])


if __name__ == "__main__":
    key = jax.random.PRNGKey(0)
    kx, kp = jax.random.split(key)
    x = jax.random.normal(kx, (BATCH, N_ITEMS, EMBED), dtype=jnp.float32)
    Hm = make_incidence(BATCH)
    params = make_params(kp)

    out = hypergraph_encoder_layer(x, Hm, params)
    out = jax.block_until_ready(out)

    assert out.shape == (BATCH, N_ITEMS, EMBED)
    assert bool(jnp.all(jnp.isfinite(out)))

    ref = jax.vmap(lambda xb, hb: _reference_single(xb, hb, params))(x, Hm)
    assert bool(jnp.allclose(out, ref, rtol=1e-3, atol=1e-3))
    print("KERNEL_OK")
</pallas_src>

<mosaic_0001>
module attributes {stable_mosaic.version = 11 : i64} {
  func.func @hyper_encoder_kernel(%arg0: i32, %arg1: memref<8x16x32xf32, #tpu.memory_space<vmem>>, %arg2: memref<8x8x16xf32, #tpu.memory_space<vmem>>, %arg3: memref<32x136xf32, #tpu.memory_space<vmem>>, %arg4: memref<1x32xf32, #tpu.memory_space<vmem>>, %arg5: memref<1x32xf32, #tpu.memory_space<vmem>>, %arg6: memref<1x32xf32, #tpu.memory_space<vmem>>, %arg7: memref<32x32xf32, #tpu.memory_space<vmem>>, %arg8: memref<1x32xf32, #tpu.memory_space<vmem>>, %arg9: memref<1x32xf32, #tpu.memory_space<vmem>>, %arg10: memref<1x32xf32, #tpu.memory_space<vmem>>, %arg11: memref<32x128xf32, #tpu.memory_space<vmem>>) attributes {dimension_semantics = [#tpu.dimension_semantics<parallel>], iteration_bounds = array<i64: 1>, scalar_prefetch = 0 : i64, scratch_operands = 0 : i64, tpu.core_type = #tpu.core_type<tc>, window_params = [{transform_indices = @transform_0, window_bounds = array<i64: 8, 16, 32>}, {transform_indices = @transform_1, window_bounds = array<i64: 8, 8, 16>}, {pipeline_mode = #tpu.pipeline_mode<synchronous>, transform_indices = @transform_2, window_bounds = array<i64: 32, 136>}, {pipeline_mode = #tpu.pipeline_mode<synchronous>, transform_indices = @transform_3, window_bounds = array<i64: 1, 32>}, {pipeline_mode = #tpu.pipeline_mode<synchronous>, transform_indices = @transform_4, window_bounds = array<i64: 1, 32>}, {pipeline_mode = #tpu.pipeline_mode<synchronous>, transform_indices = @transform_5, window_bounds = array<i64: 1, 32>}, {pipeline_mode = #tpu.pipeline_mode<synchronous>, transform_indices = @transform_6, window_bounds = array<i64: 32, 32>}, {pipeline_mode = #tpu.pipeline_mode<synchronous>, transform_indices = @transform_7, window_bounds = array<i64: 1, 32>}, {pipeline_mode = #tpu.pipeline_mode<synchronous>, transform_indices = @transform_8, window_bounds = array<i64: 1, 32>}, {pipeline_mode = #tpu.pipeline_mode<synchronous>, transform_indices = @transform_9, window_bounds = array<i64: 1, 32>}, {transform_indices = @transform_10, window_bounds = array<i64: 32, 128>}]} {
    %c0 = arith.constant 0 : index
    %c0_0 = arith.constant 0 : index
    %c0_1 = arith.constant 0 : index
    %0 = vector.load %arg1[%c0, %c0_0, %c0_1] : memref<8x16x32xf32, #tpu.memory_space<vmem>>, vector<8x16x32xf32>
    %c0_2 = arith.constant 0 : index
    %c0_3 = arith.constant 0 : index
    %c0_4 = arith.constant 0 : index
    %1 = vector.load %arg2[%c0_2, %c0_3, %c0_4] : memref<8x8x16xf32, #tpu.memory_space<vmem>>, vector<8x8x16xf32>
    %2 = vector.shape_cast %0 : vector<8x16x32xf32> to vector<128x32xf32>
    %cst = arith.constant dense<0.000000e+00> : vector<8x8xf32>
    %3 = vector.multi_reduction <add>, %1, %cst [2] : vector<8x8x16xf32> to vector<8x8xf32>
    %4 = vector.shape_cast %3 : vector<8x8xf32> to vector<8x8x1xf32>
    %cst_5 = arith.constant 0.000000e+00 : f32
    %5 = vector.broadcast %cst_5 : f32 to vector<8x8x1xf32>
    %6 = arith.cmpf ogt, %4, %5 : vector<8x8x1xf32>
    %cst_6 = arith.constant 1.000000e+00 : f32
    %7 = vector.broadcast %cst_6 : f32 to vector<8x8x1xf32>
    %8 = arith.maximumf %4, %7 : vector<8x8x1xf32>
    %9 = tpu.reciprocal %8 {approx = true} : vector<8x8x1xf32> -> vector<8x8x1xf32>
    %cst_7 = arith.constant 0.000000e+00 : f32
    %10 = vector.broadcast %cst_7 : f32 to vector<8x8x1xf32>
    %11 = arith.select %6, %9, %10 : vector<8x8x1xi1>, vector<8x8x1xf32>
    %cst_8 = arith.constant dense<0.000000e+00> : vector<8x16xf32>
    %12 = vector.multi_reduction <add>, %1, %cst_8 [1] : vector<8x8x16xf32> to vector<8x16xf32>
    %13 = vector.shape_cast %12 : vector<8x16xf32> to vector<8x1x16xf32>
    %cst_9 = arith.constant 0.000000e+00 : f32
    %14 = vector.broadcast %cst_9 : f32 to vector<8x1x16xf32>
    %15 = arith.cmpf ogt, %13, %14 : vector<8x1x16xf32>
    %cst_10 = arith.constant 1.000000e+00 : f32
    %16 = vector.broadcast %cst_10 : f32 to vector<8x1x16xf32>
    %17 = arith.maximumf %13, %16 : vector<8x1x16xf32>
    %18 = tpu.reciprocal %17 {approx = true} : vector<8x1x16xf32> -> vector<8x1x16xf32>
    %cst_11 = arith.constant 0.000000e+00 : f32
    %19 = vector.broadcast %cst_11 : f32 to vector<8x1x16xf32>
    %20 = arith.select %15, %18, %19 : vector<8x1x16xi1>, vector<8x1x16xf32>
    %c0_12 = arith.constant 0 : index
    %c0_13 = arith.constant 0 : index
    %21 = vector.load %arg3[%c0_12, %c0_13] : memref<32x136xf32, #tpu.memory_space<vmem>>, vector<32x136xf32>
    %cst_14 = arith.constant dense<0.000000e+00> : vector<128x136xf32>
    %22 = tpu.matmul %2, %21, %cst_14 {dimension_numbers = #tpu.dot_dimension_numbers<[1], [0], [0], [1], [0, 0, 1, 1], [], []>} : vector<128x32xf32>, vector<32x136xf32>, vector<128x136xf32> -> vector<128x136xf32>
    %23 = vector.extract_strided_slice %22 {offsets = [0, 0], sizes = [128, 128], strides = [1, 1]} : vector<128x136xf32> to vector<128x128xf32>
    %24 = vector.shape_cast %23 : vector<128x128xf32> to vector<8x16x128xf32>
    %25 = vector.extract_strided_slice %22 {offsets = [0, 128], sizes = [128, 4], strides = [1, 1]} : vector<128x136xf32> to vector<128x4xf32>
    %26 = vector.shape_cast %25 : vector<128x4xf32> to vector<8x16x4xf32>
    %27 = tpu.transpose %26, [0, 2, 1] : vector<8x16x4xf32> -> vector<8x4x16xf32>
    %28 = vector.extract_strided_slice %22 {offsets = [0, 132], sizes = [128, 4], strides = [1, 1]} : vector<128x136xf32> to vector<128x4xf32>
    %29 = vector.shape_cast %28 : vector<128x4xf32> to vector<8x16x4xf32>
    "tpu.trace_start"() <{level = 10 : i32, message = "ben,bnh->beh"}> : () -> ()
    %cst_15 = arith.constant dense<0.000000e+00> : vector<8x8x4xf32>
    %30 = tpu.matmul %1, %29, %cst_15 {dimension_numbers = #tpu.dot_dimension_numbers<[2], [1], [1], [2], [0, 0, 0, 1, 1, 2], [0], [0]>} : vector<8x8x16xf32>, vector<8x16x4xf32>, vector<8x8x4xf32> -> vector<8x8x4xf32>
    "tpu.trace_stop"() : () -> ()
    %31 = vector.broadcast %11 : vector<8x8x1xf32> to vector<8x8x4xf32>
    %32 = arith.mulf %31, %30 : vector<8x8x4xf32>
    %33 = tpu.transpose %32, [0, 2, 1] : vector<8x8x4xf32> -> vector<8x4x8xf32>
    %34 = vector.shape_cast %27 : vector<8x4x16xf32> to vector<8x4x1x16xf32>
    %35 = vector.shape_cast %33 : vector<8x4x8xf32> to vector<8x4x8x1xf32>
    %36 = vector.broadcast %34 : vector<8x4x1x16xf32> to vector<8x4x8x16xf32>
    %37 = vector.broadcast %35 : vector<8x4x8x1xf32> to vector<8x4x8x16xf32>
    %38 = arith.addf %36, %37 : vector<8x4x8x16xf32>
    %cst_16 = arith.constant 0.000000e+00 : f32
    %39 = vector.broadcast %cst_16 : f32 to vector<8x4x8x16xf32>
    %40 = arith.cmpf ogt, %38, %39 : vector<8x4x8x16xf32>
    %cst_17 = arith.constant 2.000000e-01 : f32
    %41 = vector.broadcast %cst_17 : f32 to vector<8x4x8x16xf32>
    %42 = arith.mulf %41, %38 : vector<8x4x8x16xf32>
    %43 = arith.select %40, %38, %42 : vector<8x4x8x16xi1>, vector<8x4x8x16xf32>
    %44 = vector.shape_cast %1 : vector<8x8x16xf32> to vector<8x1x8x16xf32>
    %cst_18 = arith.constant 0.000000e+00 : f32
    %45 = vector.broadcast %cst_18 : f32 to vector<8x1x8x16xf32>
    %46 = arith.cmpf ogt, %44, %45 : vector<8x1x8x16xf32>
    %cst_19 = arith.constant -1.000000e+30 : f32
    %47 = vector.shape_cast %46 : vector<8x1x8x16xi1> to vector<8x1x8x16xi1>
    %48 = vector.broadcast %47 : vector<8x1x8x16xi1> to vector<8x4x8x16xi1>
    %49 = vector.broadcast %cst_19 : f32 to vector<8x4x8x16xf32>
    %50 = arith.select %48, %43, %49 : vector<8x4x8x16xi1>, vector<8x4x8x16xf32>
    %cst_20 = arith.constant dense<0xFF800000> : vector<8x4x8xf32>
    %51 = vector.multi_reduction <maximumf>, %50, %cst_20 [3] : vector<8x4x8x16xf32> to vector<8x4x8xf32>
    %52 = vector.shape_cast %51 : vector<8x4x8xf32> to vector<8x4x8x1xf32>
    %53 = vector.broadcast %52 : vector<8x4x8x1xf32> to vector<8x4x8x16xf32>
    %54 = arith.subf %50, %53 : vector<8x4x8x16xf32>
    %55 = math.exp %54 : vector<8x4x8x16xf32>
    %56 = vector.broadcast %44 : vector<8x1x8x16xf32> to vector<8x4x8x16xf32>
    %57 = arith.mulf %55, %56 : vector<8x4x8x16xf32>
    %cst_21 = arith.constant dense<0.000000e+00> : vector<8x4x8xf32>
    %58 = vector.multi_reduction <add>, %57, %cst_21 [3] : vector<8x4x8x16xf32> to vector<8x4x8xf32>
    %59 = vector.shape_cast %58 : vector<8x4x8xf32> to vector<8x4x8x1xf32>
    %cst_22 = arith.constant 0.000000e+00 : f32
    %60 = vector.broadcast %cst_22 : f32 to vector<8x4x8x1xf32>
    %61 = arith.cmpf ogt, %59, %60 : vector<8x4x8x1xf32>
    %cst_23 = arith.constant 1.000000e+00 : f32
    %62 = vector.broadcast %cst_23 : f32 to vector<8x4x8x1xf32>
    %63 = arith.select %61, %59, %62 : vector<8x4x8x1xi1>, vector<8x4x8x1xf32>
    %64 = tpu.reciprocal %63 {approx = true} : vector<8x4x8x1xf32> -> vector<8x4x8x1xf32>
    %65 = vector.broadcast %64 : vector<8x4x8x1xf32> to vector<8x4x8x16xf32>
    %66 = arith.mulf %57, %65 : vector<8x4x8x16xf32>
    %67 = vector.shape_cast %11 : vector<8x8x1xf32> to vector<8x1x8x1xf32>
    %68 = vector.broadcast %67 : vector<8x1x8x1xf32> to vector<8x4x8x16xf32>
    %69 = arith.mulf %66, %68 : vector<8x4x8x16xf32>
    %70 = vector.shape_cast %69 : vector<8x4x8x16xf32> to vector<8x32x16xf32>
    %71 = vector.shape_cast %20 : vector<8x1x16xf32> to vector<8x1x1x16xf32>
    %72 = vector.broadcast %71 : vector<8x1x1x16xf32> to vector<8x4x8x16xf32>
    %73 = arith.mulf %66, %72 : vector<8x4x8x16xf32>
    %74 = vector.shape_cast %73 : vector<8x4x8x16xf32> to vector<8x32x16xf32>
    %75 = tpu.iota {dimensions = array<i32: 0>} : vector<32x128xi32>
    %76 = tpu.iota {dimensions = array<i32: 1>} : vector<32x128xi32>
    %c0_i32 = arith.constant 0 : i32
    %77 = vector.broadcast %c0_i32 : i32 to vector<32x128xi32>
    %c0_i32_24 = arith.constant 0 : i32
    %78 = vector.broadcast %c0_i32_24 : i32 to vector<32x128xi32>
    %c8_i32 = arith.constant 8 : i32
    %79 = vector.broadcast %c8_i32 : i32 to vector<32x128xi32>
    %80 = arith.cmpi sge, %75, %79 : vector<32x128xi32>
    %81 = arith.extui %80 : vector<32x128xi1> to vector<32x128xi32>
    %82 = arith.addi %77, %81 : vector<32x128xi32>
    %c32_i32 = arith.constant 32 : i32
    %83 = vector.broadcast %c32_i32 : i32 to vector<32x128xi32>
    %84 = arith.cmpi sge, %76, %83 : vector<32x128xi32>
    %85 = arith.extui %84 : vector<32x128xi1> to vector<32x128xi32>
    %86 = arith.addi %78, %85 : vector<32x128xi32>
    %c16_i32 = arith.constant 16 : i32
    %87 = vector.broadcast %c16_i32 : i32 to vector<32x128xi32>
    %88 = arith.cmpi sge, %75, %87 : vector<32x128xi32>
    %89 = arith.extui %88 : vector<32x128xi1> to vector<32x128xi32>
    %90 = arith.addi %82, %89 : vector<32x128xi32>
    %c64_i32 = arith.constant 64 : i32
    %91 = vector.broadcast %c64_i32 : i32 to vector<32x128xi32>
    %92 = arith.cmpi sge, %76, %91 : vector<32x128xi32>
    %93 = arith.extui %92 : vector<32x128xi1> to vector<32x128xi32>
    %94 = arith.addi %86, %93 : vector<32x128xi32>
    %c24_i32 = arith.constant 24 : i32
    %95 = vector.broadcast %c24_i32 : i32 to vector<32x128xi32>
    %96 = arith.cmpi sge, %75, %95 : vector<32x128xi32>
    %97 = arith.extui %96 : vector<32x128xi1> to vector<32x128xi32>
    %98 = arith.addi %90, %97 : vector<32x128xi32>
    %c96_i32 = arith.constant 96 : i32
    %99 = vector.broadcast %c96_i32 : i32 to vector<32x128xi32>
    %100 = arith.cmpi sge, %76, %99 : vector<32x128xi32>
    %101 = arith.extui %100 : vector<32x128xi1> to vector<32x128xi32>
    %102 = arith.addi %94, %101 : vector<32x128xi32>
    %103 = arith.cmpi eq, %98, %102 : vector<32x128xi32>
    %104 = arith.extui %103 : vector<32x128xi1> to vector<32x128xi32>
    %105 = arith.sitofp %104 : vector<32x128xi32> to vector<32x128xf32>
    "tpu.trace_start"() <{level = 10 : i32, message = "bkn,bnf->bkf"}> : () -> ()
    %cst_25 = arith.constant dense<0.000000e+00> : vector<8x32x128xf32>
    %106 = tpu.matmul %70, %24, %cst_25 {dimension_numbers = #tpu.dot_dimension_numbers<[2], [1], [1], [2], [0, 0, 0, 1, 1, 2], [0], [0]>} : vector<8x32x16xf32>, vector<8x16x128xf32>, vector<8x32x128xf32> -> vector<8x32x128xf32>
    "tpu.trace_stop"() : () -> ()
    %107 = vector.shape_cast %105 : vector<32x128xf32> to vector<1x32x128xf32>
    %108 = vector.broadcast %107 : vector<1x32x128xf32> to vector<8x32x128xf32>
    %109 = arith.mulf %106, %108 : vector<8x32x128xf32>
    "tpu.trace_start"() <{level = 10 : i32, message = "bkn,bkf->bnf"}> : () -> ()
    %cst_26 = arith.constant dense<0.000000e+00> : vector<8x16x128xf32>
    %110 = tpu.matmul %74, %109, %cst_26 {dimension_numbers = #tpu.dot_dimension_numbers<[1], [1], [2], [2], [0, 0, 0, 2, 1, 2], [0], [0]>} : vector<8x32x16xf32>, vector<8x32x128xf32>, vector<8x16x128xf32> -> vector<8x16x128xf32>
    "tpu.trace_stop"() : () -> ()
    %111 = vector.extract_strided_slice %110 {offsets = [0, 0, 0], sizes = [8, 16, 32], strides = [1, 1, 1]} : vector<8x16x128xf32> to vector<8x16x32xf32>
    %112 = vector.extract_strided_slice %110 {offsets = [0, 0, 32], sizes = [8, 16, 32], strides = [1, 1, 1]} : vector<8x16x128xf32> to vector<8x16x32xf32>
    %113 = arith.addf %111, %112 : vector<8x16x32xf32>
    %114 = vector.extract_strided_slice %110 {offsets = [0, 0, 64], sizes = [8, 16, 32], strides = [1, 1, 1]} : vector<8x16x128xf32> to vector<8x16x32xf32>
    %115 = arith.addf %113, %114 : vector<8x16x32xf32>
    %116 = vector.extract_strided_slice %110 {offsets = [0, 0, 96], sizes = [8, 16, 32], strides = [1, 1, 1]} : vector<8x16x128xf32> to vector<8x16x32xf32>
    %117 = arith.addf %115, %116 : vector<8x16x32xf32>
    %118 = vector.shape_cast %117 : vector<8x16x32xf32> to vector<128x32xf32>
    %cst_27 = arith.constant 2.500000e-01 : f32
    %119 = vector.broadcast %cst_27 : f32 to vector<128x32xf32>
    %120 = arith.mulf %118, %119 : vector<128x32xf32>
    %c0_28 = arith.constant 0 : index
    %c0_29 = arith.constant 0 : index
    %121 = vector.load %arg4[%c0_28, %c0_29] : memref<1x32xf32, #tpu.memory_space<vmem>>, vector<1x32xf32>
    %122 = vector.broadcast %121 : vector<1x32xf32> to vector<128x32xf32>
    %123 = arith.addf %120, %122 : vector<128x32xf32>
    %124 = arith.addf %2, %123 : vector<128x32xf32>
    %c0_30 = arith.constant 0 : index
    %c0_31 = arith.constant 0 : index
    %125 = vector.load %arg5[%c0_30, %c0_31] : memref<1x32xf32, #tpu.memory_space<vmem>>, vector<1x32xf32>
    %c0_32 = arith.constant 0 : index
    %c0_33 = arith.constant 0 : index
    %126 = vector.load %arg6[%c0_32, %c0_33] : memref<1x32xf32, #tpu.memory_space<vmem>>, vector<1x32xf32>
    %cst_34 = arith.constant dense<0.000000e+00> : vector<128xf32>
    %127 = vector.multi_reduction <add>, %124, %cst_34 [1] : vector<128x32xf32> to vector<128xf32>
    %128 = vector.shape_cast %127 : vector<128xf32> to vector<128x1xf32>
    %cst_35 = arith.constant 3.200000e+01 : f32
    %129 = vector.broadcast %cst_35 : f32 to vector<128x1xf32>
    %130 = arith.divf %128, %129 : vector<128x1xf32>
    %131 = vector.broadcast %130 : vector<128x1xf32> to vector<128x32xf32>
    %132 = arith.subf %124, %131 : vector<128x32xf32>
    %133 = arith.mulf %132, %132 : vector<128x32xf32>
    %cst_36 = arith.constant dense<0.000000e+00> : vector<128xf32>
    %134 = vector.multi_reduction <add>, %133, %cst_36 [1] : vector<128x32xf32> to vector<128xf32>
    %135 = vector.shape_cast %134 : vector<128xf32> to vector<128x1xf32>
    %cst_37 = arith.constant 3.200000e+01 : f32
    %136 = vector.broadcast %cst_37 : f32 to vector<128x1xf32>
    %137 = arith.divf %135, %136 : vector<128x1xf32>
    %138 = vector.broadcast %130 : vector<128x1xf32> to vector<128x32xf32>
    %139 = arith.subf %124, %138 : vector<128x32xf32>
    %cst_38 = arith.constant 9.99999974E-6 : f32
    %140 = vector.broadcast %cst_38 : f32 to vector<128x1xf32>
    %141 = arith.addf %137, %140 : vector<128x1xf32>
    %142 = math.rsqrt %141 : vector<128x1xf32>
    %143 = vector.broadcast %142 : vector<128x1xf32> to vector<128x32xf32>
    %144 = arith.mulf %139, %143 : vector<128x32xf32>
    %145 = vector.broadcast %125 : vector<1x32xf32> to vector<128x32xf32>
    %146 = arith.mulf %144, %145 : vector<128x32xf32>
    %147 = vector.broadcast %126 : vector<1x32xf32> to vector<128x32xf32>
    %148 = arith.addf %146, %147 : vector<128x32xf32>
    %c0_39 = arith.constant 0 : index
    %c0_40 = arith.constant 0 : index
    %149 = vector.load %arg7[%c0_39, %c0_40] : memref<32x32xf32, #tpu.memory_space<vmem>>, vector<32x32xf32>
    %cst_41 = arith.constant dense<0.000000e+00> : vector<128x32xf32>
    %150 = tpu.matmul %148, %149, %cst_41 {dimension_numbers = #tpu.dot_dimension_numbers<[1], [0], [0], [1], [0, 0, 1, 1], [], []>} : vector<128x32xf32>, vector<32x32xf32>, vector<128x32xf32> -> vector<128x32xf32>
    %c0_42 = arith.constant 0 : index
    %c0_43 = arith.constant 0 : index
    %151 = vector.load %arg8[%c0_42, %c0_43] : memref<1x32xf32, #tpu.memory_space<vmem>>, vector<1x32xf32>
    %152 = vector.broadcast %151 : vector<1x32xf32> to vector<128x32xf32>
    %153 = arith.addf %150, %152 : vector<128x32xf32>
    %cst_44 = arith.constant 0.000000e+00 : f32
    %154 = vector.broadcast %cst_44 : f32 to vector<128x32xf32>
    %155 = arith.cmpf ogt, %153, %154 : vector<128x32xf32>
    %cst_45 = arith.constant 0.00999999977 : f32
    %156 = vector.broadcast %cst_45 : f32 to vector<128x32xf32>
    %157 = arith.mulf %156, %153 : vector<128x32xf32>
    %158 = arith.select %155, %153, %157 : vector<128x32xi1>, vector<128x32xf32>
    %159 = arith.addf %148, %158 : vector<128x32xf32>
    %c0_46 = arith.constant 0 : index
    %c0_47 = arith.constant 0 : index
    %160 = vector.load %arg9[%c0_46, %c0_47] : memref<1x32xf32, #tpu.memory_space<vmem>>, vector<1x32xf32>
    %c0_48 = arith.constant 0 : index
    %c0_49 = arith.constant 0 : index
    %161 = vector.load %arg10[%c0_48, %c0_49] : memref<1x32xf32, #tpu.memory_space<vmem>>, vector<1x32xf32>
    %cst_50 = arith.constant dense<0.000000e+00> : vector<128xf32>
    %162 = vector.multi_reduction <add>, %159, %cst_50 [1] : vector<128x32xf32> to vector<128xf32>
    %163 = vector.shape_cast %162 : vector<128xf32> to vector<128x1xf32>
    %cst_51 = arith.constant 3.200000e+01 : f32
    %164 = vector.broadcast %cst_51 : f32 to vector<128x1xf32>
    %165 = arith.divf %163, %164 : vector<128x1xf32>
    %166 = vector.broadcast %165 : vector<128x1xf32> to vector<128x32xf32>
    %167 = arith.subf %159, %166 : vector<128x32xf32>
    %168 = arith.mulf %167, %167 : vector<128x32xf32>
    %cst_52 = arith.constant dense<0.000000e+00> : vector<128xf32>
    %169 = vector.multi_reduction <add>, %168, %cst_52 [1] : vector<128x32xf32> to vector<128xf32>
    %170 = vector.shape_cast %169 : vector<128xf32> to vector<128x1xf32>
    %cst_53 = arith.constant 3.200000e+01 : f32
    %171 = vector.broadcast %cst_53 : f32 to vector<128x1xf32>
    %172 = arith.divf %170, %171 : vector<128x1xf32>
    %173 = vector.broadcast %165 : vector<128x1xf32> to vector<128x32xf32>
    %174 = arith.subf %159, %173 : vector<128x32xf32>
    %cst_54 = arith.constant 9.99999974E-6 : f32
    %175 = vector.broadcast %cst_54 : f32 to vector<128x1xf32>
    %176 = arith.addf %172, %175 : vector<128x1xf32>
    %177 = math.rsqrt %176 : vector<128x1xf32>
    %178 = vector.broadcast %177 : vector<128x1xf32> to vector<128x32xf32>
    %179 = arith.mulf %174, %178 : vector<128x32xf32>
    %180 = vector.broadcast %160 : vector<1x32xf32> to vector<128x32xf32>
    %181 = arith.mulf %179, %180 : vector<128x32xf32>
    %182 = vector.broadcast %161 : vector<1x32xf32> to vector<128x32xf32>
    %183 = arith.addf %181, %182 : vector<128x32xf32>
    %184 = vector.extract_strided_slice %183 {offsets = [0, 0], sizes = [32, 32], strides = [1, 1]} : vector<128x32xf32> to vector<32x32xf32>
    %c0_55 = arith.constant 0 : index
    %c0_56 = arith.constant 0 : index
    %185 = vector.load %arg11[%c0_55, %c0_56] : memref<32x128xf32, #tpu.memory_space<vmem>>, vector<32x32xf32>
    tpu.vector_store %arg11[%c0_55, %c0_56], %184 {strides = array<i32>} : memref<32x128xf32, #tpu.memory_space<vmem>>, vector<32x32xf32>,
    %186 = vector.extract_strided_slice %183 {offsets = [32, 0], sizes = [32, 32], strides = [1, 1]} : vector<128x32xf32> to vector<32x32xf32>
    %c0_57 = arith.constant 0 : index
    %c32 = arith.constant 32 : index
    %187 = vector.load %arg11[%c0_57, %c32] : memref<32x128xf32, #tpu.memory_space<vmem>>, vector<32x32xf32>
    tpu.vector_store %arg11[%c0_57, %c32], %186 {strides = array<i32>} : memref<32x128xf32, #tpu.memory_space<vmem>>, vector<32x32xf32>,
    %188 = vector.extract_strided_slice %183 {offsets = [64, 0], sizes = [32, 32], strides = [1, 1]} : vector<128x32xf32> to vector<32x32xf32>
    %c0_58 = arith.constant 0 : index
    %c64 = arith.constant 64 : index
    %189 = vector.load %arg11[%c0_58, %c64] : memref<32x128xf32, #tpu.memory_space<vmem>>, vector<32x32xf32>
    tpu.vector_store %arg11[%c0_58, %c64], %188 {strides = array<i32>} : memref<32x128xf32, #tpu.memory_space<vmem>>, vector<32x32xf32>,
    %190 = vector.extract_strided_slice %183 {offsets = [96, 0], sizes = [32, 32], strides = [1, 1]} : vector<128x32xf32> to vector<32x32xf32>
    %c0_59 = arith.constant 0 : index
    %c96 = arith.constant 96 : index
    %191 = vector.load %arg11[%c0_59, %c96] : memref<32x128xf32, #tpu.memory_space<vmem>>, vector<32x32xf32>
    tpu.vector_store %arg11[%c0_59, %c96], %190 {strides = array<i32>} : memref<32x128xf32, #tpu.memory_space<vmem>>, vector<32x32xf32>,
    return
  }
  func.func @transform_0(%arg0: i32) -> (i32, i32, i32) {
    %c0_i32 = arith.constant 0 : i32
    %c0_i32_0 = arith.constant 0 : i32
    %c0_i32_1 = arith.constant 0 : i32
    return %arg0, %c0_i32, %c0_i32_0 : i32, i32, i32
  }
  func.func @transform_1(%arg0: i32) -> (i32, i32, i32) {
    %c0_i32 = arith.constant 0 : i32
    %c0_i32_0 = arith.constant 0 : i32
    %c0_i32_1 = arith.constant 0 : i32
    return %arg0, %c0_i32, %c0_i32_0 : i32, i32, i32
  }
  func.func @transform_2(%arg0: i32) -> (i32, i32) {
    %c0_i32 = arith.constant 0 : i32
    %c0_i32_0 = arith.constant 0 : i32
    %c0_i32_1 = arith.constant 0 : i32
    return %c0_i32, %c0_i32_0 : i32, i32
  }
  func.func @transform_3(%arg0: i32) -> (i32, i32) {
    %c0_i32 = arith.constant 0 : i32
    %c0_i32_0 = arith.constant 0 : i32
    %c0_i32_1 = arith.constant 0 : i32
    return %c0_i32, %c0_i32_0 : i32, i32
  }
  func.func @transform_4(%arg0: i32) -> (i32, i32) {
    %c0_i32 = arith.constant 0 : i32
    %c0_i32_0 = arith.constant 0 : i32
    %c0_i32_1 = arith.constant 0 : i32
    return %c0_i32, %c0_i32_0 : i32, i32
  }
  func.func @transform_5(%arg0: i32) -> (i32, i32) {
    %c0_i32 = arith.constant 0 : i32
    %c0_i32_0 = arith.constant 0 : i32
    %c0_i32_1 = arith.constant 0 : i32
    return %c0_i32, %c0_i32_0 : i32, i32
  }
  func.func @transform_6(%arg0: i32) -> (i32, i32) {
    %c0_i32 = arith.constant 0 : i32
    %c0_i32_0 = arith.constant 0 : i32
    %c0_i32_1 = arith.constant 0 : i32
    return %c0_i32, %c0_i32_0 : i32, i32
  }
  func.func @transform_7(%arg0: i32) -> (i32, i32) {
    %c0_i32 = arith.constant 0 : i32
    %c0_i32_0 = arith.constant 0 : i32
    %c0_i32_1 = arith.constant 0 : i32
    return %c0_i32, %c0_i32_0 : i32, i32
  }
  func.func @transform_8(%arg0: i32) -> (i32, i32) {
    %c0_i32 = arith.constant 0 : i32
    %c0_i32_0 = arith.constant 0 : i32
    %c0_i32_1 = arith.constant 0 : i32
    return %c0_i32, %c0_i32_0 : i32, i32
  }
  func.func @transform_9(%arg0: i32) -> (i32, i32) {
    %c0_i32 = arith.constant 0 : i32
    %c0_i32_0 = arith.constant 0 : i32
    %c0_i32_1 = arith.constant 0 : i32
    return %c0_i32, %c0_i32_0 : i32, i32
  }
  func.func @transform_10(%arg0: i32) -> (i32, i32) {
    %c0_i32 = arith.constant 0 : i32
    %c0_i32_0 = arith.constant 0 : i32
    return %arg0, %c0_i32 : i32, i32
  }
}

</mosaic_0001>

<bundles_post_ra>
// kernel: hypergraph_encoder_layer.1
= control target key start
LH: loop header
LB: loop body
LE: loop exit
PB: predicated region body
PF: predicated region fallthrough
CT: control target
= control target key end

     0   :  { %v8752_v3 = vmov 0.0   ;;  %vm204_vm0 = vcmask 261120   ;;  %v6680_v29 = vmov 0.0|0.0   ;;  %vm6681_vm1 = vmmov 0   ;;  %s6682_s19 = smov 124   ;;  %s6686_s11 = smov 96   ;;  %s8741_s2 = inlined_call_operand.vmem [shape: f32[32,136], index: 2, kind: input, shape index: {}]   ;;  %s8742_s0 = inlined_call_operand.vmem [shape: f32[8,16,32], index: 0, kind: input, shape index: {}]   ;;  %s8743_s1 = inlined_call_operand.vmem [shape: f32[8,8,16], index: 1, kind: input, shape index: {}]   ;;  %s8744_s3 = inlined_call_operand.vmem [shape: f32[1,32], index: 3, kind: input, shape index: {}]   ;;  %s8745_s6 = inlined_call_operand.vmem [shape: f32[32,32], index: 6, kind: input, shape index: {}]   ;;  %s8746_s4 = inlined_call_operand.vmem [shape: f32[1,32], index: 4, kind: input, shape index: {}]   ;;  %s8747_s5 = inlined_call_operand.vmem [shape: f32[1,32], index: 5, kind: input, shape index: {}]   ;;  %s8748_s7 = inlined_call_operand.vmem [shape: f32[1,32], index: 7, kind: input, shape index: {}]   ;;  %s8749_s8 = inlined_call_operand.vmem [shape: f32[1,32], index: 8, kind: input, shape index: {}]   ;;  %s8750_s9 = inlined_call_operand.vmem [shape: f32[1,32], index: 9, kind: input, shape index: {}]   ;;  %s8751_s10 = inlined_call_operand.vmem [shape: f32[32,128], index: 10, kind: output, shape index: {}]  }
   0x1   :  { %v197_v0 = vld [vmem:[%s8741_s2 + $0x8] sm:$0xff]  ;;  %v199_v1 = vld [vmem:[%s8741_s2 + $0x18] sm:$0xff]  ;;  %v196_v2 = vld [vmem:[%s8741_s2] sm:$0xff]  ;;  %317 = vmatprep.mubr.f32.mxu0 %v8752_v3  ;;  %6250 = vmatprep.subr.bf16.mxu1 %v6680_v29  ;;  %vm59_vm2 = vcmask 130048   ;;  %s6687_s12 = smov 64  }
   0x2   :  { %v6242_v4 = vpack.c.bf16 %v199_v1, %v197_v0  ;;  %v198_v5 = vld [vmem:[%s8741_s2 + $0x10] sm:$0xff]  ;;  %v201_v6 = vld [vmem:[%s8741_s2 + $0x28] sm:$0xff]  ;;  %v203_v7 = vld [vmem:[%s8741_s2 + $0x38] sm:$0xff]  ;;  %5990 = vmatprep.mubr.msk.f32.mxu1 %vm6681_vm1, %v8752_v3 }
   0x3   :  { %v6244_v8 = vpack.c.bf16 %v198_v5, %v196_v2  ;;  %v6246_v9 = vpack.c.bf16 %v203_v7, %v201_v6  ;;  %v200_v10 = vld [vmem:[%s8741_s2 + $0x20] sm:$0xff]  ;;  %v202_v11 = vld [vmem:[%s8741_s2 + $0x30] sm:$0xff]  ;;  %v36_v14 = vld [vmem:[%s8742_s0 + $0x8] sm:$0xff] }
   0x4   :  { %6243 = vmatprep.subr.bf16.mxu0 %v6242_v4  ;;  %v6248_v12 = vpack.c.bf16 %v202_v11, %v200_v10  ;;  %v35_v13 = vld [vmem:[%s8742_s0] sm:$0xff]  ;;  %v37_v15 = vld [vmem:[%s8742_s0 + $0x10] sm:$0xff]  ;;  %v38_v16 = vld [vmem:[%s8742_s0 + $0x18] sm:$0xff] }
   0x5   :  { %6245 = vmatpush1.bf16.msra.mxu0 %v6244_v8  ;;  %v39_v17 = vld [vmem:[%s8742_s0 + $0x20] sm:$0xff]  ;;  %v40_v18 = vld [vmem:[%s8742_s0 + $0x28] sm:$0xff]  ;;  %v41_v19 = vld [vmem:[%s8742_s0 + $0x30] sm:$0xff] }
   0x6   :  { %6247 = vmatprep.subr.bf16.mxu0 %v6246_v9  ;;  %v42_v20 = vld [vmem:[%s8742_s0 + $0x38] sm:$0xff]  ;;  %v43_v21 = vld [vmem:[%s8742_s0 + $0x40] sm:$0xff]  ;;  %v44_v22 = vld [vmem:[%s8742_s0 + $0x48] sm:$0xff] }
   0x7   :  { %v45_v23 = vld [vmem:[%s8742_s0 + $0x50] sm:$0xff]  ;;  %v46_v24 = vld [vmem:[%s8742_s0 + $0x58] sm:$0xff]  ;;  %v47_v25 = vld [vmem:[%s8742_s0 + $0x60] sm:$0xff] }
   0x8   :  { %v48_v26 = vld [vmem:[%s8742_s0 + $0x68] sm:$0xff]  ;;  %v49_v27 = vld [vmem:[%s8742_s0 + $0x70] sm:$0xff]  ;;  %v50_v28 = vld [vmem:[%s8742_s0 + $0x78] sm:$0xff] }
   0x9   :  { %6249 = vmatpush1.bf16.msra.mxu0 %v6248_v12 }
   0xc   :  { %5744 = vmatmul.mubr.msk.f32.vlgmr.msra.gmra.mrb[0].mxu0 %vm204_vm0, %v35_v13 }
   0xd   :  { %323 = vmatprep.mubr.f32.mxu0 %v8752_v3 }
  0x10   :  { %5745 = vmatmul.mubr.msk.f32.gmra.mrb[2].mxu0 %vm204_vm0, %v36_v14 }
  0x11   :  { %329 = vmatprep.mubr.f32.mxu0 %v8752_v3 }
  0x14   :  { %5746 = vmatmul.mubr.msk.f32.gmra.mrb[4].mxu0 %vm204_vm0, %v37_v15  ;;  %v6924_v15 = vld [vmem:[%s8743_s1] sm:$0xff] }
  0x15   :  { %335 = vmatprep.mubr.f32.mxu0 %v8752_v3  ;;  %vm2294_vm11 = vcmp.gt.f32.partialorder %v6924_v15, 0.0 }
  0x18   :  { %5747 = vmatmul.mubr.msk.f32.gmra.mrb[6].mxu0 %vm204_vm0, %v38_v16  ;;  %v6928_v16 = vsel %vm59_vm2, %v6924_v15, 0.0 }
  0x19   :  { %341 = vmatprep.mubr.f32.mxu0 %v8752_v3 }
  0x1c   :  { %5748 = vmatmul.mubr.msk.f32.gmra.mrb[8].mxu0 %vm204_vm0, %v39_v17  ;;  %v6933_v17 = vld [vmem:[%s8743_s1 + $0x10] sm:$0xff] }
  0x1d   :  { %347 = vmatprep.mubr.f32.mxu0 %v8752_v3 }
  0x20   :  { %5749 = vmatmul.mubr.msk.f32.gmra.mrb[10].mxu0 %vm204_vm0, %v40_v18  ;;  %v6938_v18 = vsel %vm59_vm2, %v6933_v17, 0.0 }
  0x21   :  { %353 = vmatprep.mubr.f32.mxu0 %v8752_v3 }
  0x24   :  { %5750 = vmatmul.mubr.msk.f32.gmra.mrb[12].mxu0 %vm204_vm0, %v41_v19  ;;  %v6943_v19 = vld [vmem:[%s8743_s1 + $0x18] sm:$0xff] }
  0x25   :  { %359 = vmatprep.mubr.f32.mxu0 %v8752_v3 }
  0x28   :  { %5751 = vmatmul.mubr.msk.f32.gmra.mrb[14].mxu0 %vm204_vm0, %v42_v20  ;;  %v6948_v20 = vsel %vm59_vm2, %v6943_v19, 0.0 }
  0x29   :  { %365 = vmatprep.mubr.f32.mxu0 %v8752_v3 }
  0x2c   :  { %5752 = vmatmul.mubr.msk.f32.gmra.mrb[16].mxu0 %vm204_vm0, %v43_v21  ;;  %v6953_v21 = vld [vmem:[%s8743_s1 + $0x28] sm:$0xff] }
  0x2d   :  { %371 = vmatprep.mubr.f32.mxu0 %v8752_v3 }
  0x30   :  { %5753 = vmatmul.mubr.msk.f32.gmra.mrb[18].mxu0 %vm204_vm0, %v44_v22  ;;  %v6958_v22 = vld [vmem:[%s8743_s1 + $0x8] sm:$0xff] }
  0x31   :  { %377 = vmatprep.mubr.f32.mxu0 %v8752_v3  ;;  %vm2295_vm15 = vcmp.gt.f32.partialorder %v6958_v22, 0.0 }
  0x34   :  { %5754 = vmatmul.mubr.msk.f32.gmra.mrb[20].mxu0 %vm204_vm0, %v45_v23  ;;  %v6963_v23 = vsel %vm59_vm2, %v6953_v21, 0.0 }
  0x35   :  { %383 = vmatprep.mubr.f32.mxu0 %v8752_v3 }
  0x38   :  { %5755 = vmatmul.mubr.msk.f32.gmra.mrb[22].mxu0 %vm204_vm0, %v46_v24  ;;  %v6967_v24 = vsel %vm59_vm2, %v6958_v22, 0.0 }
  0x39   :  { %389 = vmatprep.mubr.f32.mxu0 %v8752_v3 }
  0x3c   :  { %5756 = vmatmul.mubr.msk.f32.gmra.mrb[24].mxu0 %vm204_vm0, %v47_v25  ;;  %v6972_v25 = vld [vmem:[%s8743_s1 + $0x38] sm:$0xff] }
  0x3d   :  { %395 = vmatprep.mubr.f32.mxu0 %v8752_v3 }
  0x40   :  { %5757 = vmatmul.mubr.msk.f32.gmra.mrb[26].mxu0 %vm204_vm0, %v48_v26  ;;  %v6977_v26 = vld [vmem:[%s8743_s1 + $0x20] sm:$0xff] }
  0x41   :  { %401 = vmatprep.mubr.f32.mxu0 %v8752_v3 }
  0x44   :  { %5758 = vmatmul.mubr.msk.f32.gmra.mrb[28].mxu0 %vm204_vm0, %v49_v27  ;;  %v6983_v27 = vsel %vm59_vm2, %v6972_v25, 0.0 }
  0x45   :  { %407 = vmatprep.mubr.f32.mxu0 %v8752_v3 }
  0x48   :  { %5759 = vmatmul.mubr.msk.f32.gmra.mrb[30].mxu0 %vm204_vm0, %v50_v28  ;;  %v6987_v28 = vsel %vm59_vm2, %v6977_v26, 0.0 }
  0xdf   :  { %v319_v30 = vpop.f32.mrb[0].mxu0 }
  0xe0   :  { %v6850_v31 = vpop.f32.mrb[1].mxu0 }
  0xe3   :  { %v325_v32 = vpop.f32.mrb[2].mxu0 }
  0xe4   :  { %v6852_v33 = vpack.c.bf16 %v325_v32, %v319_v30  ;;  %v6854_v34 = vpop.f32.mrb[3].mxu0  ;;  %v6992_v30 = vld [vmem:[%s8743_s1 + $0x30] sm:$0xff] }
  0xe5   :  { %v6391_v35 = vpack.i.bf16 %v6854_v34, %v6850_v31  ;;  %v6998_v32 = vsel %vm59_vm2, %v6992_v30, 0.0 }
  0xe7   :  { %6392 = vrot.lane.b32.xlu0 %v6391_v35, %s6682_s19  ;;  %v331_v36 = vpop.f32.mrb[4].mxu0 }
  0xe8   :  { %v6859_v37 = vpop.f32.mrb[5].mxu0 }
  0xeb   :  { %v337_v38 = vpop.f32.mrb[6].mxu0 }
  0xec   :  { %v6861_v39 = vpack.c.bf16 %v337_v38, %v331_v36  ;;  %v6863_v40 = vpop.f32.mrb[7].mxu0 }
  0xed   :  { %v6396_v41 = vpack.i.bf16 %v6863_v40, %v6859_v37 }
  0xef   :  { %6397 = vrot.lane.b32.xlu0 %v6396_v41, %s6682_s19  ;;  %v343_v42 = vpop.f32.mrb[8].mxu0 }
  0xf0   :  { %v6868_v43 = vpop.f32.mrb[9].mxu0 }
  0xf3   :  { %v349_v44 = vpop.f32.mrb[10].mxu0 }
  0xf4   :  { %v6870_v45 = vpack.c.bf16 %v349_v44, %v343_v42  ;;  %v6872_v46 = vpop.f32.mrb[11].mxu0 }
  0xf5   :  { %v6401_v47 = vpack.i.bf16 %v6872_v46, %v6868_v43 }
  0xf7   :  { %6402 = vrot.lane.b32.xlu1 %v6401_v47, %s6682_s19  ;;  %v355_v48 = vpop.f32.mrb[12].mxu0 }
  0xf8   :  { %v6877_v49 = vpop.f32.mrb[13].mxu0 }
  0xfb   :  { %v361_v50 = vpop.f32.mrb[14].mxu0 }
  0xfc   :  { %v6879_v51 = vpack.c.bf16 %v361_v50, %v355_v48  ;;  %v6881_v52 = vpop.f32.mrb[15].mxu0 }
  0xfd   :  { %v6406_v53 = vpack.i.bf16 %v6881_v52, %v6877_v49 }
  0xff   :  { %6407 = vrot.lane.b32.xlu1 %v6406_v53, %s6682_s19  ;;  %v367_v54 = vpop.f32.mrb[16].mxu0 }
 0x100   :  { %v6886_v55 = vpop.f32.mrb[17].mxu0 }
 0x103   :  { %v373_v56 = vpop.f32.mrb[18].mxu0 }
 0x104   :  { %v6888_v57 = vpack.c.bf16 %v373_v56, %v367_v54  ;;  %v6890_v58 = vpop.f32.mrb[19].mxu0 }
 0x105   :  { %v6411_v59 = vpack.i.bf16 %v6890_v58, %v6886_v55 }
 0x106   :  { %8769 = vst [vmem:[#allocation2_spill] sm:$0xff] %v6888_v57 }
 0x107   :  { %6412 = vrot.lane.b32.xlu0 %v6411_v59, %s6682_s19  ;;  %v379_v60 = vpop.f32.mrb[20].mxu0 }
 0x108   :  { %v6895_v61 = vpop.f32.mrb[21].mxu0 }
 0x10b   :  { %v385_v62 = vpop.f32.mrb[22].mxu0 }
 0x10c   :  { %v6294_v63 = vpack.c.bf16 %v385_v62, %v379_v60  ;;  %v6897_v0 = vpop.f32.mrb[23].mxu0 }
 0x10d   :  { %v6416_v1 = vpack.i.bf16 %v6897_v0, %v6895_v61 }
 0x10e   :  { %6295 = vmatprep.subr.bf16.mxu0 %v6294_v63 }
 0x10f   :  { %6417 = vrot.lane.b32.xlu1 %v6416_v1, %s6682_s19  ;;  %v391_v2 = vpop.f32.mrb[24].mxu0  ;;  %6297 = vmatpush3.bf16.msra.mxu0 %v6294_v63 }
 0x110   :  { %v6902_v4 = vpop.f32.mrb[25].mxu0 }
 0x113   :  { %v397_v5 = vpop.f32.mrb[26].mxu0 }
 0x114   :  { %v6904_v6 = vpack.c.bf16 %v397_v5, %v391_v2  ;;  %v6906_v7 = vpop.f32.mrb[27].mxu0 }
 0x115   :  { %v6421_v8 = vpack.i.bf16 %v6906_v7, %v6902_v4 }
 0x116   :  { %8770 = vst [vmem:[#allocation3_spill] sm:$0xff] %v6904_v6 }
 0x117   :  { %6422 = vrot.lane.b32.xlu0 %v6421_v8, %s6682_s19  ;;  %v403_v9 = vpop.f32.mrb[28].mxu0 }
 0x118   :  { %v6911_v10 = vpop.f32.mrb[29].mxu0 }
 0x11b   :  { %v409_v11 = vpop.f32.mrb[30].mxu0 }
 0x11c   :  { %v6913_v12 = vpack.c.bf16 %v409_v11, %v403_v9  ;;  %v6915_v13 = vpop.f32.mrb[31].mxu0 }
 0x11d   :  { %v6426_v14 = vpack.i.bf16 %v6915_v13, %v6911_v10 }
 0x11e   :  { %8771 = vst [vmem:[#allocation4_spill] sm:$0xff] %v6913_v12  ;;  %6303 = vmatprep.subr.bf16.mxu0 %v6913_v12 }
 0x11f   :  { %6427 = vrot.lane.b32.xlu1 %v6426_v14, %s6682_s19 }
 0x136   :  { %61 = vadd.xlane.f32.xlu0 %v6928_v16 }
 0x13a   :  { %67 = vadd.xlane.f32.xlu0 %v6938_v18 }
 0x13e   :  { %70 = vadd.xlane.f32.xlu0 %v6948_v20 }
 0x142   :  { %76 = vadd.xlane.f32.xlu0 %v6963_v23 }
 0x143   :  { %64 = vadd.xlane.f32.xlu1 %v6967_v24 }
 0x146   :  { %82 = vadd.xlane.f32.xlu0 %v6983_v27 }
 0x147   :  { %73 = vadd.xlane.f32.xlu1 %v6987_v28 }
 0x14b   :  { %79 = vadd.xlane.f32.xlu1 %v6998_v32 }
 0x159   :  { %v6393_v35 = vpop.permute.xlu0 %6392 }
 0x15a   :  { %v6395_v36 = vunpack.i.h.bf16 %v6393_v35  ;;  %v6394_v38 = vunpack.i.l.bf16 %v6393_v35 }
 0x15c   :  { %v6251_v41 = vpack.c.bf16 %v6395_v36, %v6394_v38 }
 0x15e   :  { %6252 = vmatpush3.bf16.msra.mxu1 %v6251_v41 }
 0x15f   :  { %6253 = vmatprep.subr.bf16.mxu1 %v6680_v29 }
 0x161   :  { %5991 = vmatmul.mubr.msk.f32.vlgmr.msra.gmra.mrb[0].mxu1 %vm59_vm2, %v6924_v15  ;;  %v6398_v42 = vpop.permute.xlu0 %6397 }
 0x162   :  { %v6400_v44 = vunpack.i.h.bf16 %v6398_v42  ;;  %v6399_v47 = vunpack.i.l.bf16 %v6398_v42  ;;  %5997 = vmatprep.mubr.msk.f32.mxu1 %vm6681_vm1, %v8752_v3 }
 0x164   :  { %v6254_v48 = vpack.c.bf16 %v6400_v44, %v6399_v47 }
 0x166   :  { %6255 = vmatpush3.bf16.msra.mxu1 %v6254_v48 }
 0x167   :  { %6256 = vmatprep.subr.bf16.mxu1 %v6680_v29 }
 0x169   :  { %5998 = vmatmul.mubr.msk.f32.vlgmr.msra.gmra.mrb[2].mxu1 %vm59_vm2, %v6958_v22  ;;  %v6403_v50 = vpop.permute.xlu1 %6402 }
 0x16a   :  { %v6405_v53 = vunpack.i.h.bf16 %v6403_v50  ;;  %v6404_v54 = vunpack.i.l.bf16 %v6403_v50  ;;  %6004 = vmatprep.mubr.msk.f32.mxu1 %vm6681_vm1, %v8752_v3 }
 0x16c   :  { %v6257_v56 = vpack.c.bf16 %v6405_v53, %v6404_v54 }
 0x16e   :  { %6258 = vmatpush3.bf16.msra.mxu1 %v6257_v56 }
 0x16f   :  { %6259 = vmatprep.subr.bf16.mxu1 %v6680_v29 }
 0x171   :  { %6005 = vmatmul.mubr.msk.f32.vlgmr.msra.gmra.mrb[4].mxu1 %vm59_vm2, %v6933_v17  ;;  %v6408_v59 = vpop.permute.xlu1 %6407 }
 0x172   :  { %v6410_v60 = vunpack.i.h.bf16 %v6408_v59  ;;  %v6409_v62 = vunpack.i.l.bf16 %v6408_v59  ;;  %6011 = vmatprep.mubr.msk.f32.mxu1 %vm6681_vm1, %v8752_v3 }
 0x173   :  { %446 = vxpose.xlu0.b32.start [1/2] (short) (narrow) %v6859_v37, 8 }
 0x174   :  { %v6260_v63 = vpack.c.bf16 %v6410_v60, %v6409_v62 }
 0x176   :  { %6261 = vmatpush3.bf16.msra.mxu1 %v6260_v63 }
 0x177   :  { %447 = vxpose.xlu0.b32.end [2/2] (short) (narrow) %v6863_v40, 8  ;;  %6262 = vmatprep.subr.bf16.mxu1 %v6680_v29 }
 0x179   :  { %6012 = vmatmul.mubr.msk.f32.vlgmr.msra.gmra.mrb[6].mxu1 %vm59_vm2, %v6943_v19  ;;  %v6413_v1 = vpop.permute.xlu0 %6412 }
 0x17a   :  { %v6415_v2 = vunpack.i.h.bf16 %v6413_v1  ;;  %v6414_v5 = vunpack.i.l.bf16 %v6413_v1  ;;  %6018 = vmatprep.mubr.msk.f32.mxu1 %vm6681_vm1, %v8752_v3 }
 0x17b   :  { %510 = vxpose.xlu0.b32.start [1/2] (short) (narrow) %v6877_v49, 8 }
 0x17c   :  { %v6263_v8 = vpack.c.bf16 %v6415_v2, %v6414_v5 }
 0x17e   :  { %6264 = vmatpush3.bf16.msra.mxu1 %v6263_v8  ;;  %414 = vxpose.xlu1.b32.start [1/2] (short) (narrow) %v6850_v31, 8 }
 0x17f   :  { %511 = vxpose.xlu0.b32.end [2/2] (short) (narrow) %v6881_v52, 8  ;;  %6265 = vmatprep.subr.bf16.mxu1 %v6680_v29 }
 0x181   :  { %6019 = vmatmul.mubr.msk.f32.vlgmr.msra.gmra.mrb[8].mxu1 %vm59_vm2, %v6977_v26  ;;  %v6418_v37 = vpop.permute.xlu1 %6417 }
 0x182   :  { %v6420_v40 = vunpack.i.h.bf16 %v6418_v37  ;;  %v6419_v9 = vunpack.i.l.bf16 %v6418_v37  ;;  %415 = vxpose.xlu1.b32.end [2/2] (short) (narrow) %v6854_v34, 8  ;;  %6025 = vmatprep.mubr.msk.f32.mxu1 %vm6681_vm1, %v8752_v3 }
 0x183   :  { %574 = vxpose.xlu0.b32.start [1/2] (short) (narrow) %v6895_v61, 8 }
 0x184   :  { %v6266_v49 = vpack.c.bf16 %v6420_v40, %v6419_v9 }
 0x186   :  { %6267 = vmatpush3.bf16.msra.mxu1 %v6266_v49  ;;  %478 = vxpose.xlu1.b32.start [1/2] (short) (narrow) %v6868_v43, 8 }
 0x187   :  { %575 = vxpose.xlu0.b32.end [2/2] (short) (narrow) %v6897_v0, 8  ;;  %6268 = vmatprep.subr.bf16.mxu1 %v6680_v29 }
 0x189   :  { %6026 = vmatmul.mubr.msk.f32.vlgmr.msra.gmra.mrb[10].mxu1 %vm59_vm2, %v6953_v21  ;;  %v6423_v31 = vpop.permute.xlu0 %6422 }
 0x18a   :  { %v6425_v52 = vunpack.i.h.bf16 %v6423_v31  ;;  %v6424_v11 = vunpack.i.l.bf16 %v6423_v31  ;;  %479 = vxpose.xlu1.b32.end [2/2] (short) (narrow) %v6872_v46, 8  ;;  %6032 = vmatprep.mubr.msk.f32.mxu1 %vm6681_vm1, %v8752_v3 }
 0x18c   :  { %v6269_v34 = vpack.c.bf16 %v6425_v52, %v6424_v11 }
 0x18e   :  { %6270 = vmatpush3.bf16.msra.mxu1 %v6269_v34  ;;  %542 = vxpose.xlu1.b32.start [1/2] (short) (narrow) %v6886_v55, 8 }
 0x18f   :  { %6271 = vmatprep.subr.bf16.mxu1 %v6680_v29 }
 0x191   :  { %6033 = vmatmul.mubr.msk.f32.vlgmr.msra.gmra.mrb[12].mxu1 %vm59_vm2, %v6992_v30  ;;  %v6428_v43 = vpop.permute.xlu1 %6427 }
 0x192   :  { %v6430_v61 = vunpack.i.h.bf16 %v6428_v43  ;;  %v6429_v0 = vunpack.i.l.bf16 %v6428_v43  ;;  %543 = vxpose.xlu1.b32.end [2/2] (short) (narrow) %v6890_v58, 8  ;;  %6039 = vmatprep.mubr.msk.f32.mxu1 %vm6681_vm1, %v8752_v3 }
 0x194   :  { %v6272_v46 = vpack.c.bf16 %v6430_v61, %v6429_v0 }
 0x196   :  { %606 = vxpose.xlu1.b32.start [1/2] (short) (narrow) %v6902_v4, 8  ;;  %6273 = vmatpush3.bf16.msra.mxu1 %v6272_v46 }
 0x197   :  { %6275 = vmatprep.subr.bf16.mxu1 %v6852_v33 }
 0x199   :  { %6040 = vmatmul.mubr.msk.f32.vlgmr.msra.gmra.mrb[14].mxu1 %vm59_vm2, %v6972_v25 }
 0x19a   :  { %607 = vxpose.xlu1.b32.end [2/2] (short) (narrow) %v6906_v7, 8  ;;  %6277 = vmatpush3.bf16.msra.mxu1 %v6852_v33 }
 0x19b   :  { %6279 = vmatprep.subr.bf16.mxu1 %v6861_v39 }
 0x19e   :  { %638 = vxpose.xlu1.b32.start [1/2] (short) (narrow) %v6911_v10, 8 }
 0x1a2   :  { %639 = vxpose.xlu1.b32.end [2/2] (short) (narrow) %v6915_v13, 8 }
 0x1c3   :  { %v62_v29 = vpop.xlane.xlu0 %61 }
 0x1c4   :  { %v92_v55 = vmax.f32 %v62_v29, 1.0  ;;  %vm84_vm3 = vcmp.gt.f32.partialorder %v62_v29, 0.0 }
 0x1c6   :  { %6431 = vrcp.f32 %v92_v55 }
 0x1c7   :  { %v68_v14 = vpop.xlane.xlu0 %67 }
 0x1c8   :  { %v94_v25 = vmax.f32 %v68_v14, 1.0  ;;  %vm86_vm5 = vcmp.gt.f32.partialorder %v68_v14, 0.0 }
 0x1cb   :  { %v71_v38 = vpop.xlane.xlu0 %70 }
 0x1cc   :  { %v95_v13 = vmax.f32 %v71_v38, 1.0  ;;  %vm87_vm6 = vcmp.gt.f32.partialorder %v71_v38, 0.0 }
 0x1cf   :  { %v77_v62 = vpop.xlane.xlu0 %76 }
 0x1d0   :  { %v65_v58 = vpop.xlane.xlu1 %64  ;;  %v6432_v30 = vpop.eup %6431  ;;  %v97_v1 = vmax.f32 %v77_v62, 1.0  ;;  %vm89_vm8 = vcmp.gt.f32.partialorder %v77_v62, 0.0 }
 0x1d1   :  { %v93_v4 = vmax.f32 %v65_v58, 1.0  ;;  %v7057_v35 = vsel %vm84_vm3, %v6432_v30, 0.0  ;;  %vm85_vm4 = vcmp.gt.f32.partialorder %v65_v58, 0.0 }
 0x1d3   :  { %6433 = vrcp.f32 %v93_v4  ;;  %v83_v43 = vpop.xlane.xlu0 %82 }
 0x1d4   :  { %6435 = vrcp.f32 %v94_v25  ;;  %v74_v48 = vpop.xlane.xlu1 %73  ;;  %v99_v0 = vmax.f32 %v83_v43, 1.0  ;;  %vm91_vm10 = vcmp.gt.f32.partialorder %v83_v43, 0.0 }
 0x1d5   :  { %6437 = vrcp.f32 %v95_v13  ;;  %v96_v53 = vmax.f32 %v74_v48, 1.0  ;;  %vm88_vm7 = vcmp.gt.f32.partialorder %v74_v48, 0.0 }
 0x1d7   :  { %6439 = vrcp.f32 %v96_v53  ;;  %v8754_v53 = vlaneseq }
 0x1d8   :  { %6441 = vrcp.f32 %v97_v1  ;;  %v80_v40 = vpop.xlane.xlu1 %79 }
 0x1d9   :  { %v98_v49 = vmax.f32 %v80_v40, 1.0  ;;  %vm90_vm9 = vcmp.gt.f32.partialorder %v80_v40, 0.0 }
 0x1db   :  { %6443 = vrcp.f32 %v98_v49 }
 0x1dc   :  { %6445 = vrcp.f32 %v99_v0 }
 0x1dd   :  { %v6434_v10 = vpop.eup %6433 }
 0x1de   :  { %v7060_v41 = vsel %vm85_vm4, %v6434_v10, 0.0  ;;  %v6436_v50 = vpop.eup %6435 }
 0x1df   :  { %v7063_v54 = vsel %vm86_vm5, %v6436_v50, 0.0  ;;  %v6438_v63 = vpop.eup %6437 }
 0x1e0   :  { %v7066_v2 = vsel %vm87_vm6, %v6438_v63, 0.0  ;;  %vm2296_vm6 = vcmp.gt.f32.partialorder %v6933_v17, 0.0 }
 0x1e1   :  { %8772 = vst [vmem:[#allocation5_spill] sm:$0xff] %v7066_v2  ;;  %v6440_v9 = vpop.eup %6439 }
 0x1e2   :  { %v7069_v31 = vsel %vm88_vm7, %v6440_v9, 0.0  ;;  %v6442_v61 = vpop.eup %6441 }
 0x1e3   :  { %8773 = vst [vmem:[#allocation6_spill] sm:$0xff] %v7069_v31  ;;  %v7072_v46 = vsel %vm89_vm8, %v6442_v61, 0.0 }
 0x1e4   :  { %8774 = vst [vmem:[#allocation7_spill] sm:$0xff] %v7072_v46 }
 0x1e5   :  { %v6444_v4 = vpop.eup %6443 }
 0x1e6   :  { %v7075_v14 = vsel %vm90_vm9, %v6444_v4, 0.0 }
 0x1e7   :  { %8775 = vst [vmem:[#allocation8_spill] sm:$0xff] %v7075_v14 }
 0x1f3   :  { %v7089_v50 = vpop.trf.xlu0 }
 0x234   :  { %v747_v7 = vpop.f32.mrb[0].mxu1 }
 0x235   :  { %v1318_v33 = vmul.f32 %v747_v7, %v7057_v35  ;;  %v5992_v36 = vpop.f32.mrb[1].mxu1 }
 0x237   :  { %1326 = vxpose.xlu1.b32.start.end [1/1] (short) (narrow) %v1318_v33, 8  ;;  %v6446_v33 = vpop.eup %6445 }
 0x238   :  { %v7078_v36 = vsel %vm91_vm10, %v6446_v33, 0.0 }
 0x239   :  { %8776 = vst [vmem:[#allocation9_spill] sm:$0xff] %v7078_v36 }
 0x23c   :  { %v828_v42 = vpop.f32.mrb[2].mxu1 }
 0x23d   :  { %v1319_v44 = vmul.f32 %v828_v42, %v7060_v41  ;;  %v5999_v47 = vpop.f32.mrb[3].mxu1  ;;  %v7081_v42 = vpop.trf.xlu1 }
 0x23f   :  { %1358 = vxpose.xlu0.b32.start.end [1/1] (short) (narrow) %v1319_v44, 8 }
 0x241   :  { %v7083_v44 = vpop.trf.xlu1 }
 0x244   :  { %v909_v56 = vpop.f32.mrb[4].mxu1 }
 0x245   :  { %v1320_v59 = vmul.f32 %v909_v56, %v7063_v54  ;;  %v6006_v60 = vpop.f32.mrb[5].mxu1  ;;  %v7085_v47 = vpop.trf.xlu1 }
 0x246   :  { %v7096_v60 = vpop.trf.xlu0 }
 0x247   :  { %1390 = vxpose.xlu0.b32.start.end [1/1] (short) (narrow) %v1320_v59, 8  ;;  %v7094_v59 = vshrl.u32 %v8754_v53, 7 }
 0x249   :  { %v7087_v48 = vpop.trf.xlu1  ;;  %v7099_v62 = vsub.s32 1, %v7094_v59  ;;  %v7102_v63 = vsub.s32 0, %v7094_v59  ;;  %v7113_v49 = vsub.s32 3, %v7094_v59 }
 0x24a   :  { %v7109_v40 = vpop.trf.xlu0 }
 0x24c   :  { %v990_v5 = vpop.f32.mrb[6].mxu1 }
 0x24d   :  { %v1321_v8 = vmul.f32 %v990_v5, %v7066_v2  ;;  %v6013_v37 = vpop.f32.mrb[7].mxu1  ;;  %v7091_v56 = vpop.trf.xlu1 }
 0x24e   :  { %v7107_v37 = vsub.s32 2, %v7094_v59 }
 0x24f   :  { %1422 = vxpose.xlu1.b32.start.end [1/1] (short) (narrow) %v1321_v8, 8 }
 0x254   :  { %v1071_v52 = vpop.f32.mrb[8].mxu1 }
 0x255   :  { %v1322_v11 = vmul.f32 %v1071_v52, %v7069_v31  ;;  %v6020_v34 = vpop.f32.mrb[9].mxu1 }
 0x257   :  { %1454 = vxpose.xlu0.b32.start.end [1/1] (short) (narrow) %v1322_v11, 8 }
 0x25c   :  { %v1152_v29 = vpop.f32.mrb[10].mxu1 }
 0x25d   :  { %v1323_v55 = vmul.f32 %v1152_v29, %v7072_v46  ;;  %v6027_v58 = vpop.f32.mrb[11].mxu1 }
 0x25f   :  { %1486 = vxpose.xlu1.b32.start.end [1/1] (short) (narrow) %v1323_v55, 8 }
 0x264   :  { %v1233_v30 = vpop.f32.mrb[12].mxu1 }
 0x265   :  { %v1324_v25 = vmul.f32 %v1233_v30, %v7075_v14  ;;  %v6034_v7 = vpop.f32.mrb[13].mxu1 }
 0x267   :  { %1518 = vxpose.xlu1.b32.start.end [1/1] (short) (narrow) %v1324_v25, 8 }
 0x26c   :  { %v1314_v38 = vpop.f32.mrb[14].mxu1 }
 0x26d   :  { %v1325_v10 = vmul.f32 %v1314_v38, %v7078_v36  ;;  %v6041_v13 = vpop.f32.mrb[15].mxu1 }
 0x26f   :  { %1550 = vxpose.xlu0.b32.start.end [1/1] (short) (narrow) %v1325_v10, 8 }
 0x2b7   :  { %v1342_v1 = vpop.trf.xlu1 }
 0x2b8   :  { %v1792_v5 = vrot.slane %v1342_v1, %v7099_v62  ;;  %v1785_v8 = vrot.slane %v1342_v1, %v7102_v63  ;;  %v1799_v9 = vrot.slane %v1342_v1, %v7107_v37  ;;  %v1806_v34 = vrot.slane %v1342_v1, %v7113_v49 }
 0x2ba   :  { %1794 = vbcast.lane.b32.xlu1 %v1792_v5, 256  ;;  %1787 = vbcast.lane.b32.xlu0 %v1785_v8, 256 }
 0x2be   :  { %1801 = vbcast.lane.b32.xlu0 %v1799_v9, 256 }
 0x2bf   :  { %v1374_v52 = vpop.trf.xlu0 }
 0x2c0   :  { %v1813_v11 = vrot.slane %v1374_v52, %v7102_v63  ;;  %v1827_v43 = vrot.slane %v1374_v52, %v7107_v37  ;;  %v1820_v61 = vrot.slane %v1374_v52, %v7099_v62  ;;  %v1834_v29 = vrot.slane %v1374_v52, %v7113_v49 }
 0x2c2   :  { %1815 = vbcast.lane.b32.xlu1 %v1813_v11, 256  ;;  %1808 = vbcast.lane.b32.xlu0 %v1806_v34, 256 }
 0x2c6   :  { %1829 = vbcast.lane.b32.xlu1 %v1827_v43, 256  ;;  %1822 = vbcast.lane.b32.xlu0 %v1820_v61, 256 }
 0x2c7   :  { %v1406_v0 = vpop.trf.xlu0 }
 0x2c8   :  { %v1841_v55 = vrot.slane %v1406_v0, %v7102_v63  ;;  %v1848_v58 = vrot.slane %v1406_v0, %v7099_v62  ;;  %v1855_v25 = vrot.slane %v1406_v0, %v7107_v37  ;;  %v1862_v33 = vrot.slane %v1406_v0, %v7113_v49 }
 0x2ca   :  { %1836 = vbcast.lane.b32.xlu1 %v1834_v29, 256  ;;  %1843 = vbcast.lane.b32.xlu0 %v1841_v55, 256 }
 0x2ce   :  { %1850 = vbcast.lane.b32.xlu0 %v1848_v58, 256 }
 0x2cf   :  { %v1438_v4 = vpop.trf.xlu1 }
 0x2d0   :  { %v1869_v30 = vrot.slane %v1438_v4, %v7102_v63  ;;  %v1883_v7 = vrot.slane %v1438_v4, %v7107_v37  ;;  %v1890_v38 = vrot.slane %v1438_v4, %v7113_v49  ;;  %v1876_v10 = vrot.slane %v1438_v4, %v7099_v62 }
 0x2d2   :  { %1871 = vbcast.lane.b32.xlu1 %v1869_v30, 256  ;;  %1857 = vbcast.lane.b32.xlu0 %v1855_v25, 256 }
 0x2d6   :  { %1885 = vbcast.lane.b32.xlu1 %v1883_v7, 256  ;;  %1864 = vbcast.lane.b32.xlu0 %v1862_v33, 256 }
 0x2d7   :  { %v1470_v13 = vpop.trf.xlu0 }
 0x2d8   :  { %v1897_v1 = vrot.slane %v1470_v13, %v7102_v63  ;;  %v1904_v5 = vrot.slane %v1470_v13, %v7099_v62  ;;  %v1911_v11 = vrot.slane %v1470_v13, %v7107_v37  ;;  %v1918_v61 = vrot.slane %v1470_v13, %v7113_v49 }
 0x2da   :  { %1892 = vbcast.lane.b32.xlu1 %v1890_v38, 256  ;;  %1878 = vbcast.lane.b32.xlu0 %v1876_v10, 256  ;;  %v6683_v10 = vmov 1966171168  }
 0x2db   :  { %v1591_v13 = vunpack.c.l.s4 %v6683_v10 }
 0x2de   :  { %1899 = vbcast.lane.b32.xlu0 %v1897_v1, 256  ;;  %v1592_v1 = vunpack.c.0.s8 %v1591_v13 }
 0x2df   :  { %v1502_v8 = vpop.trf.xlu1 }
 0x2e0   :  { %v1939_v9 = vrot.slane %v1502_v8, %v7107_v37  ;;  %v1946_v52 = vrot.slane %v1502_v8, %v7113_v49  ;;  %v1925_v29 = vrot.slane %v1502_v8, %v7102_v63  ;;  %v1932_v58 = vrot.slane %v1502_v8, %v7099_v62 }
 0x2e2   :  { %1941 = vbcast.lane.b32.xlu1 %v1939_v9, 256  ;;  %1906 = vbcast.lane.b32.xlu0 %v1904_v5, 256  ;;  %v7145_v5 = vsub.s32 %v1592_v1, %v7094_v59 }
 0x2e4   :  { %v1596_v8 = vrot.slane %v7081_v42, %v7145_v5 }
 0x2e6   :  { %1948 = vbcast.lane.b32.xlu1 %v1946_v52, 256  ;;  %1913 = vbcast.lane.b32.xlu0 %v1911_v11, 256  ;;  %v1597_v9 = vcombine.high %v1596_v8, %v1596_v8  ;;  %v1604_v52 = vrot.slane %v1596_v8, %v7145_v5 }
 0x2e7   :  { %v1534_v34 = vpop.trf.xlu1 }
 0x2e8   :  { %v1960_v43 = vrot.slane %v1534_v34, %v7099_v62  ;;  %v1967_v0 = vrot.slane %v1534_v34, %v7107_v37  ;;  %v1974_v55 = vrot.slane %v1534_v34, %v7113_v49  ;;  %v1953_v30 = vrot.slane %v1534_v34, %v7102_v63 }
 0x2e9   :  { %v1612_v11 = vcombine.high %v1604_v52, %v1604_v52  ;;  %v2009_v34 = vrot.slane %v1604_v52, %v7102_v63 }
 0x2ea   :  { %1962 = vbcast.lane.b32.xlu1 %v1960_v43, 256  ;;  %1920 = vbcast.lane.b32.xlu0 %v1918_v61, 256 }
 0x2ee   :  { %1969 = vbcast.lane.b32.xlu1 %v1967_v0, 256  ;;  %1927 = vbcast.lane.b32.xlu0 %v1925_v29, 256 }
 0x2ef   :  { %v1566_v4 = vpop.trf.xlu0 }
 0x2f0   :  { %v1981_v25 = vrot.slane %v1566_v4, %v7102_v63  ;;  %v1995_v7 = vrot.slane %v1566_v4, %v7107_v37  ;;  %v1988_v33 = vrot.slane %v1566_v4, %v7099_v62  ;;  %v2002_v38 = vrot.slane %v1566_v4, %v7113_v49 }
 0x2f1   :  { %v1611_v37 = vrot.slane %v1597_v9, %v7145_v5  ;;  %v1620_v62 = vrot.slane %v7089_v50, %v7145_v5  ;;  %v1644_v50 = vrot.slane %v7083_v44, %v7145_v5 }
 0x2f2   :  { %1976 = vbcast.lane.b32.xlu1 %v1974_v55, 256  ;;  %1934 = vbcast.lane.b32.xlu0 %v1932_v58, 256  ;;  %v2017_v58 = vrot.slane %v1612_v11, %v7102_v63 }
 0x2f3   :  { %v2013_v49 = vrot.slane %v1611_v37, %v7102_v63  ;;  %v1613_v59 = vcombine.high %v1611_v37, %v1611_v37  ;;  %v1628_v0 = vrot.slane %v1620_v62, %v7145_v5  ;;  %v1621_v55 = vcombine.high %v1620_v62, %v1620_v62 }
 0x2f4   :  { %v1645_v11 = vcombine.high %v1644_v50, %v1644_v50 }
 0x2f5   :  { %v1636_v13 = vcombine.high %v1628_v0, %v1628_v0  ;;  %v2025_v1 = vrot.slane %v1628_v0, %v7102_v63  ;;  %v1635_v52 = vrot.slane %v1621_v55, %v7145_v5 }
 0x2f6   :  { %1955 = vbcast.lane.b32.xlu0 %v1953_v30, 256  ;;  %1983 = vbcast.lane.b32.xlu1 %v1981_v25, 256 }
 0x2fa   :  { %1997 = vbcast.lane.b32.xlu0 %v1995_v7, 256  ;;  %1990 = vbcast.lane.b32.xlu1 %v1988_v33, 256  ;;  %v2021_v7 = vrot.slane %v1613_v59, %v7102_v63 }
 0x2fe   :  { %2004 = vbcast.lane.b32.xlu0 %v2002_v38, 256 }
 0x32c   :  { %v1795_v43 = vpop.permute.xlu1 %1794  ;;  %v1788_v61 = vpop.permute.xlu0 %1787 }
 0x32d   :  { %v2167_v29 = vadd.f32 %v2013_v49, %v1795_v43  ;;  %v2166_v42 = vadd.f32 %v2009_v34, %v1788_v61  ;;  %v7176_v49 = vrot.slane %v1644_v50, %v7145_v5  ;;  %v1668_v34 = vrot.slane %v7096_v60, %v7145_v5 }
 0x32f   :  { %v2231_v4 = vmul.f32 0.2, %v2167_v29  ;;  %v2230_v30 = vmul.f32 0.2, %v2166_v42  ;;  %vm2199_vm12 = vcmp.gt.f32.partialorder %v2167_v29, 0.0  ;;  %vm2198_vm13 = vcmp.gt.f32.partialorder %v2166_v42, 0.0 }
 0x330   :  { %v1802_v25 = vpop.permute.xlu0 %1801  ;;  %v1660_v15 = vcombine.high %v7176_v49, %v7176_v49 }
 0x331   :  { %v2168_v33 = vadd.f32 %v2017_v58, %v1802_v25  ;;  %v2263_v38 = vsel %vm2199_vm12, %v2167_v29, %v2231_v4  ;;  %v2262_v10 = vsel %vm2198_vm13, %v2166_v42, %v2230_v30  ;;  %v2033_v29 = vrot.slane %v1636_v13, %v7102_v63 }
 0x332   :  { %v7164_v8 = vsel %vm2294_vm11, %v2263_v38, -1e+30  ;;  %v7168_v9 = vsel %vm2294_vm11, %v2262_v10, -1e+30  ;;  %v2029_v58 = vrot.slane %v1635_v52, %v7102_v63  ;;  %v1637_v4 = vcombine.high %v1635_v52, %v1635_v52 }
 0x333   :  { %v2232_v44 = vmul.f32 0.2, %v2168_v33  ;;  %v2353_v37 = vsel %vm59_vm2, %v7164_v8, -inf  ;;  %v2350_v62 = vsel %vm59_vm2, %v7168_v9, -inf  ;;  %vm2200_vm14 = vcmp.gt.f32.partialorder %v2168_v33, 0.0 }
 0x334   :  { %v1816_v43 = vpop.permute.xlu1 %1815  ;;  %2354 = vmax.xlane.f32.xlu1 %v2353_v37  ;;  %2351 = vmax.xlane.f32.xlu0 %v2350_v62  ;;  %v1809_v61 = vpop.permute.xlu0 %1808  ;;  %v1669_v25 = vcombine.high %v1668_v34, %v1668_v34  ;;  %vm2297_vm12 = vcmp.gt.f32.partialorder %v6943_v19, 0.0 }
 0x335   :  { %v2170_v59 = vadd.f32 %v2025_v1, %v1816_v43  ;;  %v2169_v0 = vadd.f32 %v2021_v7, %v1809_v61  ;;  %v2264_v42 = vsel %vm2200_vm14, %v2168_v33, %v2232_v44  ;;  %v2041_v33 = vrot.slane %v7176_v49, %v7102_v63 }
 0x336   :  { %v7183_v55 = vsel %vm2294_vm11, %v2264_v42, -1e+30  ;;  %v2037_v44 = vrot.slane %v1637_v4, %v7102_v63  ;;  %v1659_v43 = vrot.slane %v1645_v11, %v7145_v5 }
 0x337   :  { %v2234_v30 = vmul.f32 0.2, %v2170_v59  ;;  %v2233_v60 = vmul.f32 0.2, %v2169_v0  ;;  %v2356_v50 = vsel %vm59_vm2, %v7183_v55, -inf  ;;  %vm2202_vm1 = vcmp.gt.f32.partialorder %v2170_v59, 0.0 }
 0x338   :  { %v1830_v7 = vpop.permute.xlu1 %1829  ;;  %2357 = vmax.xlane.f32.xlu1 %v2356_v50  ;;  %v1823_v38 = vpop.permute.xlu0 %1822  ;;  %vm2201_vm3 = vcmp.gt.f32.partialorder %v2169_v0, 0.0 }
 0x339   :  { %v2172_v10 = vadd.f32 %v2033_v29, %v1830_v7  ;;  %v2171_v13 = vadd.f32 %v2029_v58, %v1823_v38  ;;  %v2266_v1 = vsel %vm2202_vm1, %v2170_v59, %v2234_v30  ;;  %v2265_v52 = vsel %vm2201_vm3, %v2169_v0, %v2233_v60 }
 0x33a   :  { %v7194_v37 = vsel %vm2295_vm15, %v2266_v1, -1e+30  ;;  %v7198_v62 = vsel %vm2294_vm11, %v2265_v52, -1e+30  ;;  %v1676_v0 = vrot.slane %v1668_v34, %v7145_v5  ;;  %v2045_v38 = vrot.slane %v1659_v43, %v7102_v63 }
 0x33b   :  { %v2236_v61 = vmul.f32 0.2, %v2172_v10  ;;  %v2235_v42 = vmul.f32 0.2, %v2171_v13  ;;  %v2362_v29 = vsel %vm59_vm2, %v7194_v37, -inf  ;;  %v2359_v59 = vsel %vm59_vm2, %v7198_v62, -inf }
 0x33c   :  { %v1837_v58 = vpop.permute.xlu1 %1836  ;;  %2363 = vmax.xlane.f32.xlu1 %v2362_v29  ;;  %2360 = vmax.xlane.f32.xlu0 %v2359_v59  ;;  %v1844_v4 = vpop.permute.xlu0 %1843  ;;  %vm2204_vm4 = vcmp.gt.f32.partialorder %v2172_v10, 0.0  ;;  %vm2203_vm5 = vcmp.gt.f32.partialorder %v2171_v13, 0.0  ;;  %v1661_v59 = vcombine.high %v1659_v43, %v1659_v43  ;;  %v1692_v43 = vrot.slane %v7085_v47, %v7145_v5 }
 0x33d   :  { %v2173_v11 = vadd.f32 %v2037_v44, %v1837_v58  ;;  %v2174_v30 = vadd.f32 %v2041_v33, %v1844_v4  ;;  %v2268_v60 = vsel %vm2204_vm4, %v2172_v10, %v2236_v61  ;;  %v2267_v50 = vsel %vm2203_vm5, %v2171_v13, %v2235_v42 }
 0x33e   :  { %v7210_v7 = vsel %vm2295_vm15, %v2268_v60, -1e+30  ;;  %v7214_v34 = vsel %vm2295_vm15, %v2267_v50, -1e+30  ;;  %v7223_v10 = vrot.slane %v1669_v25, %v7145_v5  ;;  %v2049_v44 = vrot.slane %v1660_v15, %v7102_v63 }
 0x33f   :  { %v2237_v1 = vmul.f32 0.2, %v2173_v11  ;;  %v2238_v52 = vmul.f32 0.2, %v2174_v30  ;;  %v2368_v49 = vsel %vm59_vm2, %v7210_v7, -inf  ;;  %v2365_v33 = vsel %vm59_vm2, %v7214_v34, -inf }
 0x340   :  { %2369 = vmax.xlane.f32.xlu1 %v2368_v49  ;;  %2366 = vmax.xlane.f32.xlu0 %v2365_v33  ;;  %v1851_v13 = vpop.permute.xlu0 %1850  ;;  %vm2205_vm7 = vcmp.gt.f32.partialorder %v2173_v11, 0.0  ;;  %vm2206_vm8 = vcmp.gt.f32.partialorder %v2174_v30, 0.0  ;;  %v2057_v58 = vrot.slane %v1676_v0, %v7102_v63  ;;  %v1684_v60 = vcombine.high %v1676_v0, %v1676_v0 }
 0x341   :  { %v2175_v61 = vadd.f32 %v2045_v38, %v1851_v13  ;;  %v2269_v42 = vsel %vm2205_vm7, %v2173_v11, %v2237_v1  ;;  %v2270_v29 = vsel %vm2206_vm8, %v2174_v30, %v2238_v52  ;;  %v2053_v33 = vrot.slane %v1661_v59, %v7102_v63 }
 0x342   :  { %v7229_v4 = vsel %vm2295_vm15, %v2269_v42, -1e+30  ;;  %v7233_v25 = vsel %vm2296_vm6, %v2270_v29, -1e+30  ;;  %v2065_v0 = vrot.slane %v1684_v60, %v7102_v63  ;;  %v1685_v13 = vcombine.high %v7223_v10, %v7223_v10 }
 0x343   :  { %v2239_v50 = vmul.f32 0.2, %v2175_v61  ;;  %v2371_v49 = vsel %vm59_vm2, %v7229_v4, -inf  ;;  %v2374_v15 = vsel %vm59_vm2, %v7233_v25, -inf  ;;  %vm2207_vm9 = vcmp.gt.f32.partialorder %v2175_v61, 0.0 }
 0x344   :  { %v1872_v11 = vpop.permute.xlu1 %1871  ;;  %2372 = vmax.xlane.f32.xlu0 %v2371_v49  ;;  %2375 = vmax.xlane.f32.xlu1 %v2374_v15  ;;  %v1858_v22 = vpop.permute.xlu0 %1857  ;;  %vm2298_vm3 = vcmp.gt.f32.partialorder %v6977_v26, 0.0 }
 0x345   :  { %v2178_v30 = vadd.f32 %v2057_v58, %v1872_v11  ;;  %v2176_v38 = vadd.f32 %v2049_v44, %v1858_v22  ;;  %v2271_v1 = vsel %vm2207_vm9, %v2175_v61, %v2239_v50  ;;  %v1693_v58 = vcombine.high %v1692_v43, %v1692_v43 }
 0x346   :  { %v7244_v52 = vsel %vm2296_vm6, %v2271_v1, -1e+30  ;;  %v7252_v44 = vrot.slane %v1692_v43, %v7145_v5  ;;  %v7257_v11 = vrot.slane %v7087_v48, %v7145_v5  ;;  %v1716_v22 = vrot.slane %v7109_v40, %v7145_v5 }
 0x347   :  { %v2242_v42 = vmul.f32 0.2, %v2178_v30  ;;  %v2240_v47 = vmul.f32 0.2, %v2176_v38  ;;  %v2377_v29 = vsel %vm59_vm2, %v7244_v52, -inf  ;;  %vm2208_vm10 = vcmp.gt.f32.partialorder %v2176_v38, 0.0 }
 0x348   :  { %v1886_v61 = vpop.permute.xlu1 %1885  ;;  %2378 = vmax.xlane.f32.xlu0 %v2377_v29  ;;  %v1865_v60 = vpop.permute.xlu0 %1864  ;;  %vm2210_vm11 = vcmp.gt.f32.partialorder %v2178_v30, 0.0  ;;  %v2061_v1 = vrot.slane %v7223_v10, %v7102_v63  ;;  %v1708_v17 = vcombine.high %v7252_v44, %v7252_v44  ;;  %vm2299_vm9 = vcmp.gt.f32.partialorder %v6953_v21, 0.0 }
 0x349   :  { %v2180_v59 = vadd.f32 %v2065_v0, %v1886_v61  ;;  %v2177_v50 = vadd.f32 %v2053_v33, %v1865_v60  ;;  %v2272_v49 = vsel %vm2208_vm10, %v2176_v38, %v2240_v47  ;;  %v2274_v15 = vsel %vm2210_vm11, %v2178_v30, %v2242_v42 }
 0x34a   :  { %v7263_v43 = vsel %vm2296_vm6, %v2272_v49, -1e+30  ;;  %v2069_v0 = vrot.slane %v1685_v13, %v7102_v63  ;;  %v7272_v40 = vsel %vm2297_vm12, %v2274_v15, -1e+30  ;;  %v7275_v33 = vrot.slane %v1693_v58, %v7145_v5 }
 0x34b   :  { %v2244_v29 = vmul.f32 0.2, %v2180_v59  ;;  %v2241_v3 = vmul.f32 0.2, %v2177_v50  ;;  %v2380_v30 = vsel %vm59_vm2, %v7263_v43, -inf  ;;  %vm2209_vm13 = vcmp.gt.f32.partialorder %v2177_v50, 0.0 }
 0x34c   :  { %v1893_v38 = vpop.permute.xlu1 %1892  ;;  %2381 = vmax.xlane.f32.xlu1 %v2380_v30  ;;  %v1879_v48 = vpop.permute.xlu0 %1878  ;;  %vm2212_vm14 = vcmp.gt.f32.partialorder %v2180_v59, 0.0  ;;  %v1717_v13 = vcombine.high %v1716_v22, %v1716_v22  ;;  %v7278_v60 = vrot.slane %v1716_v22, %v7145_v5  ;;  %v2073_v15 = vrot.slane %v7252_v44, %v7102_v63 }
 0x34d   :  { %v2181_v10 = vadd.f32 %v2069_v0, %v1893_v38  ;;  %v2179_v42 = vadd.f32 %v2061_v1, %v1879_v48  ;;  %v2273_v47 = vsel %vm2209_vm13, %v2177_v50, %v2241_v3  ;;  %v2276_v61 = vsel %vm2212_vm14, %v2180_v59, %v2244_v29 }
 0x34e   :  { %v7282_v49 = vsel %vm2296_vm6, %v2273_v47, -1e+30  ;;  %v2386_v58 = vsel %vm59_vm2, %v7272_v40, -inf  ;;  %v7292_v50 = vsel %vm2297_vm12, %v2276_v61, -1e+30  ;;  %v2077_v29 = vrot.slane %v7275_v33, %v7102_v63 }
 0x34f   :  { %v2245_v30 = vmul.f32 0.2, %v2181_v10  ;;  %v2243_v53 = vmul.f32 0.2, %v2179_v42  ;;  %v2383_v3 = vsel %vm59_vm2, %v7282_v49, -inf  ;;  %vm2211_vm15 = vcmp.gt.f32.partialorder %v2179_v42, 0.0 }
 0x350   :  { %2387 = vmax.xlane.f32.xlu1 %v2386_v58  ;;  %2384 = vmax.xlane.f32.xlu0 %v2383_v3  ;;  %v1900_v59 = vpop.permute.xlu0 %1899  ;;  %vm2213_vm1 = vcmp.gt.f32.partialorder %v2181_v10, 0.0  ;;  %v7299_v38 = vrot.slane %v1717_v13, %v7145_v5  ;;  %v1732_v48 = vcombine.high %v7278_v60, %v7278_v60  ;;  %v1709_v19 = vcombine.high %v7275_v33, %v7275_v33 }
 0x351   :  { %v2182_v22 = vadd.f32 %v2073_v15, %v1900_v59  ;;  %v2275_v1 = vsel %vm2211_vm15, %v2179_v42, %v2243_v53  ;;  %v2277_v0 = vsel %vm2213_vm1, %v2181_v10, %v2245_v30  ;;  %v2392_v53 = vsel %vm59_vm2, %v7292_v50, -inf }
 0x352   :  { %v7305_v47 = vsel %vm2297_vm12, %v2275_v1, -1e+30  ;;  %v1741_v10 = vcombine.high %v7257_v11, %v7257_v11  ;;  %v7316_v15 = vsel %vm2297_vm12, %v2277_v0, -1e+30  ;;  %v7320_v30 = vrot.slane %v7257_v11, %v7145_v5 }
 0x353   :  { %v2246_v61 = vmul.f32 0.2, %v2182_v22  ;;  %v2389_v44 = vsel %vm59_vm2, %v7305_v47, -inf  ;;  %vm2214_vm4 = vcmp.gt.f32.partialorder %v2182_v22, 0.0  ;;  %v2081_v59 = vrot.slane %v1708_v17, %v7102_v63 }
 0x354   :  { %v1942_v42 = vpop.permute.xlu1 %1941  ;;  %2393 = vmax.xlane.f32.xlu1 %v2392_v53  ;;  %2390 = vmax.xlane.f32.xlu0 %v2389_v44  ;;  %v1907_v13 = vpop.permute.xlu0 %1906  ;;  %v2097_v1 = vrot.slane %v1732_v48, %v7102_v63  ;;  %v1733_v36 = vcombine.high %v7299_v38, %v7299_v38  ;;  %v2395_v11 = vsel %vm59_vm2, %v7316_v15, -inf  ;;  %v1764_v17 = vrot.slane %v7091_v56, %v7145_v5 }
 0x355   :  { %v2183_v58 = vadd.f32 %v2077_v29, %v1907_v13  ;;  %v2278_v3 = vsel %vm2214_vm4, %v2182_v22, %v2246_v61  ;;  %v1756_v12 = vcombine.high %v7320_v30, %v7320_v30  ;;  %v2105_v6 = vrot.slane %v7320_v30, %v7102_v63 }
 0x356   :  { %v7328_v53 = vsel %vm2298_vm3, %v2278_v3, -1e+30  ;;  %v2188_v29 = vadd.f32 %v2097_v1, %v1942_v42  ;;  %v2101_v33 = vrot.slane %v1733_v36, %v7102_v63  ;;  %v1755_v3 = vrot.slane %v1741_v10, %v7145_v5 }
 0x357   :  { %v2247_v0 = vmul.f32 0.2, %v2183_v58  ;;  %v2398_v22 = vsel %vm59_vm2, %v7328_v53, -inf  ;;  %vm2215_vm5 = vcmp.gt.f32.partialorder %v2183_v58, 0.0  ;;  %v2085_v42 = vrot.slane %v1709_v19, %v7102_v63 }
 0x358   :  { %v1949_v48 = vpop.permute.xlu1 %1948  ;;  %2396 = vmax.xlane.f32.xlu0 %v2395_v11  ;;  %2399 = vmax.xlane.f32.xlu1 %v2398_v22  ;;  %v1914_v61 = vpop.permute.xlu0 %1913  ;;  %vm2220_vm7 = vcmp.gt.f32.partialorder %v2188_v29, 0.0  ;;  %v1757_v19 = vcombine.high %v1755_v3, %v1755_v3 }
 0x359   :  { %v2184_v44 = vadd.f32 %v2081_v59, %v1914_v61  ;;  %v2279_v13 = vsel %vm2215_vm5, %v2183_v58, %v2247_v0  ;;  %v1765_v59 = vcombine.high %v1764_v17, %v1764_v17  ;;  %v2252_v58 = vmul.f32 0.2, %v2188_v29 }
 0x35a   :  { %v7342_v14 = vsel %vm2298_vm3, %v2279_v13, -1e+30  ;;  %v2189_v1 = vadd.f32 %v2101_v33, %v1949_v48  ;;  %v7350_v0 = vrot.slane %v1764_v17, %v7145_v5  ;;  %v2113_v61 = vrot.slane %v1756_v12, %v7102_v63 }
 0x35b   :  { %v2248_v46 = vmul.f32 0.2, %v2184_v44  ;;  %v2401_v56 = vsel %vm59_vm2, %v7342_v14, -inf  ;;  %vm2216_vm6 = vcmp.gt.f32.partialorder %v2184_v44, 0.0  ;;  %v2089_v17 = vrot.slane %v7278_v60, %v7102_v63 }
 0x35c   :  { %v1963_v36 = vpop.permute.xlu1 %1962  ;;  %2402 = vmax.xlane.f32.xlu0 %v2401_v56  ;;  %v1921_v10 = vpop.permute.xlu0 %1920  ;;  %vm2221_vm10 = vcmp.gt.f32.partialorder %v2189_v1, 0.0  ;;  %v2117_v31 = vrot.slane %v1757_v19, %v7102_v63  ;;  %v2093_v60 = vrot.slane %v7299_v38, %v7102_v63 }
 0x35d   :  { %v2185_v11 = vadd.f32 %v2085_v42, %v1921_v10  ;;  %v2280_v22 = vsel %vm2216_vm6, %v2184_v44, %v2248_v46  ;;  %v2253_v46 = vmul.f32 0.2, %v2189_v1  ;;  %v2109_v44 = vrot.slane %v1755_v3, %v7102_v63 }
 0x35e   :  { %v7355_v13 = vsel %vm2298_vm3, %v2280_v22, -1e+30  ;;  %v2284_v42 = vsel %vm2220_vm7, %v2188_v29, %v2252_v58  ;;  %v1779_v3 = vrot.slane %v1765_v59, %v7145_v5 }
 0x35f   :  { %v2249_v48 = vmul.f32 0.2, %v2185_v11  ;;  %v2404_v33 = vsel %vm59_vm2, %v7355_v13, -inf  ;;  %vm2217_vm8 = vcmp.gt.f32.partialorder %v2185_v11, 0.0  ;;  %v7377_v58 = vsel %vm2299_vm9, %v2284_v42, -1e+30 }
 0x360   :  { %v1970_v12 = vpop.permute.xlu1 %1969  ;;  %2405 = vmax.xlane.f32.xlu1 %v2404_v33  ;;  %v1928_v56 = vpop.permute.xlu0 %1927  ;;  %v2285_v38 = vsel %vm2221_vm10, %v2189_v1, %v2253_v46 }
 0x361   :  { %v2192_v10 = vadd.f32 %v2113_v61, %v1970_v12  ;;  %v2186_v22 = vadd.f32 %v2089_v17, %v1928_v56  ;;  %v2281_v30 = vsel %vm2217_vm8, %v2185_v11, %v2249_v48  ;;  %v2191_v11 = vadd.f32 %v2109_v44, %v1963_v36 }
 0x362   :  { %v7368_v2 = vsel %vm2298_vm3, %v2281_v30, -1e+30  ;;  %v2121_v48 = vrot.slane %v7350_v0, %v7102_v63  ;;  %v2416_v12 = vsel %vm59_vm2, %v7377_v58, -inf  ;;  %v2125_v36 = vrot.slane %v1779_v3, %v7102_v63 }
 0x363   :  { %v2250_v33 = vmul.f32 0.2, %v2186_v22  ;;  %v2407_v29 = vsel %vm59_vm2, %v7368_v2, -inf  ;;  %vm2218_vm11 = vcmp.gt.f32.partialorder %v2186_v22, 0.0  ;;  %v2256_v61 = vmul.f32 0.2, %v2192_v10 }
 0x364   :  { %v1977_v19 = vpop.permute.xlu1 %1976  ;;  %2408 = vmax.xlane.f32.xlu1 %v2407_v29  ;;  %v1935_v26 = vpop.permute.xlu0 %1934  ;;  %vm2224_vm12 = vcmp.gt.f32.partialorder %v2192_v10, 0.0  ;;  %v1780_v44 = vcombine.high %v7350_v0, %v7350_v0  ;;  %v2255_v46 = vmul.f32 0.2, %v2191_v11  ;;  %vm2223_vm14 = vcmp.gt.f32.partialorder %v2191_v11, 0.0 }
 0x365   :  { %v2193_v17 = vadd.f32 %v2117_v31, %v1977_v19  ;;  %v2187_v5 = vadd.f32 %v2093_v60, %v1935_v26  ;;  %v2282_v59 = vsel %vm2218_vm11, %v2186_v22, %v2250_v33  ;;  %v7394_v31 = vsel %vm2299_vm9, %v2285_v38, -1e+30 }
 0x366   :  { %v7385_v56 = vsel %vm2299_vm9, %v2282_v59, -1e+30  ;;  %v2288_v33 = vsel %vm2224_vm12, %v2192_v10, %v2256_v61  ;;  %v2129_v38 = vrot.slane %v1780_v44, %v7102_v63  ;;  %v7404_v59 = vld [vmem:[%s8743_s1 + $0x30] sm:$0xff] }
 0x367   :  { %v2251_v42 = vmul.f32 0.2, %v2187_v5  ;;  %v2410_v1 = vsel %vm59_vm2, %v7385_v56, -inf  ;;  %vm2219_vm13 = vcmp.gt.f32.partialorder %v2187_v5, 0.0  ;;  %v2257_v22 = vmul.f32 0.2, %v2193_v17 }
 0x368   :  { %v1984_v30 = vpop.permute.xlu1 %1983  ;;  %2417 = vmax.xlane.f32.xlu1 %v2416_v12  ;;  %2411 = vmax.xlane.f32.xlu0 %v2410_v1  ;;  %v1956_v60 = vpop.permute.xlu0 %1955  ;;  %vm2225_vm15 = vcmp.gt.f32.partialorder %v2193_v17, 0.0  ;;  %vm2300_vm1 = vcmp.gt.f32.partialorder %v7404_v59, 0.0  ;;  %v1781_v12 = vcombine.high %v1779_v3, %v1779_v3 }
 0x369   :  { %v2194_v29 = vadd.f32 %v2121_v48, %v1984_v30  ;;  %v2190_v19 = vadd.f32 %v2105_v6, %v1956_v60  ;;  %v2283_v0 = vsel %vm2219_vm13, %v2187_v5, %v2251_v42  ;;  %v2419_v6 = vsel %vm59_vm2, %v7394_v31, -inf }
 0x36a   :  { %v7398_v26 = vsel %vm2299_vm9, %v2283_v0, -1e+30  ;;  %v7413_v5 = vsel %vm2300_vm1, %v2288_v33, -1e+30  ;;  %v2289_v44 = vsel %vm2225_vm15, %v2193_v17, %v2257_v22  ;;  %v2287_v42 = vsel %vm2223_vm14, %v2191_v11, %v2255_v46  ;;  %v7436_v22 = vld [vmem:[%s8743_s1 + $0x38] sm:$0xff] }
 0x36b   :  { %v2254_v10 = vmul.f32 0.2, %v2190_v19  ;;  %v2413_v61 = vsel %vm59_vm2, %v7398_v26, -inf  ;;  %vm2222_vm3 = vcmp.gt.f32.partialorder %v2190_v19, 0.0  ;;  %v2258_v3 = vmul.f32 0.2, %v2194_v29 }
 0x36c   :  { %v1991_v21 = vpop.permute.xlu1 %1990  ;;  %2420 = vmax.xlane.f32.xlu1 %v2419_v6  ;;  %2414 = vmax.xlane.f32.xlu0 %v2413_v61  ;;  %v1998_v48 = vpop.permute.xlu0 %1997  ;;  %vm2226_vm4 = vcmp.gt.f32.partialorder %v2194_v29, 0.0  ;;  %v2428_v6 = vsel %vm59_vm2, %v7413_v5, -inf  ;;  %v2133_v17 = vrot.slane %v1781_v12, %v7102_v63  ;;  %v7431_v46 = vsel %vm2300_vm1, %v2287_v42, -1e+30 }
 0x36d   :  { %v2195_v1 = vadd.f32 %v2125_v36, %v1991_v21  ;;  %v2196_v30 = vadd.f32 %v2129_v38, %v1998_v48  ;;  %v2286_v60 = vsel %vm2222_vm3, %v2190_v19, %v2254_v10  ;;  %v7427_v36 = vsel %vm2300_vm1, %v2289_v44, -1e+30 }
 0x36e   :  { %v7418_v0 = vsel %vm2300_vm1, %v2286_v60, -1e+30  ;;  %vm2301_vm5 = vcmp.gt.f32.partialorder %v7436_v22, 0.0  ;;  %v2290_v38 = vsel %vm2226_vm4, %v2194_v29, %v2258_v3  ;;  %v2431_v10 = vsel %vm59_vm2, %v7427_v36, -inf }
 0x36f   :  { %v2260_v57 = vmul.f32 0.2, %v2196_v30  ;;  %v2422_v33 = vsel %vm59_vm2, %v7418_v0, -inf  ;;  %vm2228_vm6 = vcmp.gt.f32.partialorder %v2196_v30, 0.0  ;;  %v2259_v63 = vmul.f32 0.2, %v2195_v1 }
 0x370   :  { %2429 = vmax.xlane.f32.xlu1 %v2428_v6  ;;  %2423 = vmax.xlane.f32.xlu0 %v2422_v33  ;;  %v2005_v11 = vpop.permute.xlu0 %2004  ;;  %vm2227_vm7 = vcmp.gt.f32.partialorder %v2195_v1, 0.0  ;;  %v2425_v61 = vsel %vm59_vm2, %v7431_v46, -inf  ;;  %v7445_v21 = vsel %vm2301_vm5, %v2290_v38, -1e+30 }
 0x371   :  { %v2197_v19 = vadd.f32 %v2133_v17, %v2005_v11  ;;  %v2292_v12 = vsel %vm2228_vm6, %v2196_v30, %v2260_v57  ;;  %v2291_v29 = vsel %vm2227_vm7, %v2195_v1, %v2259_v63  ;;  %v2434_v57 = vsel %vm59_vm2, %v7445_v21, -inf }
 0x372   :  { %v7449_v48 = vsel %vm2301_vm5, %v2292_v12, -1e+30  ;;  %v7457_v3 = vsel %vm2301_vm5, %v2291_v29, -1e+30 }
 0x373   :  { %v2261_v44 = vmul.f32 0.2, %v2197_v19  ;;  %vm2229_vm8 = vcmp.gt.f32.partialorder %v2197_v19, 0.0  ;;  %v2440_v42 = vsel %vm59_vm2, %v7449_v48, -inf  ;;  %v2437_v60 = vsel %vm59_vm2, %v7457_v3, -inf }
 0x374   :  { %2432 = vmax.xlane.f32.xlu1 %v2431_v10  ;;  %2426 = vmax.xlane.f32.xlu0 %v2425_v61 }
 0x375   :  { %v2293_v30 = vsel %vm2229_vm8, %v2197_v19, %v2261_v44 }
 0x376   :  { %v7463_v1 = vsel %vm2301_vm5, %v2293_v30, -1e+30 }
 0x377   :  { %v2443_v6 = vsel %vm59_vm2, %v7463_v1, -inf }
 0x378   :  { %2435 = vmax.xlane.f32.xlu0 %v2434_v57  ;;  %2441 = vmax.xlane.f32.xlu1 %v2440_v42 }
 0x37c   :  { %2438 = vmax.xlane.f32.xlu0 %v2437_v60 }
 0x380   :  { %2444 = vmax.xlane.f32.xlu0 %v2443_v6 }
 0x3c1   :  { %v2355_v33 = vpop.xlane.xlu1 %2354  ;;  %v2352_v17 = vpop.xlane.xlu0 %2351 }
 0x3c2   :  { %v2447_v11 = vsub.f32 %v7164_v8, %v2355_v33  ;;  %v2446_v63 = vsub.f32 %v7168_v9, %v2352_v17 }
 0x3c4   :  { %v2480_v38 = vmul.f32 1.442695, %v2447_v11  ;;  %v2478_v19 = vmul.f32 1.442695, %v2446_v63 }
 0x3c5   :  { %v2358_v12 = vpop.xlane.xlu1 %2357 }
 0x3c6   :  { %6447 = vpow2.f32 %v2480_v38  ;;  %v2448_v10 = vsub.f32 %v7183_v55, %v2358_v12 }
 0x3c7   :  { %6449 = vpow2.f32 %v2478_v19 }
 0x3c8   :  { %v2482_v61 = vmul.f32 1.442695, %v2448_v10 }
 0x3c9   :  { %v2364_v44 = vpop.xlane.xlu1 %2363  ;;  %v2361_v29 = vpop.xlane.xlu0 %2360 }
 0x3ca   :  { %6451 = vpow2.f32 %v2482_v61  ;;  %v2450_v57 = vsub.f32 %v7194_v37, %v2364_v44  ;;  %v2449_v42 = vsub.f32 %v7198_v62, %v2361_v29  ;;  %v6657_v37 = vld [vmem:[%s8743_s1] sm:$0xff] }
 0x3cc   :  { %v2486_v30 = vmul.f32 1.442695, %v2450_v57  ;;  %v2484_v60 = vmul.f32 1.442695, %v2449_v42 }
 0x3cd   :  { %v2370_v8 = vpop.xlane.xlu1 %2369  ;;  %v2367_v6 = vpop.xlane.xlu0 %2366 }
 0x3ce   :  { %6453 = vpow2.f32 %v2486_v30  ;;  %v2452_v9 = vsub.f32 %v7210_v7, %v2370_v8  ;;  %v2451_v33 = vsub.f32 %v7214_v34, %v2367_v6 }
 0x3cf   :  { %6455 = vpow2.f32 %v2484_v60 }
 0x3d0   :  { %v6448_v55 = vpop.eup %6447  ;;  %v2490_v17 = vmul.f32 1.442695, %v2452_v9  ;;  %v2488_v11 = vmul.f32 1.442695, %v2451_v33  ;;  %v6658_v33 = vld [vmem:[%s8743_s1 + $0x8] sm:$0xff] }
 0x3d1   :  { %v6450_v63 = vpop.eup %6449  ;;  %v2376_v38 = vpop.xlane.xlu1 %2375  ;;  %v7477_v62 = vmul.f32 %v6657_v37, %v6448_v55 }
 0x3d2   :  { %v2373_v19 = vpop.xlane.xlu0 %2372  ;;  %6457 = vpow2.f32 %v2490_v17  ;;  %v2454_v12 = vsub.f32 %v7233_v25, %v2376_v38  ;;  %v7481_v10 = vmul.f32 %v6657_v37, %v6450_v63 }
 0x3d3   :  { %v2453_v7 = vsub.f32 %v7229_v4, %v2373_v19  ;;  %6459 = vpow2.f32 %v2488_v11  ;;  %v2577_v34 = vsel %vm59_vm2, %v7477_v62, 0.0 }
 0x3d4   :  { %v6452_v61 = vpop.eup %6451  ;;  %v2494_v44 = vmul.f32 1.442695, %v2454_v12  ;;  %2578 = vadd.xlane.f32.xlu0 %v2577_v34  ;;  %v2574_v57 = vsel %vm59_vm2, %v7481_v10, 0.0 }
 0x3d5   :  { %v2492_v29 = vmul.f32 1.442695, %v2453_v7  ;;  %2575 = vadd.xlane.f32.xlu1 %v2574_v57  ;;  %v7487_v30 = vmul.f32 %v6657_v37, %v6452_v61 }
 0x3d6   :  { %v2379_v42 = vpop.xlane.xlu0 %2378  ;;  %6461 = vpow2.f32 %v2494_v44 }
 0x3d7   :  { %v2455_v4 = vsub.f32 %v7244_v52, %v2379_v42  ;;  %6463 = vpow2.f32 %v2492_v29  ;;  %v2580_v25 = vsel %vm59_vm2, %v7487_v30, 0.0 }
 0x3d8   :  { %v6454_v60 = vpop.eup %6453 }
 0x3d9   :  { %v2496_v8 = vmul.f32 1.442695, %v2455_v4  ;;  %v6456_v6 = vpop.eup %6455  ;;  %2581 = vadd.xlane.f32.xlu1 %v2580_v25  ;;  %v2382_v9 = vpop.xlane.xlu1 %2381  ;;  %v7495_v55 = vmul.f32 %v6658_v33, %v6454_v60 }
 0x3da   :  { %v2456_v17 = vsub.f32 %v7263_v43, %v2382_v9  ;;  %v7498_v11 = vmul.f32 %v6657_v37, %v6456_v6 }
 0x3db   :  { %6465 = vpow2.f32 %v2496_v8  ;;  %v2586_v52 = vsel %vm59_vm2, %v7495_v55, 0.0 }
 0x3dc   :  { %v6458_v63 = vpop.eup %6457  ;;  %v2498_v38 = vmul.f32 1.442695, %v2456_v17  ;;  %v2583_v19 = vsel %vm59_vm2, %v7498_v11, 0.0 }
 0x3dd   :  { %v6460_v12 = vpop.eup %6459  ;;  %2587 = vadd.xlane.f32.xlu1 %v2586_v52  ;;  %2584 = vadd.xlane.f32.xlu0 %v2583_v19  ;;  %v2388_v7 = vpop.xlane.xlu1 %2387  ;;  %v7504_v61 = vmul.f32 %v6658_v33, %v6458_v63 }
 0x3de   :  { %v2385_v34 = vpop.xlane.xlu0 %2384  ;;  %6467 = vpow2.f32 %v2498_v38  ;;  %v2458_v43 = vsub.f32 %v7272_v40, %v2388_v7  ;;  %v7508_v44 = vmul.f32 %v6658_v33, %v6460_v12  ;;  %v6659_v40 = vld [vmem:[%s8743_s1 + $0x10] sm:$0xff] }
 0x3df   :  { %v2457_v37 = vsub.f32 %v7282_v49, %v2385_v34  ;;  %v2592_v29 = vsel %vm59_vm2, %v7504_v61, 0.0 }
 0x3e0   :  { %v6462_v57 = vpop.eup %6461  ;;  %v2502_v42 = vmul.f32 1.442695, %v2458_v43  ;;  %v2589_v25 = vsel %vm59_vm2, %v7508_v44, 0.0 }
 0x3e1   :  { %v2500_v4 = vmul.f32 1.442695, %v2457_v37  ;;  %v6464_v60 = vpop.eup %6463  ;;  %2593 = vadd.xlane.f32.xlu1 %v2592_v29  ;;  %2590 = vadd.xlane.f32.xlu0 %v2589_v25  ;;  %v2394_v8 = vpop.xlane.xlu1 %2393  ;;  %v7517_v49 = vmul.f32 %v6659_v40, %v6462_v57 }
 0x3e2   :  { %v2391_v6 = vpop.xlane.xlu0 %2390  ;;  %6469 = vpow2.f32 %v2502_v42  ;;  %v2460_v9 = vsub.f32 %v7292_v50, %v2394_v8  ;;  %v7521_v52 = vmul.f32 %v6658_v33, %v6464_v60 }
 0x3e3   :  { %v2459_v17 = vsub.f32 %v7305_v47, %v2391_v6  ;;  %6471 = vpow2.f32 %v2500_v4  ;;  %v2598_v63 = vsel %vm59_vm2, %v7517_v49, 0.0 }
 0x3e4   :  { %v2506_v19 = vmul.f32 1.442695, %v2460_v9  ;;  %v2595_v7 = vsel %vm59_vm2, %v7521_v52, 0.0 }
 0x3e5   :  { %v6466_v38 = vpop.eup %6465  ;;  %v2504_v12 = vmul.f32 1.442695, %v2459_v17  ;;  %2599 = vadd.xlane.f32.xlu1 %v2598_v63  ;;  %2596 = vadd.xlane.f32.xlu0 %v2595_v7  ;;  %v2400_v34 = vpop.xlane.xlu1 %2399  ;;  %v6660_v17 = vld [vmem:[%s8743_s1 + $0x18] sm:$0xff] }
 0x3e6   :  { %v2397_v43 = vpop.xlane.xlu0 %2396  ;;  %v7527_v37 = vmul.f32 %v6659_v40, %v6466_v38  ;;  %6473 = vpow2.f32 %v2506_v19  ;;  %v2462_v50 = vsub.f32 %v7328_v53, %v2400_v34 }
 0x3e7   :  { %v2461_v47 = vsub.f32 %v7316_v15, %v2397_v43  ;;  %6475 = vpow2.f32 %v2504_v12 }
 0x3e8   :  { %v2601_v33 = vsel %vm59_vm2, %v7527_v37, 0.0  ;;  %v6468_v29 = vpop.eup %6467  ;;  %v2510_v57 = vmul.f32 1.442695, %v2462_v50 }
 0x3e9   :  { %v2508_v42 = vmul.f32 1.442695, %v2461_v47  ;;  %2602 = vadd.xlane.f32.xlu0 %v2601_v33  ;;  %v7533_v25 = vmul.f32 %v6659_v40, %v6468_v29 }
 0x3ea   :  { %v2403_v4 = vpop.xlane.xlu0 %2402  ;;  %6477 = vpow2.f32 %v2510_v57 }
 0x3eb   :  { %v2463_v60 = vsub.f32 %v7342_v14, %v2403_v4  ;;  %6479 = vpow2.f32 %v2508_v42  ;;  %v2604_v53 = vsel %vm59_vm2, %v7533_v25, 0.0 }
 0x3ec   :  { %v6470_v8 = vpop.eup %6469  ;;  %2605 = vadd.xlane.f32.xlu1 %v2604_v53 }
 0x3ed   :  { %v2512_v15 = vmul.f32 1.442695, %v2463_v60  ;;  %v6472_v6 = vpop.eup %6471  ;;  %v2406_v9 = vpop.xlane.xlu1 %2405  ;;  %v7541_v63 = vmul.f32 %v6660_v17, %v6470_v8  ;;  %v6661_v8 = vld [vmem:[%s8743_s1 + $0x20] sm:$0xff] }
 0x3ee   :  { %v2464_v38 = vsub.f32 %v7355_v13, %v2406_v9  ;;  %v7544_v19 = vmul.f32 %v6659_v40, %v6472_v6 }
 0x3ef   :  { %6481 = vpow2.f32 %v2512_v15  ;;  %v2610_v14 = vsel %vm59_vm2, %v7541_v63, 0.0 }
 0x3f0   :  { %v6474_v12 = vpop.eup %6473  ;;  %v2514_v7 = vmul.f32 1.442695, %v2464_v38  ;;  %2611 = vadd.xlane.f32.xlu1 %v2610_v14  ;;  %v2607_v34 = vsel %vm59_vm2, %v7544_v19, 0.0 }
 0x3f1   :  { %v6476_v43 = vpop.eup %6475  ;;  %2608 = vadd.xlane.f32.xlu0 %v2607_v34  ;;  %v2409_v50 = vpop.xlane.xlu1 %2408  ;;  %v7550_v47 = vmul.f32 %v6660_v17, %v6474_v12 }
 0x3f2   :  { %6483 = vpow2.f32 %v2514_v7  ;;  %v2465_v33 = vsub.f32 %v7368_v2, %v2409_v50  ;;  %v7553_v13 = vmul.f32 %v6660_v17, %v6476_v43 }
 0x3f3   :  { %v2616_v40 = vsel %vm59_vm2, %v7550_v47, 0.0 }
 0x3f4   :  { %v6478_v29 = vpop.eup %6477  ;;  %v2516_v57 = vmul.f32 1.442695, %v2465_v33  ;;  %2617 = vadd.xlane.f32.xlu1 %v2616_v40  ;;  %v2613_v42 = vsel %vm59_vm2, %v7553_v13, 0.0 }
 0x3f5   :  { %v6480_v4 = vpop.eup %6479  ;;  %2614 = vadd.xlane.f32.xlu0 %v2613_v42  ;;  %v2418_v60 = vpop.xlane.xlu1 %2417  ;;  %v7562_v2 = vmul.f32 %v6661_v8, %v6478_v29 }
 0x3f6   :  { %v2412_v53 = vpop.xlane.xlu0 %2411  ;;  %6485 = vpow2.f32 %v2516_v57  ;;  %v2468_v15 = vsub.f32 %v7377_v58, %v2418_v60  ;;  %v7566_v9 = vmul.f32 %v6660_v17, %v6480_v4 }
 0x3f7   :  { %v2466_v6 = vsub.f32 %v7385_v56, %v2412_v53  ;;  %v2622_v38 = vsel %vm59_vm2, %v7562_v2, 0.0 }
 0x3f8   :  { %v2522_v12 = vmul.f32 1.442695, %v2468_v15  ;;  %2623 = vadd.xlane.f32.xlu1 %v2622_v38  ;;  %v2619_v34 = vsel %vm59_vm2, %v7566_v9, 0.0 }
 0x3f9   :  { %v6482_v14 = vpop.eup %6481  ;;  %v2518_v7 = vmul.f32 1.442695, %v2466_v6  ;;  %2620 = vadd.xlane.f32.xlu0 %v2619_v34  ;;  %v2421_v43 = vpop.xlane.xlu1 %2420 }
 0x3fa   :  { %v2415_v50 = vpop.xlane.xlu0 %2414  ;;  %v7572_v33 = vmul.f32 %v6661_v8, %v6482_v14  ;;  %6487 = vpow2.f32 %v2522_v12  ;;  %v2469_v58 = vsub.f32 %v7394_v31, %v2421_v43 }
 0x3fb   :  { %v2467_v56 = vsub.f32 %v7398_v26, %v2415_v50  ;;  %6489 = vpow2.f32 %v2518_v7 }
 0x3fc   :  { %v2625_v17 = vsel %vm59_vm2, %v7572_v33, 0.0  ;;  %v6484_v40 = vpop.eup %6483  ;;  %v2524_v29 = vmul.f32 1.442695, %v2469_v58 }
 0x3fd   :  { %v2520_v57 = vmul.f32 1.442695, %v2467_v56  ;;  %2626 = vadd.xlane.f32.xlu0 %v2625_v17  ;;  %v2430_v42 = vpop.xlane.xlu1 %2429  ;;  %v7578_v60 = vmul.f32 %v6661_v8, %v6484_v40 }
 0x3fe   :  { %v2424_v4 = vpop.xlane.xlu0 %2423  ;;  %6491 = vpow2.f32 %v2524_v29  ;;  %v2472_v53 = vsub.f32 %v7413_v5, %v2430_v42 }
 0x3ff   :  { %v2470_v15 = vsub.f32 %v7418_v0, %v2424_v4  ;;  %6493 = vpow2.f32 %v2520_v57  ;;  %v2628_v31 = vsel %vm59_vm2, %v7578_v60, 0.0 }
 0x400   :  { %v6486_v26 = vpop.eup %6485  ;;  %v2530_v6 = vmul.f32 1.442695, %v2472_v53  ;;  %2629 = vadd.xlane.f32.xlu1 %v2628_v31 }
 0x401   :  { %v2526_v38 = vmul.f32 1.442695, %v2470_v15  ;;  %v2433_v14 = vpop.xlane.xlu1 %2432  ;;  %v7584_v7 = vmul.f32 %v6661_v8, %v6486_v26  ;;  %v6662_v8 = vld [vmem:[%s8743_s1 + $0x28] sm:$0xff]  ;;  %s6685_s1 = smov 32  }
 0x402   :  { %v2427_v12 = vpop.xlane.xlu0 %2426  ;;  %6495 = vpow2.f32 %v2530_v6  ;;  %v2473_v34 = vsub.f32 %v7427_v36, %v2433_v14 }
 0x403   :  { %v2471_v43 = vsub.f32 %v7431_v46, %v2427_v12  ;;  %6497 = vpow2.f32 %v2526_v38  ;;  %v2631_v5 = vsel %vm59_vm2, %v7584_v7, 0.0 }
 0x404   :  { %v6488_v0 = vpop.eup %6487  ;;  %v2532_v50 = vmul.f32 1.442695, %v2473_v34  ;;  %2632 = vadd.xlane.f32.xlu1 %v2631_v5 }
 0x405   :  { %v2528_v58 = vmul.f32 1.442695, %v2471_v43  ;;  %v6490_v56 = vpop.eup %6489  ;;  %v2442_v17 = vpop.xlane.xlu1 %2441  ;;  %v7593_v29 = vmul.f32 %v6662_v8, %v6488_v0 }
 0x406   :  { %v2436_v40 = vpop.xlane.xlu0 %2435  ;;  %6499 = vpow2.f32 %v2532_v50  ;;  %v2476_v36 = vsub.f32 %v7449_v48, %v2442_v17  ;;  %v7597_v57 = vmul.f32 %v6662_v8, %v6490_v56 }
 0x407   :  { %v2474_v46 = vsub.f32 %v7445_v21, %v2436_v40  ;;  %6501 = vpow2.f32 %v2528_v58  ;;  %v2640_v42 = vsel %vm59_vm2, %v7593_v29, 0.0 }
 0x408   :  { %v6492_v4 = vpop.eup %6491  ;;  %v2538_v53 = vmul.f32 1.442695, %v2476_v36  ;;  %2641 = vadd.xlane.f32.xlu1 %v2640_v42  ;;  %v2634_v31 = vsel %vm59_vm2, %v7597_v57, 0.0 }
 0x409   :  { %v2534_v15 = vmul.f32 1.442695, %v2474_v46  ;;  %v6494_v26 = vpop.eup %6493  ;;  %2635 = vadd.xlane.f32.xlu0 %v2634_v31  ;;  %v7603_v38 = vmul.f32 %v6662_v8, %v6492_v4 }
 0x40a   :  { %v2439_v6 = vpop.xlane.xlu0 %2438  ;;  %6503 = vpow2.f32 %v2538_v53  ;;  %v7606_v48 = vmul.f32 %v6662_v8, %v6494_v26 }
 0x40b   :  { %v2475_v21 = vsub.f32 %v7457_v3, %v2439_v6  ;;  %6505 = vpow2.f32 %v2534_v15  ;;  %v2643_v14 = vsel %vm59_vm2, %v7603_v38, 0.0 }
 0x40c   :  { %v6496_v12 = vpop.eup %6495  ;;  %2644 = vadd.xlane.f32.xlu1 %v2643_v14  ;;  %v2637_v43 = vsel %vm59_vm2, %v7606_v48, 0.0 }
 0x40d   :  { %v2536_v34 = vmul.f32 1.442695, %v2475_v21  ;;  %v6498_v5 = vpop.eup %6497  ;;  %2638 = vadd.xlane.f32.xlu0 %v2637_v43  ;;  %v7613_v50 = vmul.f32 %v7404_v59, %v6496_v12 }
 0x40e   :  { %v2445_v0 = vpop.xlane.xlu0 %2444  ;;  %v7617_v58 = vmul.f32 %v7404_v59, %v6498_v5 }
 0x40f   :  { %6507 = vpow2.f32 %v2536_v34  ;;  %v2477_v3 = vsub.f32 %v7463_v1, %v2445_v0  ;;  %v2652_v56 = vsel %vm59_vm2, %v7613_v50, 0.0  ;;  %v116_v0 = vrot.slane %v6928_v16, 4 }
 0x410   :  { %v6500_v17 = vpop.eup %6499  ;;  %2653 = vadd.xlane.f32.xlu1 %v2652_v56  ;;  %v2646_v8 = vsel %vm59_vm2, %v7617_v58, 0.0 }
 0x411   :  { %v2540_v40 = vmul.f32 1.442695, %v2477_v3  ;;  %v6502_v36 = vpop.eup %6501  ;;  %2647 = vadd.xlane.f32.xlu0 %v2646_v8  ;;  %v7624_v46 = vmul.f32 %v7404_v59, %v6500_v17  ;;  %v117_v3 = vadd.f32 %v116_v0, %v6928_v16  ;;  %v122_v17 = vrot.slane %v6967_v24, 4 }
 0x412   :  { %v7627_v1 = vmul.f32 %v7404_v59, %v6502_v36 }
 0x413   :  { %6509 = vpow2.f32 %v2540_v40  ;;  %v2655_v42 = vsel %vm59_vm2, %v7624_v46, 0.0  ;;  %v118_v56 = vrot.slane %v117_v3, 2  ;;  %v123_v8 = vadd.f32 %v122_v17, %v6967_v24 }
 0x414   :  { %v6504_v4 = vpop.eup %6503  ;;  %2656 = vadd.xlane.f32.xlu1 %v2655_v42  ;;  %v2649_v53 = vsel %vm59_vm2, %v7627_v1, 0.0 }
 0x415   :  { %v6506_v15 = vpop.eup %6505  ;;  %2650 = vadd.xlane.f32.xlu0 %v2649_v53  ;;  %v7634_v31 = vmul.f32 %v7436_v22, %v6504_v4  ;;  %v119_v40 = vadd.f32 %v118_v56, %v117_v3  ;;  %v124_v42 = vrot.slane %v123_v8, 2 }
 0x416   :  { %v7637_v26 = vmul.f32 %v7436_v22, %v6506_v15 }
 0x417   :  { %v2664_v59 = vsel %vm59_vm2, %v7634_v31, 0.0  ;;  %v120_v36 = vrot.slane %v119_v40, 1  ;;  %v125_v53 = vadd.f32 %v124_v42, %v123_v8 }
 0x418   :  { %2665 = vadd.xlane.f32.xlu1 %v2664_v59  ;;  %v2658_v21 = vsel %vm59_vm2, %v7637_v26, 0.0  ;;  %v128_v59 = vrot.slane %v6938_v18, 4 }
 0x419   :  { %v6508_v6 = vpop.eup %6507  ;;  %2659 = vadd.xlane.f32.xlu0 %v2658_v21  ;;  %v121_v4 = vadd.f32 %v120_v36, %v119_v40  ;;  %v126_v15 = vrot.slane %v125_v53, 1 }
 0x41a   :  { %v7644_v14 = vmul.f32 %v7436_v22, %v6508_v6  ;;  %v134_v6 = vrot.slane %v6948_v20, 4 }
 0x41b   :  { %vm164_vm12 = vcmp.gt.f32.partialorder %v121_v4, 0.0 }
 0x41c   :  { %v2661_v12 = vsel %vm59_vm2, %v7644_v14, 0.0  ;;  %v135_v0 = vadd.f32 %v134_v6, %v6948_v20 }
 0x41d   :  { %v6510_v34 = vpop.eup %6509  ;;  %2662 = vadd.xlane.f32.xlu0 %v2661_v12  ;;  %v7659_v12 = vadd.f32 %v126_v15, %v125_v53 }
 0x41e   :  { %v7649_v43 = vmul.f32 %v7436_v22, %v6510_v34  ;;  %v172_v22 = vmax.f32 %v121_v4, 1.0  ;;  %v129_v34 = vadd.f32 %v128_v59, %v6938_v18  ;;  %v136_v8 = vrot.slane %v135_v0, 2 }
 0x41f   :  { %v173_v3 = vmax.f32 %v7659_v12, 1.0  ;;  %v140_v59 = vrot.slane %v6987_v28, 4  ;;  %vm165_vm5 = vcmp.gt.f32.partialorder %v7659_v12, 0.0 }
 0x420   :  { %8777 = vst [vmem:[#allocation10_spill] sm:$0xff] %v7649_v43  ;;  %v2667_v5 = vsel %vm59_vm2, %v7649_v43, 0.0  ;;  %6511 = vrcp.f32 %v172_v22  ;;  %v130_v17 = vrot.slane %v129_v34, 2  ;;  %v137_v20 = vadd.f32 %v136_v8, %v135_v0 }
 0x421   :  { %2668 = vadd.xlane.f32.xlu0 %v2667_v5 }
 0x422   :  { %v131_v18 = vadd.f32 %v130_v17, %v129_v34  ;;  %v138_v0 = vrot.slane %v137_v20, 1 }
 0x42a   :  { %v6512_v53 = vpop.eup %6511 }
 0x461   :  { %v2579_v21 = vpop.xlane.xlu0 %2578 }
 0x462   :  { %v2576_v16 = vpop.xlane.xlu1 %2575  ;;  %vm2671_vm9 = vcmp.gt.f32.partialorder %v2579_v21, 0.0 }
 0x463   :  { %vm2670_vm10 = vcmp.gt.f32.partialorder %v2576_v16, 0.0  ;;  %v2703_v24 = vsel %vm2671_vm9, %v2579_v21, 1.0  ;;  %v7665_v21 = vsel %vm164_vm12, %v6512_v53, 0.0 }
 0x464   :  { %v2702_v5 = vsel %vm2670_vm10, %v2576_v16, 1.0  ;;  %6513 = vrcp.f32 %v2703_v24 }
 0x465   :  { %6515 = vrcp.f32 %v2702_v5 }
 0x466   :  { %v2582_v56 = vpop.xlane.xlu1 %2581 }
 0x467   :  { %vm2672_vm11 = vcmp.gt.f32.partialorder %v2582_v56, 0.0 }
 0x468   :  { %v2704_v40 = vsel %vm2672_vm11, %v2582_v56, 1.0 }
 0x469   :  { %6517 = vrcp.f32 %v2704_v40  ;;  %v141_v40 = vadd.f32 %v140_v59, %v6987_v28 }
 0x46a   :  { %6519 = vrcp.f32 %v173_v3  ;;  %v2588_v36 = vpop.xlane.xlu1 %2587  ;;  %v2585_v42 = vpop.xlane.xlu0 %2584  ;;  %v132_v3 = vrot.slane %v131_v18, 1 }
 0x46b   :  { %vm2674_vm13 = vcmp.gt.f32.partialorder %v2588_v36, 0.0  ;;  %vm2673_vm14 = vcmp.gt.f32.partialorder %v2585_v42, 0.0 }
 0x46c   :  { %v2706_v22 = vsel %vm2674_vm13, %v2588_v36, 1.0  ;;  %v2705_v15 = vsel %vm2673_vm14, %v2585_v42, 1.0  ;;  %v7673_v43 = vadd.f32 %v132_v3, %v131_v18 }
 0x46d   :  { %6521 = vrcp.f32 %v2706_v22 }
 0x46e   :  { %v6514_v6 = vpop.eup %6513  ;;  %6523 = vrcp.f32 %v2705_v15  ;;  %v2594_v16 = vpop.xlane.xlu1 %2593  ;;  %vm166_vm12 = vcmp.gt.f32.partialorder %v7673_v43, 0.0 }
 0x46f   :  { %v2591_v24 = vpop.xlane.xlu0 %2590  ;;  %v6516_v5 = vpop.eup %6515  ;;  %vm2676_vm15 = vcmp.gt.f32.partialorder %v2594_v16, 0.0  ;;  %v2767_v4 = vmul.f32 %v6514_v6, %v7477_v62  ;;  %v7678_v6 = vadd.f32 %v138_v0, %v137_v20 }
 0x470   :  { %vm2675_vm1 = vcmp.gt.f32.partialorder %v2591_v24, 0.0  ;;  %v2708_v34 = vsel %vm2676_vm15, %v2594_v16, 1.0  ;;  %v2766_v17 = vmul.f32 %v6516_v5, %v7481_v10  ;;  %v142_v16 = vrot.slane %v141_v40, 2 }
 0x471   :  { %v2707_v56 = vsel %vm2675_vm1, %v2591_v24, 1.0  ;;  %6525 = vrcp.f32 %v2708_v34  ;;  %v2799_v8 = vmul.f32 %v2767_v4, %v7057_v35  ;;  %v2831_v24 = vmul.f32 %v2767_v4, %v7665_v21 }
 0x472   :  { %6527 = vrcp.f32 %v2707_v56  ;;  %v2600_v36 = vpop.xlane.xlu1 %2599  ;;  %v2830_v53 = vmul.f32 %v2766_v17, %v7665_v21  ;;  %v2798_v22 = vmul.f32 %v2766_v17, %v7057_v35  ;;  %v174_v34 = vmax.f32 %v7673_v43, 1.0  ;;  %v8778_v43 = vld [vmem:[#allocation2_spill] sm:$0xff] }
 0x473   :  { %v2597_v42 = vpop.xlane.xlu0 %2596  ;;  %v6518_v15 = vpop.eup %6517  ;;  %vm2678_vm3 = vcmp.gt.f32.partialorder %v2600_v36, 0.0  ;;  %v146_v56 = vrot.slane %v6963_v23, 4  ;;  %v175_v4 = vmax.f32 %v7678_v6, 1.0  ;;  %v143_v0 = vadd.f32 %v142_v16, %v141_v40 }
 0x474   :  { %vm2677_vm4 = vcmp.gt.f32.partialorder %v2597_v42, 0.0  ;;  %v6520_v62 = vpop.eup %6519  ;;  %v2710_v10 = vsel %vm2678_vm3, %v2600_v36, 1.0  ;;  %3729 = vxpose.xlu1.b32.start [1/4] (short) (narrow) %v2830_v53, 16  ;;  %6046 = vmatprep.mubr.msk.f32.mxu1 %vm59_vm2, %v2798_v22  ;;  %v2768_v59 = vmul.f32 %v6518_v15, %v7487_v30  ;;  %vm167_vm14 = vcmp.gt.f32.partialorder %v7678_v6, 0.0 }
 0x475   :  { %v2709_v28 = vsel %vm2677_vm4, %v2597_v42, 1.0  ;;  %6529 = vrcp.f32 %v2710_v10  ;;  %6047 = vmatmul.mubr.msk.f32.vlgmr.msra.gmra.mrb[16].mxu1 %vm59_vm2, %v2799_v8  ;;  %v7687_v30 = vsel %vm165_vm5, %v6520_v62, 0.0  ;;  %v147_v10 = vadd.f32 %v146_v56, %v6963_v23 }
 0x476   :  { %6531 = vrcp.f32 %v2709_v28  ;;  %6281 = vmatpush3.bf16.msra.mxu1 %v6861_v39  ;;  %v2800_v5 = vmul.f32 %v2768_v59, %v7057_v35  ;;  %v2832_v42 = vmul.f32 %v2768_v59, %v7665_v21  ;;  %v144_v59 = vrot.slane %v143_v0, 1 }
 0x477   :  { %v2603_v18 = vpop.xlane.xlu0 %2602  ;;  %v6522_v3 = vpop.eup %6521  ;;  %6283 = vmatprep.subr.bf16.mxu1 %v6870_v45  ;;  %v152_v56 = vrot.slane %v6998_v32, 4 }
 0x478   :  { %vm2679_vm6 = vcmp.gt.f32.partialorder %v2603_v18, 0.0  ;;  %v6524_v20 = vpop.eup %6523  ;;  %3730 = vxpose.xlu1.b32.cont [2/4] (short) (narrow) %v2831_v24, 16  ;;  %6049 = vmatprep.mubr.msk.f32.mxu1 %vm59_vm2, %v2800_v5  ;;  %v2770_v39 = vmul.f32 %v6522_v3, %v7495_v55 }
 0x479   :  { %v2711_v17 = vsel %vm2679_vm6, %v2603_v18, 1.0  ;;  %v2606_v8 = vpop.xlane.xlu1 %2605  ;;  %v2769_v12 = vmul.f32 %v6524_v20, %v7498_v11 }
 0x47a   :  { %6533 = vrcp.f32 %v2711_v17  ;;  %vm2680_vm7 = vcmp.gt.f32.partialorder %v2606_v8, 0.0  ;;  %v2834_v36 = vmul.f32 %v2770_v39, %v7687_v30  ;;  %v2802_v53 = vmul.f32 %v2770_v39, %v7060_v41 }
 0x47b   :  { %v6526_v22 = vpop.eup %6525  ;;  %6535 = vrcp.f32 %v174_v34  ;;  %v2712_v15 = vsel %vm2680_vm7, %v2606_v8, 1.0  ;;  %v2801_v62 = vmul.f32 %v2769_v12, %v7057_v35  ;;  %v2833_v35 = vmul.f32 %v2769_v12, %v7665_v21 }
 0x47c   :  { %v6528_v55 = vpop.eup %6527  ;;  %6537 = vrcp.f32 %v2712_v15  ;;  %3842 = vxpose.xlu0.b32.start [1/4] (short) (narrow) %v2834_v36, 16  ;;  %3731 = vxpose.xlu1.b32.cont [3/4] (short) (narrow) %v2832_v42, 16  ;;  %v2772_v11 = vmul.f32 %v6526_v22, %v7504_v61  ;;  %v148_v34 = vrot.slane %v147_v10, 2  ;;  %v7712_v39 = vadd.f32 %v144_v59, %v143_v0 }
 0x47d   :  { %6539 = vrcp.f32 %v175_v4  ;;  %6050 = vmatmul.mubr.msk.f32.gmra.mrb[18].mxu1 %vm59_vm2, %v2801_v62  ;;  %v2612_v40 = vpop.xlane.xlu1 %2611  ;;  %v2771_v28 = vmul.f32 %v6528_v55, %v7508_v44  ;;  %v158_v22 = vrot.slane %v6983_v27, 4  ;;  %v153_v15 = vadd.f32 %v152_v56, %v6998_v32 }
 0x47e   :  { %6056 = vmatprep.mubr.msk.f32.mxu1 %vm59_vm2, %v2802_v53  ;;  %vm2682_vm8 = vcmp.gt.f32.partialorder %v2612_v40, 0.0  ;;  %v2609_v16 = vpop.xlane.xlu0 %2608  ;;  %v2804_v23 = vmul.f32 %v2772_v11, %v7060_v41  ;;  %v2836_v36 = vmul.f32 %v2772_v11, %v7687_v30  ;;  %vm168_vm5 = vcmp.gt.f32.partialorder %v7712_v39, 0.0 }
 0x47f   :  { %v6530_v18 = vpop.eup %6529  ;;  %v2714_v24 = vsel %vm2682_vm8, %v2612_v40, 1.0  ;;  %vm2681_vm9 = vcmp.gt.f32.partialorder %v2609_v16, 0.0  ;;  %v2835_v61 = vmul.f32 %v2771_v28, %v7687_v30  ;;  %v2803_v5 = vmul.f32 %v2771_v28, %v7060_v41 }
 0x480   :  { %v6532_v3 = vpop.eup %6531  ;;  %6541 = vrcp.f32 %v2714_v24  ;;  %v2713_v44 = vsel %vm2681_vm9, %v2609_v16, 1.0  ;;  %3732 = vxpose.xlu1.b32.end [4/4] (short) (narrow) %v2833_v35, 16  ;;  %v2774_v20 = vmul.f32 %v6530_v18, %v7517_v49 }
 0x481   :  { %6543 = vrcp.f32 %v2713_v44  ;;  %3843 = vxpose.xlu0.b32.cont [2/4] (short) (narrow) %v2835_v61, 16  ;;  %6057 = vmatmul.mubr.msk.f32.vlgmr.msra.gmra.mrb[20].mxu1 %vm59_vm2, %v2803_v5  ;;  %v2618_v21 = vpop.xlane.xlu1 %2617  ;;  %v2773_v17 = vmul.f32 %v6532_v3, %v7521_v52  ;;  %v149_v52 = vadd.f32 %v148_v34, %v147_v10 }
 0x482   :  { %6285 = vmatpush3.bf16.msra.mxu1 %v6870_v45  ;;  %6059 = vmatprep.mubr.msk.f32.mxu1 %vm59_vm2, %v2804_v23  ;;  %vm2684_vm10 = vcmp.gt.f32.partialorder %v2618_v21, 0.0  ;;  %v2615_v4 = vpop.xlane.xlu0 %2614  ;;  %v2806_v8 = vmul.f32 %v2774_v20, %v7063_v54  ;;  %v154_v23 = vrot.slane %v153_v15, 2 }
 0x483   :  { %6287 = vmatprep.subr.bf16.mxu1 %v6879_v51  ;;  %v2716_v12 = vsel %vm2684_vm10, %v2618_v21, 1.0  ;;  %vm2683_vm11 = vcmp.gt.f32.partialorder %v2615_v4, 0.0  ;;  %v2805_v42 = vmul.f32 %v2773_v17, %v7060_v41  ;;  %v176_v41 = vmax.f32 %v7712_v39, 1.0 }
 0x484   :  { %v6534_v49 = vpop.eup %6533  ;;  %6545 = vrcp.f32 %v2716_v12  ;;  %v2715_v45 = vsel %vm2683_vm11, %v2615_v4, 1.0  ;;  %v2837_v40 = vmul.f32 %v2773_v17, %v7687_v30  ;;  %v150_v59 = vrot.slane %v149_v52, 1  ;;  %v8779_v4 = vld [vmem:[#allocation5_spill] sm:$0xff] }
 0x485   :  { %v2775_v0 = vmul.f32 %v6534_v49, %v7527_v37  ;;  %v6536_v53 = vpop.eup %6535  ;;  %6547 = vrcp.f32 %v2715_v45  ;;  %3844 = vxpose.xlu0.b32.cont [3/4] (short) (narrow) %v2836_v36, 16  ;;  %6060 = vmatmul.mubr.msk.f32.gmra.mrb[22].mxu1 %vm59_vm2, %v2805_v42  ;;  %v2624_v62 = vpop.xlane.xlu1 %2623  ;;  %v155_v56 = vadd.f32 %v154_v23, %v153_v15 }
 0x486   :  { %v6538_v55 = vpop.eup %6537  ;;  %6066 = vmatprep.mubr.msk.f32.mxu1 %vm59_vm2, %v2806_v8  ;;  %vm2686_vm13 = vcmp.gt.f32.partialorder %v2624_v62, 0.0  ;;  %v2621_v37 = vpop.xlane.xlu0 %2620  ;;  %v7733_v35 = vsel %vm166_vm12, %v6536_v53, 0.0  ;;  %v7746_v34 = vadd.f32 %v150_v59, %v149_v52 }
 0x487   :  { %v2807_v10 = vmul.f32 %v2775_v0, %v7063_v54  ;;  %v6540_v11 = vpop.eup %6539  ;;  %v2718_v32 = vsel %vm2686_vm13, %v2624_v62, 1.0  ;;  %vm2685_vm15 = vcmp.gt.f32.partialorder %v2621_v37, 0.0  ;;  %v2776_v28 = vmul.f32 %v6538_v55, %v7533_v25 }
 0x488   :  { %6549 = vrcp.f32 %v2718_v32  ;;  %v2717_v16 = vsel %vm2685_vm15, %v2621_v37, 1.0  ;;  %v7740_v25 = vsel %vm167_vm14, %v6540_v11, 0.0  ;;  %v2838_v5 = vmul.f32 %v2774_v20, %v7733_v35 }
 0x489   :  { %6551 = vrcp.f32 %v2717_v16  ;;  %3845 = vxpose.xlu0.b32.end [4/4] (short) (narrow) %v2837_v40, 16  ;;  %6067 = vmatmul.mubr.msk.f32.vlgmr.msra.gmra.mrb[24].mxu1 %vm59_vm2, %v2807_v10  ;;  %v2808_v18 = vmul.f32 %v2776_v28, %v7063_v54  ;;  %v177_v42 = vmax.f32 %v7746_v34, 1.0  ;;  %v156_v45 = vrot.slane %v155_v56, 1  ;;  %v8780_v40 = vld [vmem:[#allocation6_spill] sm:$0xff] }
 0x48a   :  { %v6542_v24 = vpop.eup %6541  ;;  %6289 = vmatpush3.bf16.msra.mxu1 %v6879_v51  ;;  %v2627_v30 = vpop.xlane.xlu0 %2626  ;;  %6553 = vrcp.f32 %v176_v41  ;;  %v159_v51 = vadd.f32 %v158_v22, %v6983_v27  ;;  %v2839_v27 = vmul.f32 %v2775_v0, %v7733_v35  ;;  %vm169_vm12 = vcmp.gt.f32.partialorder %v7746_v34, 0.0 }
 0x48b   :  { %v6544_v61 = vpop.eup %6543  ;;  %6291 = vmatprep.subr.bf16.mxu1 %v8778_v43  ;;  %vm2687_vm1 = vcmp.gt.f32.partialorder %v2627_v30, 0.0  ;;  %6069 = vmatprep.mubr.msk.f32.mxu1 %vm59_vm2, %v2808_v18  ;;  %v2778_v3 = vmul.f32 %v6542_v24, %v7541_v63  ;;  %v7766_v11 = vadd.f32 %v156_v45, %v155_v56 }
 0x48c   :  { %v2719_v44 = vsel %vm2687_vm1, %v2627_v30, 1.0  ;;  %v2777_v6 = vmul.f32 %v6544_v61, %v7544_v19  ;;  %v160_v52 = vrot.slane %v159_v51, 2 }
 0x48d   :  { %6555 = vrcp.f32 %v2719_v44  ;;  %3955 = vxpose.xlu0.b32.start [1/4] (short) (narrow) %v2838_v5, 16  ;;  %v2630_v21 = vpop.xlane.xlu1 %2629  ;;  %v2842_v17 = vmul.f32 %v2778_v3, %v7740_v25  ;;  %v2810_v8 = vmul.f32 %v2778_v3, %v8779_v4  ;;  %v178_v3 = vmax.f32 %v7766_v11, 1.0 }
 0x48e   :  { %v6546_v20 = vpop.eup %6545  ;;  %vm2688_vm3 = vcmp.gt.f32.partialorder %v2630_v21, 0.0  ;;  %v2809_v49 = vmul.f32 %v2777_v6, %v7063_v54  ;;  %v161_v37 = vadd.f32 %v160_v52, %v159_v51  ;;  %v2841_v24 = vmul.f32 %v2777_v6, %v7733_v35 }
 0x48f   :  { %v6548_v63 = vpop.eup %6547  ;;  %v2720_v12 = vsel %vm2688_vm3, %v2630_v21, 1.0  ;;  %4068 = vxpose.xlu1.b32.start [1/4] (short) (narrow) %v2842_v17, 16  ;;  %v2780_v36 = vmul.f32 %v6546_v20, %v7550_v47  ;;  %vm170_vm3 = vcmp.gt.f32.partialorder %v7766_v11, 0.0  ;;  %v8783_v11 = vld [vmem:[#allocation4_spill] sm:$0xff] }
 0x490   :  { %6557 = vrcp.f32 %v2720_v12  ;;  %6070 = vmatmul.mubr.msk.f32.gmra.mrb[26].mxu1 %vm59_vm2, %v2809_v49  ;;  %v2779_v19 = vmul.f32 %v6548_v63, %v7553_v13  ;;  %v2840_v13 = vmul.f32 %v2776_v28, %v7733_v35  ;;  %v162_v5 = vrot.slane %v161_v37, 1 }
 0x491   :  { %3956 = vxpose.xlu0.b32.cont [2/4] (short) (narrow) %v2839_v27, 16  ;;  %6076 = vmatprep.mubr.msk.f32.mxu1 %vm59_vm2, %v2810_v8  ;;  %v2633_v54 = vpop.xlane.xlu1 %2632  ;;  %v2812_v47 = vmul.f32 %v2780_v36, %v8779_v4 }
 0x492   :  { %v6550_v53 = vpop.eup %6549  ;;  %vm2689_vm4 = vcmp.gt.f32.partialorder %v2633_v54, 0.0  ;;  %v2843_v22 = vmul.f32 %v2779_v19, %v7740_v25  ;;  %v2811_v0 = vmul.f32 %v2779_v19, %v8779_v4 }
 0x493   :  { %v6552_v15 = vpop.eup %6551  ;;  %v2721_v62 = vsel %vm2689_vm4, %v2633_v54, 1.0  ;;  %v2782_v55 = vmul.f32 %v6550_v53, %v7562_v2  ;;  %v8781_v2 = vld [vmem:[#allocation3_spill] sm:$0xff] }
 0x494   :  { %6559 = vrcp.f32 %v2721_v62  ;;  %4069 = vxpose.xlu1.b32.cont [2/4] (short) (narrow) %v2843_v22, 16  ;;  %6077 = vmatmul.mubr.msk.f32.vlgmr.msra.gmra.mrb[28].mxu1 %vm59_vm2, %v2811_v0  ;;  %v2781_v41 = vmul.f32 %v6552_v15, %v7566_v9  ;;  %v6554_v10 = vpop.eup %6553  ;;  %v2844_v9 = vmul.f32 %v2780_v36, %v7740_v25 }
 0x495   :  { %3957 = vxpose.xlu0.b32.cont [3/4] (short) (narrow) %v2840_v13, 16  ;;  %6293 = vmatpush3.bf16.msra.mxu1 %v8778_v43  ;;  %v2642_v32 = vpop.xlane.xlu1 %2641  ;;  %v2814_v59 = vmul.f32 %v2782_v55, %v8780_v40  ;;  %6561 = vrcp.f32 %v177_v42  ;;  %v7780_v43 = vsel %vm168_vm5, %v6554_v10, 0.0 }
 0x496   :  { %6079 = vmatprep.mubr.msk.f32.mxu1 %vm59_vm2, %v2812_v47  ;;  %6299 = vmatprep.subr.bf16.mxu1 %v8781_v2  ;;  %vm2692_vm6 = vcmp.gt.f32.partialorder %v2642_v32, 0.0  ;;  %v2636_v28 = vpop.xlane.xlu0 %2635  ;;  %v2813_v16 = vmul.f32 %v2781_v41, %v8779_v4  ;;  %v2845_v6 = vmul.f32 %v2781_v41, %v7740_v25  ;;  %v2846_v39 = vmul.f32 %v2782_v55, %v7780_v43  ;;  %v8782_v41 = vld [vmem:[#allocation7_spill] sm:$0xff] }
 0x497   :  { %v6556_v23 = vpop.eup %6555  ;;  %v2724_v18 = vsel %vm2692_vm6, %v2642_v32, 1.0  ;;  %vm2690_vm7 = vcmp.gt.f32.partialorder %v2636_v28, 0.0  ;;  %v7791_v25 = vadd.f32 %v162_v5, %v161_v37 }
 0x498   :  { %v2783_v30 = vmul.f32 %v6556_v23, %v7572_v33  ;;  %v2722_v61 = vsel %vm2690_vm7, %v2636_v28, 1.0  ;;  %4070 = vxpose.xlu1.b32.cont [3/4] (short) (narrow) %v2844_v9, 16  ;;  %6080 = vmatmul.mubr.msk.f32.gmra.mrb[30].mxu1 %vm59_vm2, %v2813_v16 }
 0x499   :  { %6563 = vrcp.f32 %v2722_v61  ;;  %3958 = vxpose.xlu0.b32.end [4/4] (short) (narrow) %v2841_v24, 16  ;;  %6086 = vmatprep.mubr.msk.f32.mxu1 %vm59_vm2, %v2814_v59  ;;  %v2645_v51 = vpop.xlane.xlu1 %2644  ;;  %v179_v52 = vmax.f32 %v7791_v25, 1.0  ;;  %vm171_vm6 = vcmp.gt.f32.partialorder %v7791_v25, 0.0 }
 0x49a   :  { %v6558_v44 = vpop.eup %6557  ;;  %v2815_v35 = vmul.f32 %v2783_v30, %v8780_v40  ;;  %6565 = vrcp.f32 %v2724_v18  ;;  %vm2693_vm8 = vcmp.gt.f32.partialorder %v2645_v51, 0.0  ;;  %v2639_v33 = vpop.xlane.xlu0 %2638 }
 0x49b   :  { %v2725_v56 = vsel %vm2693_vm8, %v2645_v51, 1.0  ;;  %vm2691_vm9 = vcmp.gt.f32.partialorder %v2639_v33, 0.0  ;;  %v2784_v21 = vmul.f32 %v6558_v44, %v7578_v60  ;;  %v2847_v60 = vmul.f32 %v2783_v30, %v7780_v43 }
 0x49c   :  { %6567 = vrcp.f32 %v2725_v56  ;;  %v2723_v17 = vsel %vm2691_vm9, %v2639_v33, 1.0  ;;  %4071 = vxpose.xlu1.b32.end [4/4] (short) (narrow) %v2845_v6, 16  ;;  %6087 = vmatmul.mubr.msk.f32.vlgmr.msra.gmra.mrb[32].mxu1 %vm59_vm2, %v2815_v35  ;;  %v8784_v35 = vld [vmem:[#allocation8_spill] sm:$0xff] }
 0x49d   :  { %6569 = vrcp.f32 %v2723_v17  ;;  %4181 = vxpose.xlu0.b32.start [1/4] (short) (narrow) %v2846_v39, 16  ;;  %6301 = vmatpush3.bf16.msra.mxu1 %v8781_v2  ;;  %v2654_v4 = vpop.xlane.xlu1 %2653  ;;  %v2816_v8 = vmul.f32 %v2784_v21, %v8780_v40  ;;  %v2848_v22 = vmul.f32 %v2784_v21, %v7780_v43 }
 0x49e   :  { %v6560_v20 = vpop.eup %6559  ;;  %6571 = vrcp.f32 %v178_v3  ;;  %vm2696_vm10 = vcmp.gt.f32.partialorder %v2654_v4, 0.0  ;;  %v2648_v49 = vpop.xlane.xlu0 %2647 }
 0x49f   :  { %v2728_v63 = vsel %vm2696_vm10, %v2654_v4, 1.0  ;;  %vm2694_vm11 = vcmp.gt.f32.partialorder %v2648_v49, 0.0  ;;  %6089 = vmatprep.mubr.msk.f32.mxu1 %vm59_vm2, %v2816_v8  ;;  %v2785_v12 = vmul.f32 %v6560_v20, %v7584_v7  ;;  %v6562_v27 = vpop.eup %6561 }
 0x4a0   :  { %v2726_v36 = vsel %vm2694_vm11, %v2648_v49, 1.0  ;;  %v193_v7 = vsel %vm169_vm12, %v6562_v27, 0.0  ;;  %v8785_v27 = vld [vmem:[#allocation9_spill] sm:$0xff] }
 0x4a1   :  { %6573 = vrcp.f32 %v2726_v36  ;;  %4182 = vxpose.xlu0.b32.cont [2/4] (short) (narrow) %v2847_v60, 16  ;;  %v2657_v19 = vpop.xlane.xlu1 %2656  ;;  %v2817_v42 = vmul.f32 %v2785_v12, %v8780_v40  ;;  %v2849_v40 = vmul.f32 %v2785_v12, %v7780_v43 }
 0x4a2   :  { %6575 = vrcp.f32 %v2728_v63  ;;  %vm2697_vm13 = vcmp.gt.f32.partialorder %v2657_v19, 0.0  ;;  %v2651_v45 = vpop.xlane.xlu0 %2650 }
 0x4a3   :  { %v6564_v54 = vpop.eup %6563  ;;  %v2729_v53 = vsel %vm2697_vm13, %v2657_v19, 1.0  ;;  %vm2695_vm14 = vcmp.gt.f32.partialorder %v2651_v45, 0.0  ;;  %6090 = vmatmul.mubr.msk.f32.gmra.mrb[34].mxu1 %vm59_vm2, %v2817_v42 }
 0x4a4   :  { %v6566_v0 = vpop.eup %6565  ;;  %6577 = vrcp.f32 %v2729_v53  ;;  %v2727_v34 = vsel %vm2695_vm14, %v2651_v45, 1.0  ;;  %v2786_v47 = vmul.f32 %v6564_v54, %v7597_v57 }
 0x4a5   :  { %6579 = vrcp.f32 %v2727_v34  ;;  %4183 = vxpose.xlu0.b32.cont [3/4] (short) (narrow) %v2848_v22, 16  ;;  %v2666_v15 = vpop.xlane.xlu1 %2665  ;;  %v2788_v59 = vmul.f32 %v6566_v0, %v7593_v29 }
 0x4a6   :  { %v6568_v62 = vpop.eup %6567  ;;  %6581 = vrcp.f32 %v179_v52  ;;  %vm2700_vm15 = vcmp.gt.f32.partialorder %v2666_v15, 0.0  ;;  %v2660_v13 = vpop.xlane.xlu0 %2659  ;;  %v2850_v55 = vmul.f32 %v2786_v47, %v193_v7  ;;  %v2818_v10 = vmul.f32 %v2786_v47, %v8782_v41 }
 0x4a7   :  { %v6570_v37 = vpop.eup %6569  ;;  %v2732_v32 = vsel %vm2700_vm15, %v2666_v15, 1.0  ;;  %vm2698_vm1 = vcmp.gt.f32.partialorder %v2660_v13, 0.0  ;;  %v2789_v18 = vmul.f32 %v6568_v62, %v7603_v38  ;;  %v2820_v29 = vmul.f32 %v2788_v59, %v8782_v41 }
 0x4a8   :  { %v6572_v2 = vpop.eup %6571  ;;  %v2730_v28 = vsel %vm2698_vm1, %v2660_v13, 1.0  ;;  %4294 = vxpose.xlu1.b32.start [1/4] (short) (narrow) %v2850_v55, 16  ;;  %6096 = vmatprep.mubr.msk.f32.mxu0 %vm59_vm2, %v2818_v10  ;;  %v2787_v57 = vmul.f32 %v6570_v37, %v7606_v48  ;;  %v2852_v38 = vmul.f32 %v2788_v59, %v193_v7  ;;  %v8787_v62 = vlaneseq }
 0x4a9   :  { %6583 = vrcp.f32 %v2730_v28  ;;  %4184 = vxpose.xlu0.b32.end [4/4] (short) (narrow) %v2849_v40, 16  ;;  %v194_v30 = vsel %vm170_vm3, %v6572_v2, 0.0  ;;  %v2821_v51 = vmul.f32 %v2789_v18, %v8782_v41  ;;  %v2853_v17 = vmul.f32 %v2789_v18, %v193_v7 }
 0x4aa   :  { %6585 = vrcp.f32 %v2732_v32  ;;  %v2663_v9 = vpop.xlane.xlu0 %2662  ;;  %v2851_v16 = vmul.f32 %v2787_v57, %v193_v7  ;;  %v2819_v23 = vmul.f32 %v2787_v57, %v8782_v41  ;;  %v8786_v7 = vld [vmem:[#allocation10_spill] sm:$0xff]  ;;  %v2868_v13 = vand.u32 127, %v8787_v62 }
 0x4ab   :  { %v6574_v24 = vpop.eup %6573  ;;  %vm2699_vm4 = vcmp.gt.f32.partialorder %v2663_v9, 0.0  ;;  %v6684_v55 = vmov 0   ;;  %v8788_v59 = vmov 0.0  }
 0x4ac   :  { %v6576_v61 = vpop.eup %6575  ;;  %v2731_v43 = vsel %vm2699_vm4, %v2663_v9, 1.0  ;;  %4295 = vxpose.xlu1.b32.cont [2/4] (short) (narrow) %v2851_v16, 16  ;;  %6097 = vmatmul.mubr.msk.f32.vlgmr.msra.gmra.mrb[32].mxu0 %vm59_vm2, %v2819_v23  ;;  %v2790_v48 = vmul.f32 %v6574_v24, %v7617_v58  ;;  %vm2877_vm7 = vcmp.ge.s32.totalorder %v2868_v13, 32  ;;  %vm2891_vm8 = vcmp.ge.s32.totalorder %v2868_v13, 64 }
 0x4ad   :  { %6587 = vrcp.f32 %v2731_v43  ;;  %6305 = vmatpush3.bf16.msra.mxu0 %v8783_v11  ;;  %6099 = vmatprep.mubr.msk.f32.mxu0 %vm59_vm2, %v2820_v29  ;;  %v2792_v56 = vmul.f32 %v6576_v61, %v7613_v50  ;;  %v2878_v41 = vsel %vm2877_vm7, 1, %v6684_v55  ;;  %v2892_v10 = vsel %vm2891_vm8, 1, %v6684_v55 }
 0x4ae   :  { %v6578_v5 = vpop.eup %6577  ;;  %v2669_v3 = vpop.xlane.xlu0 %2668  ;;  %v2854_v44 = vmul.f32 %v2790_v48, %v194_v30  ;;  %v2822_v33 = vmul.f32 %v2790_v48, %v8784_v35  ;;  %vm2906_vm9 = vcmp.ge.s32.totalorder %v2868_v13, 96  ;;  %v2893_v37 = vadd.s32 %v2892_v10, %v2878_v41 }
 0x4af   :  { %v6580_v6 = vpop.eup %6579  ;;  %vm2701_vm5 = vcmp.gt.f32.partialorder %v2669_v3, 0.0  ;;  %v2793_v20 = vmul.f32 %v6578_v5, %v7624_v46  ;;  %v2824_v49 = vmul.f32 %v2792_v56, %v8784_v35  ;;  %v2856_v46 = vmul.f32 %v2792_v56, %v194_v30 }
 0x4b0   :  { %v6582_v39 = vpop.eup %6581  ;;  %v2733_v21 = vsel %vm2701_vm5, %v2669_v3, 1.0  ;;  %4296 = vxpose.xlu1.b32.cont [3/4] (short) (narrow) %v2852_v38, 16  ;;  %6100 = vmatmul.mubr.msk.f32.gmra.mrb[34].mxu0 %vm59_vm2, %v2821_v51  ;;  %v2791_v58 = vmul.f32 %v6580_v6, %v7627_v1  ;;  %v2907_v32 = vsel %vm2906_vm9, 1, %v6684_v55 }
 0x4b1   :  { %6589 = vrcp.f32 %v2733_v21  ;;  %4407 = vxpose.xlu0.b32.start [1/4] (short) (narrow) %v2854_v44, 16  ;;  %6106 = vmatprep.mubr.msk.f32.mxu1 %vm59_vm2, %v2822_v33  ;;  %v195_v63 = vsel %vm171_vm6, %v6582_v39, 0.0  ;;  %v2825_v25 = vmul.f32 %v2793_v20, %v8784_v35  ;;  %v2857_v53 = vmul.f32 %v2793_v20, %v194_v30 }
 0x4b2   :  { %v2855_v4 = vmul.f32 %v2791_v58, %v194_v30  ;;  %v2823_v8 = vmul.f32 %v2791_v58, %v8784_v35  ;;  %v2908_v40 = vadd.s32 %v2907_v32, %v2893_v37 }
 0x4b3   :  { %v6584_v50 = vpop.eup %6583 }
 0x4b4   :  { %v6586_v60 = vpop.eup %6585  ;;  %4297 = vxpose.xlu1.b32.end [4/4] (short) (narrow) %v2853_v17, 16  ;;  %6107 = vmatmul.mubr.msk.f32.vlgmr.msra.gmra.mrb[36].mxu1 %vm59_vm2, %v2823_v8  ;;  %v2794_v1 = vmul.f32 %v6584_v50, %v7637_v26  ;;  %vm5768_vm10 = vcmp.eq.s32.totalorder %v2908_v40, 0  ;;  %vm5771_vm11 = vcmp.eq.s32.totalorder %v2908_v40, 3  ;;  %vm5770_vm12 = vcmp.eq.s32.totalorder %v2908_v40, 2 }
 0x4b5   :  { %4408 = vxpose.xlu0.b32.cont [2/4] (short) (narrow) %v2855_v4, 16  ;;  %6109 = vmatprep.mubr.msk.f32.mxu1 %vm59_vm2, %v2824_v49  ;;  %v2796_v42 = vmul.f32 %v6586_v60, %v7634_v31  ;;  %v7848_v28 = vsel %vm5768_vm10, 1.0, %v8788_v59  ;;  %v7853_v24 = vsel %vm5771_vm11, 1.0, %v8788_v59  ;;  %v7856_v29 = vsel %vm5770_vm12, 1.0, %v8788_v59 }
 0x4b6   :  { %v2858_v12 = vmul.f32 %v2794_v1, %v195_v63  ;;  %v2826_v36 = vmul.f32 %v2794_v1, %v8785_v27 }
 0x4b7   :  { %v6588_v19 = vpop.eup %6587  ;;  %v2828_v22 = vmul.f32 %v2796_v42, %v8785_v27  ;;  %v2860_v0 = vmul.f32 %v2796_v42, %v195_v63 }
 0x4b8   :  { %6110 = vmatmul.mubr.msk.f32.gmra.mrb[38].mxu1 %vm59_vm2, %v2825_v25  ;;  %4520 = vxpose.xlu1.b32.start [1/4] (short) (narrow) %v2858_v12, 16  ;;  %v2795_v52 = vmul.f32 %v6588_v19, %v7644_v14 }
 0x4b9   :  { %4409 = vxpose.xlu0.b32.cont [3/4] (short) (narrow) %v2856_v46, 16  ;;  %6116 = vmatprep.mubr.msk.f32.mxu0 %vm59_vm2, %v2826_v36 }
 0x4ba   :  { %v2859_v26 = vmul.f32 %v2795_v52, %v195_v63  ;;  %v2827_v45 = vmul.f32 %v2795_v52, %v8785_v27 }
 0x4bb   :  { %v6590_v54 = vpop.eup %6589 }
 0x4bc   :  { %4521 = vxpose.xlu1.b32.cont [2/4] (short) (narrow) %v2859_v26, 16  ;;  %6117 = vmatmul.mubr.msk.f32.vlgmr.msra.gmra.mrb[36].mxu0 %vm59_vm2, %v2827_v45  ;;  %v2797_v31 = vmul.f32 %v6590_v54, %v8786_v7 }
 0x4bd   :  { %4410 = vxpose.xlu0.b32.end [4/4] (short) (narrow) %v2857_v53, 16  ;;  %6119 = vmatprep.mubr.msk.f32.mxu0 %vm59_vm2, %v2828_v22 }
 0x4be   :  { %v2829_v14 = vmul.f32 %v2797_v31, %v8785_v27  ;;  %v2861_v34 = vmul.f32 %v2797_v31, %v195_v63 }
 0x4c0   :  { %4522 = vxpose.xlu1.b32.cont [3/4] (short) (narrow) %v2860_v0, 16  ;;  %6120 = vmatmul.mubr.msk.f32.gmra.mrb[38].mxu0 %vm59_vm2, %v2829_v14  ;;  %vm5769_vm2 = vcmp.eq.s32.totalorder %v2908_v40, 1 }
 0x4c1   :  { %v7845_v2 = vsel %vm5769_vm2, 1.0, %v8788_v59 }
 0x4c4   :  { %4523 = vxpose.xlu1.b32.end [4/4] (short) (narrow) %v2861_v34, 16 }
 0x4f4   :  { %v3745_v47 = vpop.trf.xlu1 }
 0x4f5   :  { %6130 = vmatprep.mubr.msk.f32.mxu1 %vm204_vm0, %v3745_v47 }
 0x4f8   :  { %v3746_v35 = vpop.trf.xlu1 }
 0x4fd   :  { %v3858_v15 = vpop.trf.xlu0 }
 0x4fe   :  { %6141 = vmatprep.mubr.msk.f32.mxu0 %vm204_vm0, %v3858_v15 }
 0x501   :  { %v3859_v3 = vpop.trf.xlu0 }
 0x50d   :  { %v3971_v56 = vpop.trf.xlu0 }
 0x510   :  { %v4084_v63 = vpop.trf.xlu1 }
 0x511   :  { %v3972_v52 = vpop.trf.xlu0 }
 0x514   :  { %v4085_v15 = vpop.trf.xlu1 }
 0x51d   :  { %v4197_v7 = vpop.trf.xlu0 }
 0x521   :  { %v4198_v40 = vpop.trf.xlu0 }
 0x528   :  { %v4310_v13 = vpop.trf.xlu1 }
 0x548   :  { %v6048_v57 = vpop.f32.mrb[16].mxu1 }
 0x549   :  { %v3698_v9 = vmul.f32 %v6048_v57, %v7845_v2  ;;  %v2999_v16 = vpop.f32.mrb[17].mxu1 }
 0x54a   :  { %v3697_v23 = vmul.f32 %v7848_v28, %v2999_v16  ;;  %v4423_v16 = vpop.trf.xlu0 }
 0x54c   :  { %v6306_v18 = vpack.c.bf16 %v3698_v9, %v3697_v23 }
 0x54e   :  { %6307 = vmatprep.subr.bf16.mxu1 %v6306_v18 }
 0x54f   :  { %6309 = vmatpush3.bf16.msra.mxu1 %v6306_v18 }
 0x550   :  { %v6051_v30 = vpop.f32.mrb[18].mxu1 }
 0x551   :  { %v3700_v61 = vmul.f32 %v6051_v30, %v7853_v24  ;;  %v3009_v43 = vpop.f32.mrb[19].mxu1 }
 0x552   :  { %v3699_v48 = vmul.f32 %v7856_v29, %v3009_v43 }
 0x554   :  { %v6310_v11 = vpack.c.bf16 %v3700_v61, %v3699_v48  ;;  %v6058_v5 = vpop.f32.mrb[20].mxu1 }
 0x555   :  { %v3702_v38 = vmul.f32 %v6058_v5, %v7845_v2  ;;  %v3096_v51 = vpop.f32.mrb[21].mxu1 }
 0x556   :  { %v3701_v44 = vmul.f32 %v7848_v28, %v3096_v51  ;;  %6311 = vmatprep.subr.bf16.mxu1 %v6310_v11 }
 0x557   :  { %6313 = vmatpush3.bf16.msra.mxu1 %v6310_v11 }
 0x558   :  { %v6314_v33 = vpack.c.bf16 %v3702_v38, %v3701_v44  ;;  %v6061_v6 = vpop.f32.mrb[22].mxu1  ;;  %v4311_v44 = vpop.trf.xlu1 }
 0x559   :  { %v3704_v39 = vmul.f32 %v6061_v6, %v7853_v24  ;;  %v3106_v21 = vpop.f32.mrb[23].mxu1 }
 0x55a   :  { %v3703_v58 = vmul.f32 %v7856_v29, %v3106_v21  ;;  %6131 = vmatmul.mubr.msk.f32.vlgmr.msra.gmra.mrb[40].mxu1 %vm204_vm0, %v3746_v35  ;;  %6315 = vmatprep.subr.bf16.mxu0 %v6314_v33 }
 0x55b   :  { %6317 = vmatpush3.bf16.msra.mxu0 %v6314_v33  ;;  %6152 = vmatprep.mubr.msk.f32.mxu1 %vm204_vm0, %v3971_v56 }
 0x55c   :  { %v6318_v17 = vpack.c.bf16 %v3704_v39, %v3703_v58  ;;  %v6068_v4 = vpop.f32.mrb[24].mxu1  ;;  %v4536_v21 = vpop.trf.xlu1 }
 0x55d   :  { %v3706_v8 = vmul.f32 %v6068_v4, %v7845_v2  ;;  %v3193_v20 = vpop.f32.mrb[25].mxu1 }
 0x55e   :  { %v3705_v50 = vmul.f32 %v7848_v28, %v3193_v20  ;;  %6319 = vmatprep.subr.bf16.mxu0 %v6318_v17 }
 0x55f   :  { %6321 = vmatpush3.bf16.msra.mxu0 %v6318_v17 }
 0x560   :  { %v6322_v49 = vpack.c.bf16 %v3706_v8, %v3705_v50  ;;  %v4424_v50 = vpop.trf.xlu0 }
 0x562   :  { %6142 = vmatmul.mubr.msk.f32.vlgmr.msra.gmra.mrb[40].mxu0 %vm204_vm0, %v3859_v3  ;;  %6323 = vmatprep.subr.bf16.mxu1 %v6322_v49 }
 0x563   :  { %6325 = vmatpush3.bf16.msra.mxu1 %v6322_v49  ;;  %v6071_v60 = vpop.f32.mrb[26].mxu1  ;;  %6163 = vmatprep.mubr.msk.f32.mxu0 %vm204_vm0, %v4084_v63 }
 0x564   :  { %v3708_v1 = vmul.f32 %v6071_v60, %v7853_v24  ;;  %v3203_v25 = vpop.f32.mrb[27].mxu1 }
 0x565   :  { %v3707_v12 = vmul.f32 %v7856_v29, %v3203_v25 }
 0x567   :  { %v6326_v27 = vpack.c.bf16 %v3708_v1, %v3707_v12  ;;  %v6078_v36 = vpop.f32.mrb[28].mxu1 }
 0x568   :  { %v3710_v19 = vmul.f32 %v6078_v36, %v7845_v2  ;;  %v3290_v46 = vpop.f32.mrb[29].mxu1 }
 0x569   :  { %v3709_v42 = vmul.f32 %v7848_v28, %v3290_v46  ;;  %6327 = vmatprep.subr.bf16.mxu1 %v6326_v27 }
 0x56a   :  { %6329 = vmatpush3.bf16.msra.mxu1 %v6326_v27 }
 0x56b   :  { %v6330_v26 = vpack.c.bf16 %v3710_v19, %v3709_v42  ;;  %v6081_v45 = vpop.f32.mrb[30].mxu1 }
 0x56c   :  { %v3712_v54 = vmul.f32 %v6081_v45, %v7853_v24  ;;  %v3300_v53 = vpop.f32.mrb[31].mxu1 }
 0x56d   :  { %v3711_v22 = vmul.f32 %v7856_v29, %v3300_v53  ;;  %6153 = vmatmul.mubr.msk.f32.vlgmr.msra.gmra.mrb[42].mxu1 %vm204_vm0, %v3972_v52  ;;  %6331 = vmatprep.subr.bf16.mxu0 %v6330_v26 }
 0x56e   :  { %6333 = vmatpush3.bf16.msra.mxu0 %v6330_v26  ;;  %6174 = vmatprep.mubr.msk.f32.mxu1 %vm204_vm0, %v4197_v7 }
 0x56f   :  { %v6334_v31 = vpack.c.bf16 %v3712_v54, %v3711_v22  ;;  %v6088_v0 = vpop.f32.mrb[32].mxu1 }
 0x570   :  { %v3714_v14 = vmul.f32 %v6088_v0, %v7845_v2  ;;  %v3387_v34 = vpop.f32.mrb[33].mxu1 }
 0x571   :  { %v3713_v47 = vmul.f32 %v7848_v28, %v3387_v34  ;;  %6335 = vmatprep.subr.bf16.mxu0 %v6334_v31 }
 0x572   :  { %6337 = vmatpush3.bf16.msra.mxu0 %v6334_v31 }
 0x573   :  { %v6338_v62 = vpack.c.bf16 %v3714_v14, %v3713_v47 }
 0x575   :  { %6339 = vmatprep.subr.bf16.mxu1 %v6338_v62  ;;  %6164 = vmatmul.mubr.msk.f32.vlgmr.msra.gmra.mrb[42].mxu0 %vm204_vm0, %v4085_v15 }
 0x576   :  { %6341 = vmatpush3.bf16.msra.mxu1 %v6338_v62  ;;  %v6091_v55 = vpop.f32.mrb[34].mxu1  ;;  %6185 = vmatprep.mubr.msk.f32.mxu0 %vm204_vm0, %v4310_v13 }
 0x577   :  { %v3716_v41 = vmul.f32 %v6091_v55, %v7853_v24  ;;  %v3397_v10 = vpop.f32.mrb[35].mxu1 }
 0x578   :  { %v3715_v37 = vmul.f32 %v7856_v29, %v3397_v10  ;;  %v8034_v10 = vld [vmem:[%s8744_s3] ss:$0 sm:$0xff] }
 0x57a   :  { %v6342_v32 = vpack.c.bf16 %v3716_v41, %v3715_v37 }
 0x57c   :  { %6343 = vmatprep.subr.bf16.mxu1 %v6342_v32 }
 0x57d   :  { %6345 = vmatpush3.bf16.msra.mxu1 %v6342_v32 }
 0x57f   :  { %v6098_v59 = vpop.f32.mrb[32].mxu0 }
 0x580   :  { %v3718_v57 = vmul.f32 %v6098_v59, %v7845_v2  ;;  %v3484_v9 = vpop.f32.mrb[33].mxu0  ;;  %6175 = vmatmul.mubr.msk.f32.vlgmr.msra.gmra.mrb[44].mxu1 %vm204_vm0, %v4198_v40 }
 0x581   :  { %v3717_v23 = vmul.f32 %v7848_v28, %v3484_v9  ;;  %6196 = vmatprep.mubr.msk.f32.mxu1 %vm204_vm0, %v4423_v16 }
 0x583   :  { %v6346_v18 = vpack.c.bf16 %v3718_v57, %v3717_v23  ;;  %v6101_v30 = vpop.f32.mrb[34].mxu0  ;;  %v6663_v23 = vld [vmem:[%s8742_s0 + $0x8] sm:$0xff] }
 0x584   :  { %v3720_v61 = vmul.f32 %v6101_v30, %v7853_v24  ;;  %v3494_v43 = vpop.f32.mrb[35].mxu0 }
 0x585   :  { %v3719_v48 = vmul.f32 %v7856_v29, %v3494_v43  ;;  %6347 = vmatprep.subr.bf16.mxu0 %v6346_v18 }
 0x586   :  { %6349 = vmatpush3.bf16.msra.mxu0 %v6346_v18 }
 0x587   :  { %v6350_v11 = vpack.c.bf16 %v3720_v61, %v3719_v48  ;;  %v6108_v5 = vpop.f32.mrb[36].mxu1 }
 0x588   :  { %v3722_v3 = vmul.f32 %v6108_v5, %v7845_v2  ;;  %v3581_v38 = vpop.f32.mrb[37].mxu1 }
 0x589   :  { %v3721_v51 = vmul.f32 %v7848_v28, %v3581_v38  ;;  %6351 = vmatprep.subr.bf16.mxu0 %v6350_v11 }
 0x58a   :  { %6353 = vmatpush3.bf16.msra.mxu0 %v6350_v11 }
 0x58b   :  { %v6354_v35 = vpack.c.bf16 %v3722_v3, %v3721_v51  ;;  %v6111_v33 = vpop.f32.mrb[38].mxu1  ;;  %v6664_v51 = vld [vmem:[%s8742_s0] sm:$0xff] }
 0x58c   :  { %v3724_v6 = vmul.f32 %v6111_v33, %v7853_v24  ;;  %v3591_v56 = vpop.f32.mrb[39].mxu1 }
 0x58d   :  { %v3723_v39 = vmul.f32 %v7856_v29, %v3591_v56  ;;  %6186 = vmatmul.mubr.msk.f32.vlgmr.msra.gmra.mrb[44].mxu0 %vm204_vm0, %v4311_v44  ;;  %6355 = vmatprep.subr.bf16.mxu1 %v6354_v35 }
 0x58e   :  { %6357 = vmatpush3.bf16.msra.mxu1 %v6354_v35  ;;  %6207 = vmatprep.mubr.msk.f32.mxu0 %vm204_vm0, %v4536_v21 }
 0x58f   :  { %v6358_v58 = vpack.c.bf16 %v3724_v6, %v3723_v39  ;;  %v6118_v17 = vpop.f32.mrb[36].mxu0 }
 0x590   :  { %v3726_v4 = vmul.f32 %v6118_v17, %v7845_v2  ;;  %v3678_v8 = vpop.f32.mrb[37].mxu0  ;;  %v4537_v2 = vpop.trf.xlu1 }
 0x591   :  { %v3725_v20 = vmul.f32 %v7848_v28, %v3678_v8  ;;  %6359 = vmatprep.subr.bf16.mxu1 %v6358_v58 }
 0x592   :  { %6361 = vmatpush3.bf16.msra.mxu1 %v6358_v58 }
 0x593   :  { %v6362_v49 = vpack.c.bf16 %v3726_v4, %v3725_v20  ;;  %v6121_v63 = vpop.f32.mrb[38].mxu0  ;;  %v6665_v20 = vld [vmem:[%s8742_s0 + $0x18] sm:$0xff] }
 0x594   :  { %v3728_v60 = vmul.f32 %v6121_v63, %v7853_v24  ;;  %v3688_v1 = vpop.f32.mrb[39].mxu0 }
 0x595   :  { %v3727_v25 = vmul.f32 %v7856_v29, %v3688_v1  ;;  %6363 = vmatprep.subr.bf16.mxu0 %v6362_v49  ;;  %6197 = vmatmul.mubr.msk.f32.vlgmr.msra.gmra.mrb[46].mxu1 %vm204_vm0, %v4424_v50 }
 0x596   :  { %6365 = vmatpush3.bf16.msra.mxu0 %v6362_v49 }
 0x597   :  { %v6366_v12 = vpack.c.bf16 %v3728_v60, %v3727_v25 }
 0x599   :  { %6367 = vmatprep.subr.bf16.mxu0 %v6366_v12 }
 0x59a   :  { %6369 = vmatpush3.bf16.msra.mxu0 %v6366_v12  ;;  %v6666_v12 = vld [vmem:[%s8742_s0 + $0x10] sm:$0xff] }
 0x59d   :  { %6208 = vmatmul.mubr.msk.f32.vlgmr.msra.gmra.mrb[46].mxu0 %vm204_vm0, %v4537_v2 }
 0x62d   :  { %v7902_v28 = vpop.f32.mrb[40].mxu1 }
 0x62e   :  { %4779 = vrot.lane.b32.xlu1 %v7902_v28, %s6685_s1  ;;  %4651 = vrot.lane.b32.xlu0 %v7902_v28, %s6686_s11  ;;  %v7908_v24 = vpop.f32.mrb[41].mxu1 }
 0x632   :  { %4715 = vrot.lane.b32.xlu0 %v7902_v28, %s6687_s12  ;;  %4713 = vrot.lane.b32.xlu1 %v7908_v24, %s6687_s12 }
 0x635   :  { %v7914_v29 = vpop.f32.mrb[40].mxu0 }
 0x636   :  { %v7916_v27 = vpop.f32.mrb[41].mxu0  ;;  %4655 = vrot.lane.b32.xlu1 %v7914_v29, %s6686_s11  ;;  %4649 = vrot.lane.b32.xlu0 %v7908_v24, %s6686_s11 }
 0x63a   :  { %4783 = vrot.lane.b32.xlu1 %v7914_v29, %s6685_s1  ;;  %4777 = vrot.lane.b32.xlu0 %v7908_v24, %s6685_s1 }
 0x63e   :  { %4717 = vrot.lane.b32.xlu1 %v7916_v27, %s6687_s12  ;;  %4719 = vrot.lane.b32.xlu0 %v7914_v29, %s6687_s12 }
 0x640   :  { %v7930_v36 = vpop.f32.mrb[42].mxu1 }
 0x641   :  { %v7932_v19 = vpop.f32.mrb[43].mxu1 }
 0x642   :  { %4653 = vrot.lane.b32.xlu0 %v7916_v27, %s6686_s11  ;;  %4659 = vrot.lane.b32.xlu1 %v7930_v36, %s6686_s11 }
 0x646   :  { %4781 = vrot.lane.b32.xlu0 %v7916_v27, %s6685_s1  ;;  %4787 = vrot.lane.b32.xlu1 %v7930_v36, %s6685_s1 }
 0x648   :  { %v7942_v46 = vpop.f32.mrb[42].mxu0 }
 0x649   :  { %v7944_v42 = vpop.f32.mrb[43].mxu0 }
 0x64a   :  { %4723 = vrot.lane.b32.xlu0 %v7930_v36, %s6687_s12  ;;  %4721 = vrot.lane.b32.xlu1 %v7932_v19, %s6687_s12 }
 0x64e   :  { %4785 = vrot.lane.b32.xlu1 %v7932_v19, %s6685_s1  ;;  %4657 = vrot.lane.b32.xlu0 %v7932_v19, %s6686_s11 }
 0x652   :  { %4663 = vrot.lane.b32.xlu1 %v7942_v46, %s6686_s11  ;;  %4661 = vrot.lane.b32.xlu0 %v7944_v42, %s6686_s11 }
 0x653   :  { %v7958_v52 = vpop.f32.mrb[44].mxu1 }
 0x654   :  { %v7960_v26 = vpop.f32.mrb[45].mxu1 }
 0x656   :  { %4727 = vrot.lane.b32.xlu1 %v7942_v46, %s6687_s12  ;;  %4667 = vrot.lane.b32.xlu0 %v7958_v52, %s6686_s11 }
 0x65a   :  { %4791 = vrot.lane.b32.xlu1 %v7942_v46, %s6685_s1  ;;  %4665 = vrot.lane.b32.xlu0 %v7960_v26, %s6686_s11 }
 0x65e   :  { %4725 = vrot.lane.b32.xlu1 %v7944_v42, %s6687_s12  ;;  %4793 = vrot.lane.b32.xlu0 %v7960_v26, %s6685_s1 }
 0x660   :  { %v7974_v45 = vpop.f32.mrb[44].mxu0 }
 0x661   :  { %v7976_v54 = vpop.f32.mrb[45].mxu0 }
 0x662   :  { %4789 = vrot.lane.b32.xlu1 %v7944_v42, %s6685_s1  ;;  %4735 = vrot.lane.b32.xlu0 %v7974_v45, %s6687_s12 }
 0x666   :  { %4731 = vrot.lane.b32.xlu1 %v7958_v52, %s6687_s12  ;;  %4669 = vrot.lane.b32.xlu0 %v7976_v54, %s6686_s11 }
 0x668   :  { %v7986_v53 = vpop.f32.mrb[46].mxu1 }
 0x669   :  { %v7988_v22 = vpop.f32.mrb[47].mxu1 }
 0x66a   :  { %4795 = vrot.lane.b32.xlu1 %v7958_v52, %s6685_s1  ;;  %4797 = vrot.lane.b32.xlu0 %v7976_v54, %s6685_s1 }
 0x66e   :  { %4729 = vrot.lane.b32.xlu1 %v7960_v26, %s6687_s12  ;;  %4739 = vrot.lane.b32.xlu0 %v7986_v53, %s6687_s12 }
 0x670   :  { %v7998_v7 = vpop.f32.mrb[46].mxu0 }
 0x671   :  { %v8000_v31 = vpop.f32.mrb[47].mxu0 }
 0x672   :  { %4671 = vrot.lane.b32.xlu1 %v7974_v45, %s6686_s11  ;;  %4673 = vrot.lane.b32.xlu0 %v7988_v22, %s6686_s11 }
 0x676   :  { %4799 = vrot.lane.b32.xlu1 %v7974_v45, %s6685_s1  ;;  %4801 = vrot.lane.b32.xlu0 %v7988_v22, %s6685_s1 }
 0x67a   :  { %4733 = vrot.lane.b32.xlu1 %v7976_v54, %s6687_s12  ;;  %4743 = vrot.lane.b32.xlu0 %v7998_v7, %s6687_s12 }
 0x67e   :  { %4675 = vrot.lane.b32.xlu1 %v7986_v53, %s6686_s11  ;;  %4677 = vrot.lane.b32.xlu0 %v8000_v31, %s6686_s11 }
 0x682   :  { %4803 = vrot.lane.b32.xlu1 %v7986_v53, %s6685_s1  ;;  %4741 = vrot.lane.b32.xlu0 %v8000_v31, %s6687_s12 }
 0x686   :  { %4737 = vrot.lane.b32.xlu1 %v7988_v22, %s6687_s12  ;;  %4805 = vrot.lane.b32.xlu0 %v8000_v31, %s6685_s1 }
 0x68a   :  { %4679 = vrot.lane.b32.xlu1 %v7998_v7, %s6686_s11 }
 0x68e   :  { %4807 = vrot.lane.b32.xlu1 %v7998_v7, %s6685_s1 }
 0x6a0   :  { %v4780_v0 = vpop.permute.xlu1 %4779  ;;  %v4652_v14 = vpop.permute.xlu0 %4651 }
 0x6a1   :  { %v4698_v34 = vadd.f32 %v7902_v28, %v4652_v14 }
 0x6a4   :  { %v4716_v47 = vpop.permute.xlu0 %4715  ;;  %v4714_v15 = vpop.permute.xlu1 %4713 }
 0x6a5   :  { %v4762_v62 = vadd.f32 %v4716_v47, %v4698_v34 }
 0x6a7   :  { %v4826_v13 = vadd.f32 %v4780_v0, %v4762_v62 }
 0x6a8   :  { %v4656_v55 = vpop.permute.xlu1 %4655  ;;  %v4650_v41 = vpop.permute.xlu0 %4649 }
 0x6a9   :  { %v4842_v37 = vmul.f32 0.25, %v4826_v13  ;;  %v4697_v32 = vadd.f32 %v4650_v41, %v7908_v24  ;;  %v4700_v30 = vadd.f32 %v7914_v29, %v4656_v55 }
 0x6ab   :  { %v4761_v40 = vadd.f32 %v4714_v15, %v4697_v32  ;;  %v4865_v59 = vadd.f32 %v8034_v10, %v4842_v37 }
 0x6ac   :  { %v4784_v57 = vpop.permute.xlu1 %4783  ;;  %v4778_v9 = vpop.permute.xlu0 %4777 }
 0x6ad   :  { %v4825_v16 = vadd.f32 %v4778_v9, %v4761_v40  ;;  %v8041_v18 = vadd.f32 %v6663_v23, %v4865_v59 }
 0x6af   :  { %v4841_v61 = vmul.f32 0.25, %v4825_v16  ;;  %v4901_v43 = vsel %vm204_vm0, %v8041_v18, 0.0 }
 0x6b0   :  { %v4718_v48 = vpop.permute.xlu1 %4717  ;;  %v4720_v11 = vpop.permute.xlu0 %4719  ;;  %4902 = vadd.xlane.f32.xlu0 %v4901_v43 }
 0x6b1   :  { %v4864_v5 = vadd.f32 %v8034_v10, %v4841_v61  ;;  %v4764_v3 = vadd.f32 %v4720_v11, %v4700_v30  ;;  %v6667_v61 = vld [vmem:[%s8742_s0 + $0x38] sm:$0xff] }
 0x6b3   :  { %v4828_v38 = vadd.f32 %v4784_v57, %v4764_v3  ;;  %v8050_v44 = vadd.f32 %v6664_v51, %v4864_v5 }
 0x6b4   :  { %v4654_v35 = vpop.permute.xlu0 %4653  ;;  %v4660_v33 = vpop.permute.xlu1 %4659 }
 0x6b5   :  { %v4844_v6 = vmul.f32 0.25, %v4828_v38  ;;  %v4699_v56 = vadd.f32 %v4654_v35, %v7916_v27  ;;  %v4898_v39 = vsel %vm204_vm0, %v8050_v44, 0.0 }
 0x6b6   :  { %4899 = vadd.xlane.f32.xlu1 %v4898_v39 }
 0x6b7   :  { %v4763_v21 = vadd.f32 %v4718_v48, %v4699_v56  ;;  %v4867_v58 = vadd.f32 %v8034_v10, %v4844_v6  ;;  %v4702_v6 = vadd.f32 %v7930_v36, %v4660_v33 }
 0x6b8   :  { %v4782_v17 = vpop.permute.xlu0 %4781  ;;  %v4788_v4 = vpop.permute.xlu1 %4787 }
 0x6b9   :  { %v4827_v8 = vadd.f32 %v4782_v17, %v4763_v21  ;;  %v8059_v50 = vadd.f32 %v6665_v20, %v4867_v58 }
 0x6bb   :  { %v4843_v49 = vmul.f32 0.25, %v4827_v8  ;;  %v4907_v63 = vsel %vm204_vm0, %v8059_v50, 0.0  ;;  %v6669_v8 = vld [vmem:[%s8742_s0 + $0x30] sm:$0xff] }
 0x6bc   :  { %v4724_v60 = vpop.permute.xlu0 %4723  ;;  %v4722_v1 = vpop.permute.xlu1 %4721  ;;  %4908 = vadd.xlane.f32.xlu0 %v4907_v63 }
 0x6bd   :  { %v4866_v25 = vadd.f32 %v8034_v10, %v4843_v49  ;;  %v4766_v58 = vadd.f32 %v4724_v60, %v4702_v6 }
 0x6bf   :  { %v8067_v2 = vadd.f32 %v6666_v12, %v4866_v25 }
 0x6c0   :  { %v4786_v28 = vpop.permute.xlu1 %4785  ;;  %v4658_v24 = vpop.permute.xlu0 %4657 }
 0x6c1   :  { %v4701_v29 = vadd.f32 %v4658_v24, %v7932_v19  ;;  %v4904_v27 = vsel %vm204_vm0, %v8067_v2, 0.0 }
 0x6c2   :  { %4905 = vadd.xlane.f32.xlu1 %v4904_v27 }
 0x6c3   :  { %v4765_v34 = vadd.f32 %v4722_v1, %v4701_v29 }
 0x6c4   :  { %v4664_v0 = vpop.permute.xlu1 %4663  ;;  %v4662_v14 = vpop.permute.xlu0 %4661 }
 0x6c5   :  { %v4829_v62 = vadd.f32 %v4786_v28, %v4765_v34  ;;  %v4704_v13 = vadd.f32 %v7942_v46, %v4664_v0  ;;  %v4703_v9 = vadd.f32 %v4662_v14, %v7944_v42  ;;  %v6668_v42 = vld [vmem:[%s8742_s0 + $0x20] sm:$0xff]  ;;  %v6670_v0 = vld [vmem:[%s8742_s0 + $0x48] sm:$0xff] }
 0x6c7   :  { %v4845_v32 = vmul.f32 0.25, %v4829_v62 }
 0x6c8   :  { %v4728_v47 = vpop.permute.xlu1 %4727  ;;  %v4668_v15 = vpop.permute.xlu0 %4667 }
 0x6c9   :  { %v4768_v55 = vadd.f32 %v4728_v47, %v4704_v13  ;;  %v4868_v23 = vadd.f32 %v8034_v10, %v4845_v32  ;;  %v4706_v56 = vadd.f32 %v7958_v52, %v4668_v15  ;;  %v4830_v52 = vadd.f32 %v4788_v4, %v4766_v58 }
 0x6cb   :  { %v8086_v3 = vadd.f32 %v6668_v42, %v4868_v23  ;;  %v4846_v29 = vmul.f32 0.25, %v4830_v52 }
 0x6cc   :  { %v4792_v41 = vpop.permute.xlu1 %4791  ;;  %v4666_v37 = vpop.permute.xlu0 %4665 }
 0x6cd   :  { %v4832_v40 = vadd.f32 %v4792_v41, %v4768_v55  ;;  %v4910_v21 = vsel %vm204_vm0, %v8086_v3, 0.0  ;;  %v4705_v33 = vadd.f32 %v4666_v37, %v7960_v26  ;;  %v4869_v55 = vadd.f32 %v8034_v10, %v4846_v29  ;;  %v6675_v29 = vld [vmem:[%s8742_s0 + $0x68] sm:$0xff] }
 0x6cf   :  { %v4848_v59 = vmul.f32 0.25, %v4832_v40  ;;  %v6671_v40 = vld [vmem:[%s8742_s0 + $0x40] sm:$0xff] }
 0x6d0   :  { %v4726_v57 = vpop.permute.xlu1 %4725  ;;  %v4794_v19 = vpop.permute.xlu0 %4793 }
 0x6d1   :  { %v4871_v16 = vadd.f32 %v8034_v10, %v4848_v59  ;;  %v4767_v30 = vadd.f32 %v4726_v57, %v4703_v9  ;;  %v6672_v9 = vld [vmem:[%s8742_s0 + $0x28] sm:$0xff] }
 0x6d3   :  { %v8079_v46 = vadd.f32 %v6667_v61, %v4871_v16  ;;  %v8123_v16 = vadd.f32 %v6672_v9, %v4869_v55  ;;  %v6676_v55 = vld [vmem:[%s8742_s0 + $0x60] sm:$0xff] }
 0x6d4   :  { %v4790_v43 = vpop.permute.xlu1 %4789  ;;  %v4736_v48 = vpop.permute.xlu0 %4735 }
 0x6d5   :  { %v4831_v11 = vadd.f32 %v4790_v43, %v4767_v30  ;;  %v4919_v5 = vsel %vm204_vm0, %v8079_v46, 0.0 }
 0x6d6   :  { %4920 = vadd.xlane.f32.xlu1 %v4919_v5 }
 0x6d7   :  { %v4847_v38 = vmul.f32 0.25, %v4831_v11  ;;  %v6673_v11 = vld [vmem:[%s8742_s0 + $0x58] sm:$0xff] }
 0x6d8   :  { %v4732_v51 = vpop.permute.xlu1 %4731  ;;  %v4670_v35 = vpop.permute.xlu0 %4669 }
 0x6d9   :  { %v4870_v39 = vadd.f32 %v8034_v10, %v4847_v38  ;;  %v4770_v17 = vadd.f32 %v4732_v51, %v4706_v56 }
 0x6da   :  { %4911 = vadd.xlane.f32.xlu1 %v4910_v21 }
 0x6db   :  { %v8096_v20 = vadd.f32 %v6669_v8, %v4870_v39 }
 0x6dc   :  { %v4796_v49 = vpop.permute.xlu1 %4795  ;;  %v4798_v63 = vpop.permute.xlu0 %4797 }
 0x6dd   :  { %v4834_v1 = vadd.f32 %v4796_v49, %v4770_v17  ;;  %v4916_v36 = vsel %vm204_vm0, %v8096_v20, 0.0  ;;  %v6674_v49 = vld [vmem:[%s8742_s0 + $0x50] sm:$0xff] }
 0x6de   :  { %4917 = vadd.xlane.f32.xlu0 %v4916_v36 }
 0x6df   :  { %v4850_v25 = vmul.f32 0.25, %v4834_v1 }
 0x6e0   :  { %v4730_v12 = vpop.permute.xlu1 %4729  ;;  %v4740_v60 = vpop.permute.xlu0 %4739 }
 0x6e1   :  { %v4873_v28 = vadd.f32 %v8034_v10, %v4850_v25  ;;  %v4769_v24 = vadd.f32 %v4730_v12, %v4705_v33 }
 0x6e3   :  { %v4833_v27 = vadd.f32 %v4794_v19, %v4769_v24  ;;  %v8105_v14 = vadd.f32 %v6670_v0, %v4873_v28 }
 0x6e4   :  { %v4672_v34 = vpop.permute.xlu1 %4671  ;;  %v4674_v47 = vpop.permute.xlu0 %4673 }
 0x6e5   :  { %v4849_v15 = vmul.f32 0.25, %v4833_v27  ;;  %v4708_v4 = vadd.f32 %v7974_v45, %v4672_v34  ;;  %v4925_v26 = vsel %vm204_vm0, %v8105_v14, 0.0  ;;  %v4707_v45 = vadd.f32 %v4670_v35, %v7976_v54 }
 0x6e6   :  { %4926 = vadd.xlane.f32.xlu0 %v4925_v26  ;;  %v4913_v54 = vsel %vm204_vm0, %v8123_v16, 0.0 }
 0x6e7   :  { %v4872_v62 = vadd.f32 %v8034_v10, %v4849_v15  ;;  %v4772_v13 = vadd.f32 %v4736_v48, %v4708_v4 }
 0x6e8   :  { %v4800_v41 = vpop.permute.xlu1 %4799  ;;  %v4802_v37 = vpop.permute.xlu0 %4801 }
 0x6e9   :  { %v4836_v32 = vadd.f32 %v4800_v41, %v4772_v13  ;;  %v8115_v59 = vadd.f32 %v6671_v40, %v4872_v62 }
 0x6eb   :  { %v4852_v57 = vmul.f32 0.25, %v4836_v32  ;;  %v4922_v19 = vsel %vm204_vm0, %v8115_v59, 0.0  ;;  %v6677_v32 = vld [vmem:[%s8742_s0 + $0x70] sm:$0xff] }
 0x6ec   :  { %v4734_v23 = vpop.permute.xlu1 %4733  ;;  %4923 = vadd.xlane.f32.xlu0 %v4922_v19  ;;  %v4744_v30 = vpop.permute.xlu0 %4743  ;;  %v6678_v19 = vld [vmem:[%s8742_s0 + $0x78] sm:$0xff] }
 0x6ed   :  { %v4875_v61 = vadd.f32 %v8034_v10, %v4852_v57  ;;  %v4771_v43 = vadd.f32 %v4734_v23, %v4707_v45 }
 0x6ef   :  { %v4835_v48 = vadd.f32 %v4798_v63, %v4771_v43  ;;  %v8131_v5 = vadd.f32 %v6673_v11, %v4875_v61 }
 0x6f0   :  { %v4676_v42 = vpop.permute.xlu1 %4675  ;;  %4914 = vadd.xlane.f32.xlu0 %v4913_v54  ;;  %v4678_v38 = vpop.permute.xlu0 %4677 }
 0x6f1   :  { %v4851_v51 = vmul.f32 0.25, %v4835_v48  ;;  %v4710_v35 = vadd.f32 %v7986_v53, %v4676_v42  ;;  %v4931_v39 = vsel %vm204_vm0, %v8131_v5, 0.0  ;;  %v4711_v17 = vadd.f32 %v4678_v38, %v8000_v31 }
 0x6f2   :  { %v4709_v53 = vadd.f32 %v4674_v47, %v7988_v22 }
 0x6f3   :  { %v4874_v6 = vadd.f32 %v8034_v10, %v4851_v51  ;;  %v4774_v56 = vadd.f32 %v4740_v60, %v4710_v35 }
 0x6f4   :  { %v4804_v21 = vpop.permute.xlu1 %4803  ;;  %4932 = vadd.xlane.f32.xlu0 %v4931_v39  ;;  %v4742_v58 = vpop.permute.xlu0 %4741 }
 0x6f5   :  { %v4838_v8 = vadd.f32 %v4804_v21, %v4774_v56  ;;  %v8141_v63 = vadd.f32 %v6674_v49, %v4874_v6  ;;  %v4775_v36 = vadd.f32 %v4742_v58, %v4711_v17 }
 0x6f7   :  { %v4854_v1 = vmul.f32 0.25, %v4838_v8  ;;  %v4928_v52 = vsel %vm204_vm0, %v8141_v63, 0.0 }
 0x6f8   :  { %4929 = vadd.xlane.f32.xlu1 %v4928_v52  ;;  %v4738_v33 = vpop.permute.xlu1 %4737  ;;  %v4806_v25 = vpop.permute.xlu0 %4805 }
 0x6f9   :  { %v4877_v12 = vadd.f32 %v8034_v10, %v4854_v1  ;;  %v4773_v31 = vadd.f32 %v4738_v33, %v4709_v53  ;;  %v4839_v60 = vadd.f32 %v4806_v25, %v4775_v36  ;;  %v5152_v53 = vld [vmem:[%s8745_s6 + $0x8] sm:$0xff]  ;;  %v5154_v33 = vld [vmem:[%s8745_s6 + $0x18] sm:$0xff] }
 0x6fb   :  { %v4837_v28 = vadd.f32 %v4802_v37, %v4773_v31  ;;  %v4855_v24 = vmul.f32 0.25, %v4839_v60  ;;  %v8150_v27 = vadd.f32 %v6675_v29, %v4877_v12 }
 0x6fc   :  { %v4680_v22 = vpop.permute.xlu1 %4679 }
 0x6fd   :  { %v4853_v0 = vmul.f32 0.25, %v4837_v28  ;;  %v4712_v34 = vadd.f32 %v7998_v7, %v4680_v22  ;;  %v4937_v47 = vsel %vm204_vm0, %v8150_v27, 0.0  ;;  %v4878_v4 = vadd.f32 %v8034_v10, %v4855_v24 }
 0x6fe   :  { %4938 = vadd.xlane.f32.xlu0 %v4937_v47 }
 0x6ff   :  { %v4876_v15 = vadd.f32 %v8034_v10, %v4853_v0  ;;  %v4776_v26 = vadd.f32 %v4744_v30, %v4712_v34  ;;  %v8167_v40 = vadd.f32 %v6677_v32, %v4878_v4 }
 0x700   :  { %v4808_v62 = vpop.permute.xlu1 %4807 }
 0x701   :  { %v4840_v13 = vadd.f32 %v4808_v62, %v4776_v26  ;;  %v8160_v41 = vadd.f32 %v6676_v55, %v4876_v15  ;;  %v4940_v57 = vsel %vm204_vm0, %v8167_v40, 0.0 }
 0x703   :  { %v4856_v37 = vmul.f32 0.25, %v4840_v13  ;;  %v4934_v7 = vsel %vm204_vm0, %v8160_v41, 0.0 }
 0x704   :  { %4935 = vadd.xlane.f32.xlu1 %v4934_v7 }
 0x705   :  { %v4879_v45 = vadd.f32 %v8034_v10, %v4856_v37 }
 0x707   :  { %v8175_v9 = vadd.f32 %v6678_v19, %v4879_v45 }
 0x708   :  { %4941 = vadd.xlane.f32.xlu1 %v4940_v57 }
 0x709   :  { %v4943_v23 = vsel %vm204_vm0, %v8175_v9, 0.0 }
 0x70a   :  { %4944 = vadd.xlane.f32.xlu0 %v4943_v23 }
 0x73d   :  { %v4903_v30 = vpop.xlane.xlu0 %4902 }
 0x73e   :  { %v4948_v61 = vmul.f32 0.03125, %v4903_v30 }
 0x740   :  { %v8180_v43 = vsub.f32 %v8041_v18, %v4948_v61 }
 0x742   :  { %v4980_v10 = vmul.f32 %v8180_v43, %v8180_v43 }
 0x743   :  { %v4900_v48 = vpop.xlane.xlu1 %4899 }
 0x744   :  { %v4947_v54 = vmul.f32 0.03125, %v4900_v48  ;;  %v4998_v11 = vsel %vm204_vm0, %v4980_v10, 0.0 }
 0x745   :  { %4999 = vadd.xlane.f32.xlu0 %v4998_v11 }
 0x746   :  { %v8186_v42 = vsub.f32 %v8050_v44, %v4947_v54 }
 0x748   :  { %v4979_v38 = vmul.f32 %v8186_v42, %v8186_v42 }
 0x749   :  { %v4909_v51 = vpop.xlane.xlu0 %4908 }
 0x74a   :  { %v4950_v35 = vmul.f32 0.03125, %v4909_v51  ;;  %v4995_v6 = vsel %vm204_vm0, %v4979_v38, 0.0 }
 0x74b   :  { %4996 = vadd.xlane.f32.xlu1 %v4995_v6 }
 0x74c   :  { %v8192_v18 = vsub.f32 %v8059_v50, %v4950_v35  ;;  %v5151_v50 = vld [vmem:[%s8745_s6] sm:$0xff] }
 0x74d   :  { %v6370_v1 = vpack.c.bf16 %v5152_v53, %v5151_v50 }
 0x74e   :  { %v4982_v56 = vmul.f32 %v8192_v18, %v8192_v18 }
 0x74f   :  { %v4906_v39 = vpop.xlane.xlu1 %4905  ;;  %6371 = vmatprep.subr.bf16.mxu0 %v6370_v1  ;;  %6378 = vmatprep.subr.bf16.mxu1 %v6370_v1 }
 0x750   :  { %v4949_v21 = vmul.f32 0.03125, %v4906_v39  ;;  %v5004_v58 = vsel %vm204_vm0, %v4982_v56, 0.0  ;;  %6373 = vmatpush3.bf16.msra.mxu0 %v6370_v1  ;;  %6380 = vmatpush3.bf16.msra.mxu1 %v6370_v1 }
 0x751   :  { %5005 = vadd.xlane.f32.xlu0 %v5004_v58 }
 0x752   :  { %v8198_v44 = vsub.f32 %v8067_v2, %v4949_v21  ;;  %v5153_v2 = vld [vmem:[%s8745_s6 + $0x10] sm:$0xff] }
 0x753   :  { %v6374_v12 = vpack.c.bf16 %v5154_v33, %v5153_v2 }
 0x754   :  { %v4981_v17 = vmul.f32 %v8198_v44, %v8198_v44 }
 0x755   :  { %6375 = vmatprep.subr.bf16.mxu0 %v6374_v12  ;;  %6379 = vmatprep.subr.bf16.mxu1 %v6374_v12 }
 0x756   :  { %v5001_v8 = vsel %vm204_vm0, %v4981_v17, 0.0  ;;  %6377 = vmatpush3.bf16.msra.mxu0 %v6374_v12  ;;  %6381 = vmatpush3.bf16.msra.mxu1 %v6374_v12 }
 0x757   :  { %5002 = vadd.xlane.f32.xlu1 %v5001_v8 }
 0x763   :  { %v4921_v49 = vpop.xlane.xlu1 %4920 }
 0x764   :  { %v4954_v15 = vmul.f32 0.03125, %v4921_v49 }
 0x766   :  { %v8233_v13 = vsub.f32 %v8079_v46, %v4954_v15 }
 0x767   :  { %v4912_v36 = vpop.xlane.xlu1 %4911 }
 0x768   :  { %v4951_v52 = vmul.f32 0.03125, %v4912_v36  ;;  %v4986_v46 = vmul.f32 %v8233_v13, %v8233_v13 }
 0x76a   :  { %v8216_v25 = vsub.f32 %v8086_v3, %v4951_v52  ;;  %v5016_v10 = vsel %vm204_vm0, %v4986_v46, 0.0 }
 0x76b   :  { %v4918_v31 = vpop.xlane.xlu0 %4917 }
 0x76c   :  { %v4953_v60 = vmul.f32 0.03125, %v4918_v31  ;;  %v4983_v28 = vmul.f32 %v8216_v25, %v8216_v25 }
 0x76e   :  { %v8221_v24 = vsub.f32 %v8096_v20, %v4953_v60  ;;  %v5007_v29 = vsel %vm204_vm0, %v4983_v28, 0.0 }
 0x76f   :  { %5008 = vadd.xlane.f32.xlu1 %v5007_v29 }
 0x770   :  { %v4985_v3 = vmul.f32 %v8221_v24, %v8221_v24 }
 0x772   :  { %v5013_v22 = vsel %vm204_vm0, %v4985_v3, 0.0 }
 0x773   :  { %5014 = vadd.xlane.f32.xlu1 %v5013_v22  ;;  %v4927_v0 = vpop.xlane.xlu0 %4926 }
 0x774   :  { %v4956_v55 = vmul.f32 0.03125, %v4927_v0 }
 0x776   :  { %v8242_v45 = vsub.f32 %v8105_v14, %v4956_v55 }
 0x778   :  { %v4988_v14 = vmul.f32 %v8242_v45, %v8242_v45 }
 0x779   :  { %v4924_v34 = vpop.xlane.xlu0 %4923 }
 0x77a   :  { %v4955_v47 = vmul.f32 0.03125, %v4924_v34  ;;  %v5022_v51 = vsel %vm204_vm0, %v4988_v14, 0.0 }
 0x77c   :  { %v8228_v4 = vsub.f32 %v8115_v59, %v4955_v47 }
 0x77d   :  { %v4915_v26 = vpop.xlane.xlu0 %4914 }
 0x77e   :  { %v4952_v62 = vmul.f32 0.03125, %v4915_v26  ;;  %v4987_v20 = vmul.f32 %v8228_v4, %v8228_v4  ;;  %v8291_v26 = vld [vmem:[%s8746_s4] ss:$0 sm:$0xff] }
 0x780   :  { %v8236_v37 = vsub.f32 %v8123_v16, %v4952_v62  ;;  %v5019_v7 = vsel %vm204_vm0, %v4987_v20, 0.0 }
 0x781   :  { %5020 = vadd.xlane.f32.xlu1 %v5019_v7  ;;  %v4933_v32 = vpop.xlane.xlu0 %4932 }
 0x782   :  { %v4984_v59 = vmul.f32 %v8236_v37, %v8236_v37  ;;  %v4958_v57 = vmul.f32 0.03125, %v4933_v32  ;;  %v8298_v32 = vld [vmem:[%s8747_s5] ss:$0 sm:$0xff] }
 0x784   :  { %v5010_v19 = vsel %vm204_vm0, %v4984_v59, 0.0  ;;  %v8248_v30 = vsub.f32 %v8131_v5, %v4958_v57 }
 0x785   :  { %v4930_v23 = vpop.xlane.xlu1 %4929  ;;  %5011 = vadd.xlane.f32.xlu0 %v5010_v19 }
 0x786   :  { %v4957_v16 = vmul.f32 0.03125, %v4930_v23  ;;  %v4990_v5 = vmul.f32 %v8248_v30, %v8248_v30 }
 0x788   :  { %v8251_v61 = vsub.f32 %v8141_v63, %v4957_v16  ;;  %v5028_v35 = vsel %vm204_vm0, %v4990_v5, 0.0 }
 0x789   :  { %5017 = vadd.xlane.f32.xlu0 %v5016_v10 }
 0x78a   :  { %v4989_v48 = vmul.f32 %v8251_v61, %v8251_v61 }
 0x78b   :  { %v4939_v54 = vpop.xlane.xlu0 %4938 }
 0x78c   :  { %v4960_v11 = vmul.f32 0.03125, %v4939_v54  ;;  %v5025_v38 = vsel %vm204_vm0, %v4989_v48, 0.0 }
 0x78d   :  { %5026 = vadd.xlane.f32.xlu1 %v5025_v38  ;;  %5023 = vadd.xlane.f32.xlu0 %v5022_v51 }
 0x78e   :  { %v8263_v63 = vsub.f32 %v8150_v27, %v4960_v11 }
 0x790   :  { %v4992_v6 = vmul.f32 %v8263_v63, %v8263_v63 }
 0x791   :  { %v4936_v56 = vpop.xlane.xlu1 %4935  ;;  %5029 = vadd.xlane.f32.xlu0 %v5028_v35 }
 0x792   :  { %v4959_v39 = vmul.f32 0.03125, %v4936_v56  ;;  %v5034_v58 = vsel %vm204_vm0, %v4992_v6, 0.0 }
 0x794   :  { %v8269_v21 = vsub.f32 %v8160_v41, %v4959_v39 }
 0x795   :  { %v4942_v17 = vpop.xlane.xlu1 %4941  ;;  %5035 = vadd.xlane.f32.xlu0 %v5034_v58 }
 0x796   :  { %v4961_v8 = vmul.f32 0.03125, %v4942_v17  ;;  %v4991_v27 = vmul.f32 %v8269_v21, %v8269_v21 }
 0x797   :  { %v4945_v49 = vpop.xlane.xlu0 %4944 }
 0x798   :  { %v8275_v50 = vsub.f32 %v8167_v40, %v4961_v8  ;;  %v4962_v53 = vmul.f32 0.03125, %v4945_v49  ;;  %v5031_v1 = vsel %vm204_vm0, %v4991_v27, 0.0 }
 0x799   :  { %5032 = vadd.xlane.f32.xlu1 %v5031_v1 }
 0x79a   :  { %v8279_v36 = vsub.f32 %v8175_v9, %v4962_v53  ;;  %v4993_v41 = vmul.f32 %v8275_v50, %v8275_v50 }
 0x79c   :  { %v5037_v52 = vsel %vm204_vm0, %v4993_v41, 0.0  ;;  %v4994_v2 = vmul.f32 %v8279_v36, %v8279_v36 }
 0x79d   :  { %5038 = vadd.xlane.f32.xlu1 %v5037_v52 }
 0x79e   :  { %v5040_v33 = vsel %vm204_vm0, %v4994_v2, 0.0 }
 0x79f   :  { %5041 = vadd.xlane.f32.xlu0 %v5040_v33 }
 0x7d2   :  { %v5000_v40 = vpop.xlane.xlu0 %4999 }
 0x7d3   :  { %v5044_v12 = vmul.f32 0.03125, %v5000_v40 }
 0x7d5   :  { %v5060_v31 = vadd.f32 1e-05, %v5044_v12 }
 0x7d7   :  { %6591 = vrsqrt.f32 %v5060_v31 }
 0x7d8   :  { %v4997_v60 = vpop.xlane.xlu1 %4996 }
 0x7d9   :  { %v5043_v28 = vmul.f32 0.03125, %v4997_v60 }
 0x7db   :  { %v5059_v9 = vadd.f32 1e-05, %v5043_v28 }
 0x7dd   :  { %6593 = vrsqrt.f32 %v5059_v9 }
 0x7de   :  { %v5006_v29 = vpop.xlane.xlu0 %5005 }
 0x7df   :  { %v5046_v3 = vmul.f32 0.03125, %v5006_v29 }
 0x7e1   :  { %v5062_v22 = vadd.f32 1e-05, %v5046_v3  ;;  %v6592_v0 = vpop.eup %6591 }
 0x7e2   :  { %v5092_v47 = vmul.f32 %v6592_v0, %v8180_v43 }
 0x7e3   :  { %6595 = vrsqrt.f32 %v5062_v22 }
 0x7e4   :  { %v5003_v34 = vpop.xlane.xlu1 %5002  ;;  %v5114_v7 = vmul.f32 %v8291_v26, %v5092_v47 }
 0x7e5   :  { %v5045_v15 = vmul.f32 0.03125, %v5003_v34 }
 0x7e6   :  { %v8305_v57 = vadd.f32 %v8298_v32, %v5114_v7 }
 0x7e7   :  { %v6594_v62 = vpop.eup %6593  ;;  %v5061_v20 = vadd.f32 1e-05, %v5045_v15 }
 0x7e8   :  { %v5091_v55 = vmul.f32 %v6594_v62, %v8186_v42 }
 0x7e9   :  { %6597 = vrsqrt.f32 %v5061_v20 }
 0x7ea   :  { %v5113_v43 = vmul.f32 %v8291_v26, %v5091_v55 }
 0x7ec   :  { %v8302_v59 = vadd.f32 %v8298_v32, %v5113_v43 }
 0x7ed   :  { %v6596_v19 = vpop.eup %6595 }
 0x7ee   :  { %6218 = vmatprep.mubr.msk.f32.mxu0 %vm204_vm0, %v8302_v59  ;;  %v5094_v42 = vmul.f32 %v6596_v19, %v8192_v18 }
 0x7ef   :  { %6219 = vmatmul.mubr.msk.f32.vlgmr.msra.gmra.mrb[48].mxu0 %vm204_vm0, %v8305_v57 }
 0x7f0   :  { %v5116_v16 = vmul.f32 %v8291_v26, %v5094_v42 }
 0x7f2   :  { %v8319_v48 = vadd.f32 %v8298_v32, %v5116_v16 }
 0x7f3   :  { %v6598_v46 = vpop.eup %6597 }
 0x7f4   :  { %v5093_v23 = vmul.f32 %v6598_v46, %v8198_v44 }
 0x7f6   :  { %v5115_v10 = vmul.f32 %v8291_v26, %v5093_v23 }
 0x7f8   :  { %v8316_v14 = vadd.f32 %v8298_v32, %v5115_v10 }
 0x7fa   :  { %6221 = vmatprep.mubr.msk.f32.mxu0 %vm204_vm0, %v8316_v14 }
 0x7fb   :  { %6222 = vmatmul.mubr.msk.f32.gmra.mrb[50].mxu0 %vm204_vm0, %v8319_v48 }
 0x7fc   :  { %v5009_v18 = vpop.xlane.xlu1 %5008 }
 0x7fd   :  { %v5047_v54 = vmul.f32 0.03125, %v5009_v18 }
 0x7ff   :  { %v5063_v11 = vadd.f32 1e-05, %v5047_v54 }
 0x800   :  { %v5015_v44 = vpop.xlane.xlu1 %5014 }
 0x801   :  { %6599 = vrsqrt.f32 %v5063_v11  ;;  %v5049_v38 = vmul.f32 0.03125, %v5015_v44 }
 0x803   :  { %v5065_v51 = vadd.f32 1e-05, %v5049_v38 }
 0x805   :  { %6601 = vrsqrt.f32 %v5065_v51 }
 0x80b   :  { %v6600_v5 = vpop.eup %6599 }
 0x80c   :  { %v5095_v35 = vmul.f32 %v6600_v5, %v8216_v25 }
 0x80e   :  { %v5021_v6 = vpop.xlane.xlu1 %5020  ;;  %v5117_v56 = vmul.f32 %v8291_v26, %v5095_v35 }
 0x80f   :  { %v6602_v39 = vpop.eup %6601  ;;  %v5051_v58 = vmul.f32 0.03125, %v5021_v6 }
 0x810   :  { %v8328_v17 = vadd.f32 %v8298_v32, %v5117_v56  ;;  %v5097_v8 = vmul.f32 %v6602_v39, %v8221_v24 }
 0x811   :  { %v5067_v27 = vadd.f32 1e-05, %v5051_v58 }
 0x812   :  { %6224 = vmatprep.mubr.msk.f32.mxu0 %vm204_vm0, %v8328_v17  ;;  %v5012_v49 = vpop.xlane.xlu0 %5011  ;;  %v5119_v53 = vmul.f32 %v8291_v26, %v5097_v8 }
 0x813   :  { %v5048_v1 = vmul.f32 0.03125, %v5012_v49  ;;  %6603 = vrsqrt.f32 %v5067_v27 }
 0x814   :  { %v8335_v25 = vadd.f32 %v8298_v32, %v5119_v53 }
 0x815   :  { %v5064_v41 = vadd.f32 1e-05, %v5048_v1 }
 0x816   :  { %6227 = vmatprep.mubr.msk.f32.mxu1 %vm204_vm0, %v8335_v25  ;;  %v5018_v52 = vpop.xlane.xlu0 %5017 }
 0x817   :  { %6605 = vrsqrt.f32 %v5064_v41  ;;  %v5050_v2 = vmul.f32 0.03125, %v5018_v52 }
 0x819   :  { %v5066_v24 = vadd.f32 1e-05, %v5050_v2 }
 0x81a   :  { %v5027_v33 = vpop.xlane.xlu1 %5026  ;;  %v5024_v40 = vpop.xlane.xlu0 %5023 }
 0x81b   :  { %6607 = vrsqrt.f32 %v5066_v24  ;;  %v5053_v12 = vmul.f32 0.03125, %v5027_v33  ;;  %v5052_v31 = vmul.f32 0.03125, %v5024_v40 }
 0x81d   :  { %v5069_v60 = vadd.f32 1e-05, %v5053_v12  ;;  %v5068_v28 = vadd.f32 1e-05, %v5052_v31  ;;  %v6604_v3 = vpop.eup %6603 }
 0x81e   :  { %v5030_v9 = vpop.xlane.xlu0 %5029  ;;  %v5099_v62 = vmul.f32 %v6604_v3, %v8228_v4 }
 0x81f   :  { %6609 = vrsqrt.f32 %v5069_v60  ;;  %v5054_v29 = vmul.f32 0.03125, %v5030_v9 }
 0x820   :  { %6611 = vrsqrt.f32 %v5068_v28  ;;  %v5121_v23 = vmul.f32 %v8291_v26, %v5099_v62 }
 0x821   :  { %v6606_v22 = vpop.eup %6605  ;;  %v5070_v0 = vadd.f32 1e-05, %v5054_v29 }
 0x822   :  { %v5036_v34 = vpop.xlane.xlu0 %5035  ;;  %v5096_v47 = vmul.f32 %v6606_v22, %v8236_v37  ;;  %v8355_v44 = vadd.f32 %v8298_v32, %v5121_v23 }
 0x823   :  { %6613 = vrsqrt.f32 %v5070_v0  ;;  %v5056_v15 = vmul.f32 0.03125, %v5036_v34 }
 0x824   :  { %v5118_v20 = vmul.f32 %v8291_v26, %v5096_v47 }
 0x825   :  { %v6608_v55 = vpop.eup %6607  ;;  %v5072_v7 = vadd.f32 1e-05, %v5056_v15 }
 0x826   :  { %v5098_v43 = vmul.f32 %v6608_v55, %v8233_v13  ;;  %v5033_v19 = vpop.xlane.xlu1 %5032  ;;  %v8344_v42 = vadd.f32 %v8298_v32, %v5118_v20 }
 0x827   :  { %6615 = vrsqrt.f32 %v5072_v7  ;;  %v5055_v46 = vmul.f32 0.03125, %v5033_v19 }
 0x828   :  { %6225 = vmatmul.mubr.msk.f32.gmra.mrb[52].mxu0 %vm204_vm0, %v8344_v42  ;;  %v5120_v37 = vmul.f32 %v8291_v26, %v5098_v43 }
 0x829   :  { %v6610_v4 = vpop.eup %6609  ;;  %v5071_v16 = vadd.f32 1e-05, %v5055_v46 }
 0x82a   :  { %v6612_v10 = vpop.eup %6611  ;;  %v5039_v18 = vpop.xlane.xlu1 %5038  ;;  %v8351_v54 = vadd.f32 %v8298_v32, %v5120_v37  ;;  %v5101_v13 = vmul.f32 %v6610_v4, %v8251_v61 }
 0x82b   :  { %6617 = vrsqrt.f32 %v5071_v16  ;;  %v5057_v11 = vmul.f32 0.03125, %v5039_v18  ;;  %v5100_v38 = vmul.f32 %v6612_v10, %v8242_v45 }
 0x82c   :  { %6228 = vmatmul.mubr.msk.f32.vlgmr.msra.gmra.mrb[48].mxu1 %vm204_vm0, %v8351_v54  ;;  %v5042_v51 = vpop.xlane.xlu0 %5041  ;;  %v5123_v5 = vmul.f32 %v8291_v26, %v5101_v13 }
 0x82d   :  { %v6614_v35 = vpop.eup %6613  ;;  %v5073_v6 = vadd.f32 1e-05, %v5057_v11  ;;  %v5058_v56 = vmul.f32 0.03125, %v5042_v51  ;;  %6230 = vmatprep.mubr.msk.f32.mxu1 %vm204_vm0, %v8355_v44  ;;  %v5122_v61 = vmul.f32 %v8291_v26, %v5100_v38 }
 0x82e   :  { %v8365_v39 = vadd.f32 %v8298_v32, %v5123_v5  ;;  %v5102_v58 = vmul.f32 %v6614_v35, %v8248_v30 }
 0x82f   :  { %6619 = vrsqrt.f32 %v5073_v6  ;;  %v5074_v45 = vadd.f32 1e-05, %v5058_v56  ;;  %v8369_v8 = vadd.f32 %v8298_v32, %v5122_v61 }
 0x830   :  { %v5124_v27 = vmul.f32 %v8291_v26, %v5102_v58 }
 0x831   :  { %v6616_v49 = vpop.eup %6615  ;;  %6621 = vrsqrt.f32 %v5074_v45  ;;  %6231 = vmatmul.mubr.msk.f32.gmra.mrb[50].mxu1 %vm204_vm0, %v8369_v8 }
 0x832   :  { %6233 = vmatprep.mubr.msk.f32.mxu1 %vm204_vm0, %v8365_v39  ;;  %v8377_v53 = vadd.f32 %v8298_v32, %v5124_v27  ;;  %v5104_v30 = vmul.f32 %v6616_v49, %v8263_v63 }
 0x834   :  { %v5126_v52 = vmul.f32 %v8291_v26, %v5104_v30 }
 0x835   :  { %v6618_v1 = vpop.eup %6617  ;;  %6234 = vmatmul.mubr.msk.f32.gmra.mrb[52].mxu1 %vm204_vm0, %v8377_v53 }
 0x836   :  { %v5103_v41 = vmul.f32 %v6618_v1, %v8269_v21  ;;  %v8390_v31 = vadd.f32 %v8298_v32, %v5126_v52 }
 0x838   :  { %v5125_v2 = vmul.f32 %v8291_v26, %v5103_v41 }
 0x839   :  { %v6620_v24 = vpop.eup %6619 }
 0x83a   :  { %v8386_v33 = vadd.f32 %v8298_v32, %v5125_v2  ;;  %v5105_v40 = vmul.f32 %v6620_v24, %v8275_v50 }
 0x83b   :  { %v6622_v12 = vpop.eup %6621 }
 0x83c   :  { %6236 = vmatprep.mubr.msk.f32.mxu1 %vm204_vm0, %v8386_v33  ;;  %v5127_v63 = vmul.f32 %v8291_v26, %v5105_v40  ;;  %v5106_v21 = vmul.f32 %v6622_v12, %v8279_v36 }
 0x83d   :  { %6237 = vmatmul.mubr.msk.f32.gmra.mrb[54].mxu1 %vm204_vm0, %v8390_v31 }
 0x83e   :  { %v8399_v60 = vadd.f32 %v8298_v32, %v5127_v63  ;;  %v5128_v28 = vmul.f32 %v8291_v26, %v5106_v21  ;;  %v8420_v26 = vld [vmem:[%s8748_s7] ss:$0 sm:$0xff] }
 0x840   :  { %6239 = vmatprep.mubr.msk.f32.mxu1 %vm204_vm0, %v8399_v60  ;;  %v8405_v50 = vadd.f32 %v8298_v32, %v5128_v28 }
 0x842   :  { %6240 = vmatmul.mubr.msk.f32.gmra.mrb[56].mxu1 %vm204_vm0, %v8405_v50 }
 0x8c2   :  { %v8409_v9 = vpop.f32.mrb[48].mxu0 }
 0x8c3   :  { %v8411_v36 = vpop.f32.mrb[49].mxu0  ;;  %v5282_v28 = vadd.f32 %v8409_v9, %v8420_v26 }
 0x8c5   :  { %vm5356_vm9 = vcmp.gt.f32.partialorder %v5282_v28, 0.0 }
 0x8ce   :  { %v8413_v29 = vpop.f32.mrb[50].mxu0 }
 0x8cf   :  { %v8415_v3 = vpop.f32.mrb[51].mxu0 }
 0x8fb   :  { %v6226_v22 = vpop.f32.mrb[52].mxu0 }
 0x8fc   :  { %v5302_v32 = vadd.f32 %v6226_v22, %v8420_v26  ;;  %v5296_v0 = vpop.f32.mrb[53].mxu0  ;;  %v5277_v22 = vadd.f32 %v8420_v26, %v8411_v36  ;;  %v5292_v36 = vadd.f32 %v8413_v29, %v8420_v26 }
 0x8fd   :  { %v5297_v34 = vadd.f32 %v8420_v26, %v5296_v0 }
 0x8fe   :  { %vm5360_vm13 = vcmp.gt.f32.partialorder %v5302_v32, 0.0  ;;  %v5376_v47 = vmul.f32 0.01, %v5302_v32  ;;  %v5371_v9 = vmul.f32 0.01, %v5277_v22  ;;  %vm5355_vm2 = vcmp.gt.f32.partialorder %v5277_v22, 0.0 }
 0x8ff   :  { %vm5359_vm14 = vcmp.gt.f32.partialorder %v5297_v34, 0.0  ;;  %v5375_v15 = vmul.f32 0.01, %v5297_v34  ;;  %v6229_v62 = vpop.f32.mrb[48].mxu1  ;;  %vm5358_vm12 = vcmp.gt.f32.partialorder %v5292_v36, 0.0 }
 0x900   :  { %v5312_v20 = vadd.f32 %v6229_v62, %v8420_v26  ;;  %v5306_v55 = vpop.f32.mrb[49].mxu1  ;;  %v5392_v7 = vsel %vm5360_vm13, %v5302_v32, %v5376_v47 }
 0x901   :  { %v5307_v43 = vadd.f32 %v8420_v26, %v5306_v55  ;;  %v8427_v19 = vadd.f32 %v5392_v7, %v8344_v42  ;;  %v5391_v46 = vsel %vm5359_vm14, %v5297_v34, %v5375_v15  ;;  %v5372_v15 = vmul.f32 0.01, %v5282_v28 }
 0x902   :  { %vm5362_vm15 = vcmp.gt.f32.partialorder %v5312_v20, 0.0  ;;  %v5378_v23 = vmul.f32 0.01, %v5312_v20  ;;  %v8430_v37 = vadd.f32 %v5391_v46, %v8328_v17  ;;  %vm5693_vm14 = vcmask 523520  }
 0x903   :  { %vm5361_vm1 = vcmp.gt.f32.partialorder %v5307_v43, 0.0  ;;  %v5377_v4 = vmul.f32 0.01, %v5307_v43  ;;  %v5436_v16 = vsel %vm204_vm0, %v8427_v19, 0.0 }
 0x904   :  { %v6232_v10 = vpop.f32.mrb[50].mxu1  ;;  %5437 = vadd.xlane.f32.xlu0 %v5436_v16  ;;  %v5433_v18 = vsel %vm204_vm0, %v8430_v37, 0.0  ;;  %v5394_v13 = vsel %vm5362_vm15, %v5312_v20, %v5378_v23  ;;  %v5287_v23 = vadd.f32 %v8420_v26, %v8415_v3  ;;  %v5388_v3 = vsel %vm5356_vm9, %v5282_v28, %v5372_v15 }
 0x905   :  { %v5322_v42 = vadd.f32 %v6232_v10, %v8420_v26  ;;  %v5316_v11 = vpop.f32.mrb[51].mxu1  ;;  %5434 = vadd.xlane.f32.xlu1 %v5433_v18  ;;  %v8438_v38 = vadd.f32 %v5394_v13, %v8351_v54  ;;  %v5393_v17 = vsel %vm5361_vm1, %v5307_v43, %v5377_v4  ;;  %v5374_v13 = vmul.f32 0.01, %v5292_v36 }
 0x906   :  { %v5317_v51 = vadd.f32 %v8420_v26, %v5316_v11  ;;  %v8442_v5 = vadd.f32 %v5393_v17, %v8335_v25  ;;  %vm5357_vm13 = vcmp.gt.f32.partialorder %v5287_v23, 0.0  ;;  %vm5714_vm15 = vcmask 785920  }
 0x907   :  { %vm5364_vm3 = vcmp.gt.f32.partialorder %v5322_v42, 0.0  ;;  %v5380_v35 = vmul.f32 0.01, %v5322_v42  ;;  %v5442_v6 = vsel %vm204_vm0, %v8438_v38, 0.0 }
 0x908   :  { %vm5363_vm4 = vcmp.gt.f32.partialorder %v5317_v51, 0.0  ;;  %v5379_v56 = vmul.f32 0.01, %v5317_v51  ;;  %v6235_v61 = vpop.f32.mrb[52].mxu1  ;;  %5443 = vadd.xlane.f32.xlu0 %v5442_v6  ;;  %v5439_v58 = vsel %vm204_vm0, %v8442_v5, 0.0  ;;  %v8502_v6 = vadd.f32 %v5388_v3, %v8305_v57 }
 0x909   :  { %v5332_v54 = vadd.f32 %v6235_v61, %v8420_v26  ;;  %v5326_v45 = vpop.f32.mrb[53].mxu1  ;;  %5440 = vadd.xlane.f32.xlu1 %v5439_v58  ;;  %v5396_v27 = vsel %vm5364_vm3, %v5322_v42, %v5380_v35 }
 0x90a   :  { %v5327_v25 = vadd.f32 %v8420_v26, %v5326_v45  ;;  %v8451_v49 = vadd.f32 %v5396_v27, %v8369_v8  ;;  %v5395_v30 = vsel %vm5363_vm4, %v5317_v51, %v5379_v56 }
 0x90b   :  { %vm5366_vm5 = vcmp.gt.f32.partialorder %v5332_v54, 0.0  ;;  %v5382_v1 = vmul.f32 0.01, %v5332_v54  ;;  %v8454_v41 = vadd.f32 %v5395_v30, %v8355_v44 }
 0x90c   :  { %vm5365_vm6 = vcmp.gt.f32.partialorder %v5327_v25, 0.0  ;;  %v5381_v52 = vmul.f32 0.01, %v5327_v25  ;;  %v5448_v2 = vsel %vm204_vm0, %v8451_v49, 0.0 }
 0x90d   :  { %5449 = vadd.xlane.f32.xlu0 %v5448_v2  ;;  %v5445_v24 = vsel %vm204_vm0, %v8454_v41, 0.0  ;;  %v5398_v40 = vsel %vm5366_vm5, %v5332_v54, %v5382_v1 }
 0x90e   :  { %5446 = vadd.xlane.f32.xlu1 %v5445_v24  ;;  %v8461_v8 = vadd.f32 %v5398_v40, %v8377_v53  ;;  %v5397_v12 = vsel %vm5365_vm6, %v5327_v25, %v5381_v52 }
 0x90f   :  { %v8464_v63 = vadd.f32 %v5397_v12, %v8365_v39 }
 0x910   :  { %v5454_v44 = vsel %vm204_vm0, %v8461_v8, 0.0  ;;  %v6238_v21 = vpop.f32.mrb[54].mxu1 }
 0x911   :  { %5455 = vadd.xlane.f32.xlu0 %v5454_v44  ;;  %v5342_v32 = vadd.f32 %v6238_v21, %v8420_v26  ;;  %v5451_v53 = vsel %vm204_vm0, %v8464_v63, 0.0  ;;  %v5336_v0 = vpop.f32.mrb[55].mxu1 }
 0x912   :  { %5452 = vadd.xlane.f32.xlu1 %v5451_v53  ;;  %v5337_v39 = vadd.f32 %v8420_v26, %v5336_v0 }
 0x913   :  { %vm5368_vm7 = vcmp.gt.f32.partialorder %v5342_v32, 0.0  ;;  %v5384_v34 = vmul.f32 0.01, %v5342_v32 }
 0x914   :  { %vm5367_vm8 = vcmp.gt.f32.partialorder %v5337_v39, 0.0  ;;  %v5383_v47 = vmul.f32 0.01, %v5337_v39 }
 0x915   :  { %v6241_v62 = vpop.f32.mrb[56].mxu1  ;;  %v5400_v20 = vsel %vm5368_vm7, %v5342_v32, %v5384_v34 }
 0x916   :  { %v5352_v55 = vadd.f32 %v6241_v62, %v8420_v26  ;;  %v5346_v7 = vpop.f32.mrb[57].mxu1  ;;  %v8480_v43 = vadd.f32 %v5400_v20, %v8390_v31  ;;  %v5399_v46 = vsel %vm5367_vm8, %v5337_v39, %v5383_v47 }
 0x917   :  { %v5347_v4 = vadd.f32 %v8420_v26, %v5346_v7  ;;  %v8486_v16 = vadd.f32 %v5399_v46, %v8386_v33  ;;  %v5387_v26 = vsel %vm5355_vm2, %v5277_v22, %v5371_v9  ;;  %v5373_v33 = vmul.f32 0.01, %v5287_v23 }
 0x918   :  { %vm5370_vm10 = vcmp.gt.f32.partialorder %v5352_v55, 0.0  ;;  %v5386_v10 = vmul.f32 0.01, %v5352_v55  ;;  %v5460_v29 = vsel %vm204_vm0, %v8480_v43, 0.0  ;;  %v8507_v61 = vadd.f32 %v5387_v26, %v8302_v59 }
 0x919   :  { %vm5369_vm11 = vcmp.gt.f32.partialorder %v5347_v4, 0.0  ;;  %v5385_v18 = vmul.f32 0.01, %v5347_v4  ;;  %5461 = vadd.xlane.f32.xlu0 %v5460_v29  ;;  %v5457_v31 = vsel %vm204_vm0, %v8486_v16, 0.0  ;;  %v5389_v58 = vsel %vm5357_vm13, %v5287_v23, %v5373_v33 }
 0x91a   :  { %5458 = vadd.xlane.f32.xlu1 %v5457_v31  ;;  %v5402_v42 = vsel %vm5370_vm10, %v5352_v55, %v5386_v10  ;;  %v5421_v57 = vsel %vm204_vm0, %v8507_v61, 0.0  ;;  %v8517_v45 = vadd.f32 %v5389_v58, %v8316_v14 }
 0x91b   :  { %v8494_v11 = vadd.f32 %v5402_v42, %v8405_v50  ;;  %v5401_v17 = vsel %vm5369_vm11, %v5347_v4, %v5385_v18  ;;  %v5390_v50 = vsel %vm5358_vm12, %v5292_v36, %v5374_v13 }
 0x91c   :  { %v8497_v51 = vadd.f32 %v5401_v17, %v8399_v60  ;;  %v5424_v60 = vsel %vm204_vm0, %v8502_v6, 0.0  ;;  %v8512_v54 = vadd.f32 %v5390_v50, %v8319_v48  ;;  %v5427_v27 = vsel %vm204_vm0, %v8517_v45, 0.0 }
 0x91d   :  { %v5466_v35 = vsel %vm204_vm0, %v8494_v11, 0.0 }
 0x91e   :  { %5467 = vadd.xlane.f32.xlu0 %v5466_v35  ;;  %v5463_v56 = vsel %vm204_vm0, %v8497_v51, 0.0  ;;  %v5430_v59 = vsel %vm204_vm0, %v8512_v54, 0.0 }
 0x91f   :  { %5464 = vadd.xlane.f32.xlu1 %v5463_v56 }
 0x922   :  { %5425 = vadd.xlane.f32.xlu0 %v5424_v60 }
 0x923   :  { %5422 = vadd.xlane.f32.xlu1 %v5421_v57 }
 0x926   :  { %5431 = vadd.xlane.f32.xlu0 %v5430_v59 }
 0x927   :  { %5428 = vadd.xlane.f32.xlu1 %v5427_v27 }
 0x991   :  { %v5438_v25 = vpop.xlane.xlu0 %5437 }
 0x992   :  { %v5474_v30 = vmul.f32 0.03125, %v5438_v25  ;;  %v5435_v48 = vpop.xlane.xlu1 %5434 }
 0x993   :  { %v5473_v1 = vmul.f32 0.03125, %v5435_v48 }
 0x994   :  { %v8524_v52 = vsub.f32 %v8427_v19, %v5474_v30 }
 0x995   :  { %v8527_v2 = vsub.f32 %v8430_v37, %v5473_v1  ;;  %v5444_v14 = vpop.xlane.xlu0 %5443 }
 0x996   :  { %v5476_v24 = vmul.f32 0.03125, %v5444_v14  ;;  %v5441_v40 = vpop.xlane.xlu1 %5440  ;;  %v5506_v12 = vmul.f32 %v8524_v52, %v8524_v52 }
 0x997   :  { %v5475_v44 = vmul.f32 0.03125, %v5441_v40  ;;  %v5505_v21 = vmul.f32 %v8527_v2, %v8527_v2 }
 0x998   :  { %v8534_v28 = vsub.f32 %v8438_v38, %v5476_v24  ;;  %v5532_v22 = vsel %vm204_vm0, %v5506_v12, 0.0 }
 0x999   :  { %v8538_v19 = vsub.f32 %v8442_v5, %v5475_v44  ;;  %5533 = vadd.xlane.f32.xlu0 %v5532_v22  ;;  %v5529_v37 = vsel %vm204_vm0, %v5505_v21, 0.0 }
 0x99a   :  { %v5450_v32 = vpop.xlane.xlu0 %5449  ;;  %5530 = vadd.xlane.f32.xlu1 %v5529_v37  ;;  %v5508_v53 = vmul.f32 %v8534_v28, %v8534_v28 }
 0x99b   :  { %v5478_v0 = vmul.f32 0.03125, %v5450_v32  ;;  %v5447_v39 = vpop.xlane.xlu1 %5446  ;;  %v5507_v34 = vmul.f32 %v8538_v19, %v8538_v19 }
 0x99c   :  { %v5477_v38 = vmul.f32 0.03125, %v5447_v39  ;;  %v5538_v47 = vsel %vm204_vm0, %v5508_v53, 0.0 }
 0x99d   :  { %v8547_v15 = vsub.f32 %v8451_v49, %v5478_v0  ;;  %5539 = vadd.xlane.f32.xlu0 %v5538_v47  ;;  %v5535_v5 = vsel %vm204_vm0, %v5507_v34, 0.0 }
 0x99e   :  { %v8551_v9 = vsub.f32 %v8454_v41, %v5477_v38  ;;  %v5456_v62 = vpop.xlane.xlu0 %5455  ;;  %5536 = vadd.xlane.f32.xlu1 %v5535_v5 }
 0x99f   :  { %v5480_v20 = vmul.f32 0.03125, %v5456_v62  ;;  %v5453_v36 = vpop.xlane.xlu1 %5452  ;;  %v5510_v55 = vmul.f32 %v8547_v15, %v8547_v15 }
 0x9a0   :  { %v5479_v7 = vmul.f32 0.03125, %v5453_v36  ;;  %v5509_v46 = vmul.f32 %v8551_v9, %v8551_v9 }
 0x9a1   :  { %v8558_v49 = vsub.f32 %v8461_v8, %v5480_v20  ;;  %v5544_v23 = vsel %vm204_vm0, %v5510_v55, 0.0 }
 0x9a2   :  { %v8562_v4 = vsub.f32 %v8464_v63, %v5479_v7  ;;  %5545 = vadd.xlane.f32.xlu0 %v5544_v23  ;;  %v5541_v41 = vsel %vm204_vm0, %v5509_v46, 0.0 }
 0x9a3   :  { %5542 = vadd.xlane.f32.xlu1 %v5541_v41  ;;  %v5512_v10 = vmul.f32 %v8558_v49, %v8558_v49 }
 0x9a4   :  { %v5511_v29 = vmul.f32 %v8562_v4, %v8562_v4 }
 0x9a5   :  { %v5550_v18 = vsel %vm204_vm0, %v5512_v10, 0.0 }
 0x9a6   :  { %5551 = vadd.xlane.f32.xlu0 %v5550_v18  ;;  %v5547_v8 = vsel %vm204_vm0, %v5511_v29, 0.0  ;;  %v5462_v31 = vpop.xlane.xlu0 %5461 }
 0x9a7   :  { %5548 = vadd.xlane.f32.xlu1 %v5547_v8  ;;  %v5482_v13 = vmul.f32 0.03125, %v5462_v31  ;;  %v5459_v63 = vpop.xlane.xlu1 %5458 }
 0x9a8   :  { %v5481_v42 = vmul.f32 0.03125, %v5459_v63 }
 0x9a9   :  { %v8572_v3 = vsub.f32 %v8480_v43, %v5482_v13 }
 0x9aa   :  { %v8575_v26 = vsub.f32 %v8486_v16, %v5481_v42 }
 0x9ab   :  { %v5468_v33 = vpop.xlane.xlu0 %5467  ;;  %v5514_v17 = vmul.f32 %v8572_v3, %v8572_v3 }
 0x9ac   :  { %v5484_v35 = vmul.f32 0.03125, %v5468_v33  ;;  %v5465_v56 = vpop.xlane.xlu1 %5464  ;;  %v5513_v50 = vmul.f32 %v8575_v26, %v8575_v26 }
 0x9ad   :  { %v5483_v58 = vmul.f32 0.03125, %v5465_v56  ;;  %v5556_v60 = vsel %vm204_vm0, %v5514_v17, 0.0  ;;  %v8622_v56 = vld [vmem:[%s8749_s8] ss:$0 sm:$0xff] }
 0x9ae   :  { %v8583_v57 = vsub.f32 %v8494_v11, %v5484_v35  ;;  %5557 = vadd.xlane.f32.xlu0 %v5556_v60  ;;  %v5553_v43 = vsel %vm204_vm0, %v5513_v50, 0.0 }
 0x9af   :  { %v8587_v16 = vsub.f32 %v8497_v51, %v5483_v58  ;;  %5554 = vadd.xlane.f32.xlu1 %v5553_v43  ;;  %v5426_v59 = vpop.xlane.xlu0 %5425 }
 0x9b0   :  { %v5470_v27 = vmul.f32 0.03125, %v5426_v59  ;;  %v5423_v25 = vpop.xlane.xlu1 %5422  ;;  %v5516_v30 = vmul.f32 %v8583_v57, %v8583_v57  ;;  %v8628_v59 = vld [vmem:[%s8750_s9] ss:$0 sm:$0xff] }
 0x9b1   :  { %v5469_v48 = vmul.f32 0.03125, %v5423_v25  ;;  %v5515_v1 = vmul.f32 %v8587_v16, %v8587_v16 }
 0x9b2   :  { %v8594_v11 = vsub.f32 %v8502_v6, %v5470_v27  ;;  %v5562_v14 = vsel %vm204_vm0, %v5516_v30, 0.0 }
 0x9b3   :  { %v8598_v24 = vsub.f32 %v8507_v61, %v5469_v48  ;;  %5563 = vadd.xlane.f32.xlu0 %v5562_v14  ;;  %v5432_v51 = vpop.xlane.xlu0 %5431  ;;  %v5559_v40 = vsel %vm204_vm0, %v5515_v1, 0.0 }
 0x9b4   :  { %v5472_v12 = vmul.f32 0.03125, %v5432_v51  ;;  %5560 = vadd.xlane.f32.xlu1 %v5559_v40  ;;  %v5429_v44 = vpop.xlane.xlu1 %5428  ;;  %v5502_v21 = vmul.f32 %v8594_v11, %v8594_v11 }
 0x9b5   :  { %v5471_v22 = vmul.f32 0.03125, %v5429_v44  ;;  %v5501_v6 = vmul.f32 %v8598_v24, %v8598_v24 }
 0x9b6   :  { %v8606_v37 = vsub.f32 %v8512_v54, %v5472_v12  ;;  %v5520_v61 = vsel %vm204_vm0, %v5502_v21, 0.0 }
 0x9b7   :  { %v8610_v32 = vsub.f32 %v8517_v45, %v5471_v22  ;;  %5521 = vadd.xlane.f32.xlu0 %v5520_v61  ;;  %v5517_v53 = vsel %vm204_vm0, %v5501_v6, 0.0 }
 0x9b8   :  { %5518 = vadd.xlane.f32.xlu1 %v5517_v53  ;;  %v5504_v0 = vmul.f32 %v8606_v37, %v8606_v37 }
 0x9b9   :  { %v5503_v39 = vmul.f32 %v8610_v32, %v8610_v32 }
 0x9ba   :  { %v5526_v34 = vsel %vm204_vm0, %v5504_v0, 0.0 }
 0x9bb   :  { %5527 = vadd.xlane.f32.xlu0 %v5526_v34  ;;  %v5523_v54 = vsel %vm204_vm0, %v5503_v39, 0.0 }
 0x9bc   :  { %5524 = vadd.xlane.f32.xlu1 %v5523_v54 }
 0xa26   :  { %v5534_v38 = vpop.xlane.xlu0 %5533 }
 0xa27   :  { %v5570_v47 = vmul.f32 0.03125, %v5534_v38  ;;  %v5531_v45 = vpop.xlane.xlu1 %5530 }
 0xa28   :  { %v5569_v5 = vmul.f32 0.03125, %v5531_v45 }
 0xa29   :  { %v5586_v62 = vadd.f32 1e-05, %v5570_v47 }
 0xa2a   :  { %v5585_v20 = vadd.f32 1e-05, %v5569_v5  ;;  %v5540_v36 = vpop.xlane.xlu0 %5539 }
 0xa2b   :  { %6623 = vrsqrt.f32 %v5586_v62  ;;  %v5572_v55 = vmul.f32 0.03125, %v5540_v36  ;;  %v5537_v7 = vpop.xlane.xlu1 %5536 }
 0xa2c   :  { %6625 = vrsqrt.f32 %v5585_v20  ;;  %v5571_v46 = vmul.f32 0.03125, %v5537_v7 }
 0xa2d   :  { %v5588_v23 = vadd.f32 1e-05, %v5572_v55 }
 0xa2e   :  { %v5587_v41 = vadd.f32 1e-05, %v5571_v46 }
 0xa2f   :  { %6627 = vrsqrt.f32 %v5588_v23  ;;  %v5546_v10 = vpop.xlane.xlu0 %5545 }
 0xa30   :  { %6629 = vrsqrt.f32 %v5587_v41  ;;  %v5574_v29 = vmul.f32 0.03125, %v5546_v10  ;;  %v5543_v18 = vpop.xlane.xlu1 %5542 }
 0xa31   :  { %v5573_v8 = vmul.f32 0.03125, %v5543_v18 }
 0xa32   :  { %v5590_v31 = vadd.f32 1e-05, %v5574_v29 }
 0xa33   :  { %v5589_v13 = vadd.f32 1e-05, %v5573_v8  ;;  %v5552_v63 = vpop.xlane.xlu0 %5551 }
 0xa34   :  { %6631 = vrsqrt.f32 %v5590_v31  ;;  %v5576_v42 = vmul.f32 0.03125, %v5552_v63  ;;  %v5549_v33 = vpop.xlane.xlu1 %5548 }
 0xa35   :  { %v6624_v17 = vpop.eup %6623  ;;  %6633 = vrsqrt.f32 %v5589_v13  ;;  %v5575_v35 = vmul.f32 0.03125, %v5549_v33 }
 0xa36   :  { %v6626_v50 = vpop.eup %6625  ;;  %v5592_v58 = vadd.f32 1e-05, %v5576_v42  ;;  %v5618_v60 = vmul.f32 %v6624_v17, %v8524_v52 }
 0xa37   :  { %v5591_v43 = vadd.f32 1e-05, %v5575_v35  ;;  %v5617_v27 = vmul.f32 %v6626_v50, %v8527_v2 }
 0xa38   :  { %6635 = vrsqrt.f32 %v5592_v58  ;;  %v5640_v25 = vmul.f32 %v8622_v56, %v5618_v60 }
 0xa39   :  { %v6628_v30 = vpop.eup %6627  ;;  %6637 = vrsqrt.f32 %v5591_v43  ;;  %v5639_v48 = vmul.f32 %v8622_v56, %v5617_v27 }
 0xa3a   :  { %v6630_v1 = vpop.eup %6629  ;;  %v5662_v14 = vadd.f32 %v8628_v59, %v5640_v25  ;;  %v5620_v52 = vmul.f32 %v6628_v30, %v8534_v28 }
 0xa3b   :  { %v5558_v51 = vpop.xlane.xlu0 %5557  ;;  %v5661_v40 = vadd.f32 %v8628_v59, %v5639_v48  ;;  %v5619_v12 = vmul.f32 %v6630_v1, %v8538_v19 }
 0xa3c   :  { %v5578_v44 = vmul.f32 0.03125, %v5558_v51  ;;  %v5555_v21 = vpop.xlane.xlu1 %5554  ;;  %5683 = vrot.lane.b32.xlu0 %v5662_v14, %s6685_s1  ;;  %v5642_v2 = vmul.f32 %v8622_v56, %v5620_v52 }
 0xa3d   :  { %v5577_v22 = vmul.f32 0.03125, %v5555_v21  ;;  %5681 = vrot.lane.b32.xlu1 %v5661_v40, %s6685_s1  ;;  %v5641_v39 = vmul.f32 %v8622_v56, %v5619_v12 }
 0xa3e   :  { %v6632_v6 = vpop.eup %6631  ;;  %v5594_v61 = vadd.f32 1e-05, %v5578_v44  ;;  %v5664_v53 = vadd.f32 %v8628_v59, %v5642_v2 }
 0xa3f   :  { %v6634_v0 = vpop.eup %6633  ;;  %v5593_v28 = vadd.f32 1e-05, %v5577_v22  ;;  %v5622_v34 = vmul.f32 %v6632_v6, %v8547_v15  ;;  %v5663_v55 = vadd.f32 %v8628_v59, %v5641_v39 }
 0xa40   :  { %6639 = vrsqrt.f32 %v5594_v61  ;;  %v5564_v19 = vpop.xlane.xlu0 %5563  ;;  %v5621_v54 = vmul.f32 %v6634_v0, %v8551_v9 }
 0xa41   :  { %6641 = vrsqrt.f32 %v5593_v28  ;;  %v5580_v38 = vmul.f32 0.03125, %v5564_v19  ;;  %v5561_v47 = vpop.xlane.xlu1 %5560  ;;  %5687 = vrot.lane.b32.xlu1 %v5664_v53, %s6685_s1  ;;  %v5644_v7 = vmul.f32 %v8622_v56, %v5622_v34 }
 0xa42   :  { %v6636_v45 = vpop.eup %6635  ;;  %v5579_v5 = vmul.f32 0.03125, %v5561_v47  ;;  %v5643_v62 = vmul.f32 %v8622_v56, %v5621_v54 }
 0xa43   :  { %v6638_v20 = vpop.eup %6637  ;;  %v5596_v36 = vadd.f32 1e-05, %v5580_v38  ;;  %v5624_v15 = vmul.f32 %v6636_v45, %v8558_v49  ;;  %v5666_v49 = vadd.f32 %v8628_v59, %v5644_v7 }
 0xa44   :  { %v5595_v46 = vadd.f32 1e-05, %v5579_v5  ;;  %v5522_v23 = vpop.xlane.xlu0 %5521  ;;  %v5665_v9 = vadd.f32 %v8628_v59, %v5643_v62  ;;  %v5623_v41 = vmul.f32 %v6638_v20, %v8562_v4 }
 0xa45   :  { %6643 = vrsqrt.f32 %v5596_v36  ;;  %v5566_v10 = vmul.f32 0.03125, %v5522_v23  ;;  %v5519_v29 = vpop.xlane.xlu1 %5518  ;;  %5685 = vrot.lane.b32.xlu1 %v5663_v55, %s6685_s1  ;;  %v5646_v13 = vmul.f32 %v8622_v56, %v5624_v15 }
 0xa46   :  { %6645 = vrsqrt.f32 %v5595_v46  ;;  %v5565_v18 = vmul.f32 0.03125, %v5519_v29  ;;  %5702 = vrot.lane.b32.xlu0 %v5665_v9, %s6687_s12  ;;  %v5645_v8 = vmul.f32 %v8622_v56, %v5623_v41 }
 0xa47   :  { %v5582_v31 = vadd.f32 1e-05, %v5566_v10  ;;  %v5668_v43 = vadd.f32 %v8628_v59, %v5646_v13 }
 0xa48   :  { %v5581_v63 = vadd.f32 1e-05, %v5565_v18  ;;  %v5528_v42 = vpop.xlane.xlu0 %5527  ;;  %v5667_v4 = vadd.f32 %v8628_v59, %v5645_v8 }
 0xa49   :  { %6647 = vrsqrt.f32 %v5582_v31  ;;  %v5568_v33 = vmul.f32 0.03125, %v5528_v42  ;;  %v5525_v17 = vpop.xlane.xlu1 %5524  ;;  %5704 = vrot.lane.b32.xlu1 %v5666_v49, %s6687_s12 }
 0xa4a   :  { %v6640_v35 = vpop.eup %6639  ;;  %6649 = vrsqrt.f32 %v5581_v63  ;;  %v5567_v50 = vmul.f32 0.03125, %v5525_v17  ;;  %5706 = vrot.lane.b32.xlu0 %v5667_v4, %s6687_s12 }
 0xa4b   :  { %v6642_v58 = vpop.eup %6641  ;;  %v5584_v60 = vadd.f32 1e-05, %v5568_v33  ;;  %v5626_v27 = vmul.f32 %v6640_v35, %v8572_v3 }
 0xa4c   :  { %v5583_v25 = vadd.f32 1e-05, %v5567_v50  ;;  %v5625_v30 = vmul.f32 %v6642_v58, %v8575_v26 }
 0xa4d   :  { %6651 = vrsqrt.f32 %v5584_v60  ;;  %5708 = vrot.lane.b32.xlu1 %v5668_v43, %s6687_s12  ;;  %v5648_v48 = vmul.f32 %v8622_v56, %v5626_v27 }
 0xa4e   :  { %6653 = vrsqrt.f32 %v5583_v25  ;;  %v5647_v1 = vmul.f32 %v8622_v56, %v5625_v30 }
 0xa4f   :  { %v6644_v14 = vpop.eup %6643  ;;  %v5670_v52 = vadd.f32 %v8628_v59, %v5648_v48 }
 0xa50   :  { %v6646_v51 = vpop.eup %6645  ;;  %v5669_v40 = vadd.f32 %v8628_v59, %v5647_v1  ;;  %v5628_v12 = vmul.f32 %v6644_v14, %v8583_v57 }
 0xa51   :  { %5725 = vrot.lane.b32.xlu1 %v5670_v52, %s6686_s11  ;;  %v5627_v3 = vmul.f32 %v6646_v51, %v8587_v16 }
 0xa52   :  { %5723 = vrot.lane.b32.xlu0 %v5669_v40, %s6686_s11  ;;  %v5650_v26 = vmul.f32 %v8622_v56, %v5628_v12 }
 0xa53   :  { %v6648_v44 = vpop.eup %6647  ;;  %v5649_v21 = vmul.f32 %v8622_v56, %v5627_v3 }
 0xa54   :  { %v6650_v2 = vpop.eup %6649  ;;  %v5614_v22 = vmul.f32 %v6648_v44, %v8594_v11  ;;  %v5672_v6 = vadd.f32 %v8628_v59, %v5650_v26 }
 0xa55   :  { %v5613_v61 = vmul.f32 %v6650_v2, %v8598_v24  ;;  %v5671_v57 = vadd.f32 %v8628_v59, %v5649_v21 }
 0xa56   :  { %5729 = vrot.lane.b32.xlu1 %v5672_v6, %s6686_s11  ;;  %v5636_v16 = vmul.f32 %v8622_v56, %v5614_v22 }
 0xa57   :  { %v6652_v53 = vpop.eup %6651  ;;  %5727 = vrot.lane.b32.xlu0 %v5671_v57, %s6686_s11  ;;  %v5635_v0 = vmul.f32 %v8622_v56, %v5613_v61 }
 0xa58   :  { %v6654_v28 = vpop.eup %6653  ;;  %v5616_v39 = vmul.f32 %v6652_v53, %v8606_v37  ;;  %v5658_v11 = vadd.f32 %v8628_v59, %v5636_v16 }
 0xa59   :  { %v5615_v34 = vmul.f32 %v6654_v28, %v8610_v32  ;;  %v5657_v24 = vadd.f32 %v8628_v59, %v5635_v0 }
 0xa5a   :  { %5674 = vst.msk [vmem:[%s8751_s10 + $0x8] sm:$0xff] %vm204_vm0, %v5658_v11  ;;  %v5638_v19 = vmul.f32 %v8622_v56, %v5616_v39 }
 0xa5b   :  { %5673 = vst.msk [vmem:[%s8751_s10] sm:$0xff] %vm204_vm0, %v5657_v24  ;;  %v5637_v37 = vmul.f32 %v8622_v56, %v5615_v34 }
 0xa5c   :  { %v5660_v54 = vadd.f32 %v8628_v59, %v5638_v19 }
 0xa5d   :  { %v5659_v32 = vadd.f32 %v8628_v59, %v5637_v37 }
 0xa5e   :  { %5676 = vst.msk [vmem:[%s8751_s10 + $0x18] sm:$0xff] %vm204_vm0, %v5660_v54 }
 0xa5f   :  { %5675 = vst.msk [vmem:[%s8751_s10 + $0x10] sm:$0xff] %vm204_vm0, %v5659_v32  ;;  %vm5735_vm0 = vcmask 1048320  }
 0xaae   :  { %v5684_v38 = vpop.permute.xlu0 %5683 }
 0xaaf   :  { %5695 = vst.msk [vmem:[%s8751_s10 + $0x8] sm:$0xff] %vm5693_vm14, %v5684_v38  ;;  %v5682_v56 = vpop.permute.xlu1 %5681 }
 0xab0   :  { %5694 = vst.msk [vmem:[%s8751_s10] sm:$0xff] %vm5693_vm14, %v5682_v56 }
 0xab3   :  { %v5688_v59 = vpop.permute.xlu1 %5687 }
 0xab4   :  { %5697 = vst.msk [vmem:[%s8751_s10 + $0x18] sm:$0xff] %vm5693_vm14, %v5688_v59 }
 0xab7   :  { %v5686_v47 = vpop.permute.xlu1 %5685 }
 0xab8   :  { %5696 = vst.msk [vmem:[%s8751_s10 + $0x10] sm:$0xff] %vm5693_vm14, %v5686_v47  ;;  %v5703_v45 = vpop.permute.xlu0 %5702 }
 0xab9   :  { %5715 = vst.msk [vmem:[%s8751_s10] sm:$0xff] %vm5714_vm15, %v5703_v45 }
 0xabb   :  { %v5705_v5 = vpop.permute.xlu1 %5704 }
 0xabc   :  { %5716 = vst.msk [vmem:[%s8751_s10 + $0x8] sm:$0xff] %vm5714_vm15, %v5705_v5  ;;  %v5707_v62 = vpop.permute.xlu0 %5706 }
 0xabd   :  { %5717 = vst.msk [vmem:[%s8751_s10 + $0x10] sm:$0xff] %vm5714_vm15, %v5707_v62 }
 0xabf   :  { %v5709_v20 = vpop.permute.xlu1 %5708 }
 0xac0   :  { %5718 = vst.msk [vmem:[%s8751_s10 + $0x18] sm:$0xff] %vm5714_vm15, %v5709_v20 }
 0xac3   :  { %v5726_v36 = vpop.permute.xlu1 %5725 }
 0xac4   :  { %5737 = vst.msk [vmem:[%s8751_s10 + $0x8] sm:$0xff] %vm5735_vm0, %v5726_v36  ;;  %v5724_v55 = vpop.permute.xlu0 %5723 }
 0xac5   :  { %5736 = vst.msk [vmem:[%s8751_s10] sm:$0xff] %vm5735_vm0, %v5724_v55 }
 0xac8   :  { %v5730_v7 = vpop.permute.xlu1 %5729 }
 0xac9   :  { %5739 = vst.msk [vmem:[%s8751_s10 + $0x18] sm:$0xff] %vm5735_vm0, %v5730_v7  ;;  %v5728_v15 = vpop.permute.xlu0 %5727 }
 0xaca   :  { %5738 = vst.msk [vmem:[%s8751_s10 + $0x10] sm:$0xff] %vm5735_vm0, %v5728_v15 }

</bundles_post_ra>
